<compile_context>
chip_gen: v7x
topology: tpu7x:2x2x1
jax: 0.10.0
libtpu: 0.0.40
codegen_flags: <defaults>
</compile_context>

<pallas_src>
import functools

import jax
import jax.numpy as jnp
from jax import lax
from jax.experimental import pallas as pl
from jax.experimental.pallas import tpu as pltpu

_LANE = 128


def _make_lstm_kernel(seq_len: int, hidden: int):
    """Build the Pallas kernel body (closure over static sizes)."""
    H = hidden
    hp = lax.Precision.HIGHEST

    def kernel(x_ref, wih_ref, b_ref, whh_ref, weff_ref, beff_ref, out_ref):
        # Hoisted input projection for ALL timesteps (off the serial chain):
        # (seq, 128) @ (128, 4H) + b.
        gates_x = (
            jnp.dot(x_ref[...], wih_ref[...],
                    preferred_element_type=jnp.float32, precision=hp)
            + b_ref[...]
        )                                                    # (seq, 4H)

        # Per-gate column views, extracted ONCE in the prologue (PyTorch gate
        # order [i, f, g, o]).  These lane extracts are loop-invariant and do
        # not sit on the recurrent dependence chain.
        gx = [gates_x[:, k * H:(k + 1) * H] for k in range(4)]   # (seq, H) each
        # Per-gate recurrent weights, loaded once: whh_ref is (4, H, H) with
        # whh_ref[k] == W_hh_k^T so dot(h, whh[k]) = h @ W_hh_k^T.
        whh = [whh_ref[k] for k in range(4)]

        h = jnp.zeros((1, H), jnp.float32)
        c = jnp.zeros((1, H), jnp.float32)

        def rdot(hh, w):
            return jnp.dot(hh, w, preferred_element_type=jnp.float32,
                           precision=hp)

        # Fully unrolled recurrence (static, small trip count).  The four
        # per-gate dots are independent given h, so the MXU pipelines them;
        # every gate result lands at lane offset 0 -> no cross-lane shuffles
        # on the serial path.  Elementwise math stays f32 (v5e: no bf16 VPU/EUP).
        for t in range(seq_len):
            i_g = jax.nn.sigmoid(gx[0][t:t + 1, :] + rdot(h, whh[0]))
            f_g = jax.nn.sigmoid(gx[1][t:t + 1, :] + rdot(h, whh[1]))
            g_g = jnp.tanh(gx[2][t:t + 1, :] + rdot(h, whh[2]))
            o_g = jax.nn.sigmoid(gx[3][t:t + 1, :] + rdot(h, whh[3]))
            c = f_g * c + i_g * g_g
            h = o_g * jnp.tanh(c)

        # Fused (pre-folded) linear stack; lane-dense (128-padded) store.
        out_ref[...] = (
            jnp.dot(h, weff_ref[...], preferred_element_type=jnp.float32,
                    precision=hp)
            + beff_ref[...]
        )

    return kernel


def prepare_params(params, *, input_shape, hidden_units, output_shape,
                   num_lin_layers):
    """One-time host-side weight preparation.

    Call ONCE (outside the jitted per-call path) and reuse the result for
    every forward call: all transposes, bias folds, gate splits, the linear
    stack fold and the output-lane padding happen here, not per call.
    """
    H = hidden_units
    hp = lax.Precision.HIGHEST
    in_pad = ((max(input_shape, 1) + _LANE - 1) // _LANE) * _LANE

    # (4H, I) -> (I, 4H), zero-pad the contraction dim to a lane-dense 128.
    wih_t = jnp.pad(params["w_ih"].T.astype(jnp.float32),
                    ((0, in_pad - input_shape), (0, 0)))        # (in_pad, 4H)
    b = (params["b_ih"] + params["b_hh"]).reshape(1, 4 * H).astype(jnp.float32)

    # Recurrent weights transposed and split per gate (PyTorch order
    # [i, f, g, o]): whh_s[k] = W_hh_k^T with shape (H, H).
    whh_t = params["w_hh"].T.astype(jnp.float32)                # (H, 4H)
    whh_s = jnp.stack([whh_t[:, k * H:(k + 1) * H] for k in range(4)])

    # Fold the whole Linear stack (no nonlinearity between layers) into one
    # effective matrix/bias:  out = h @ W_eff + b_eff  (exact up to rounding).
    w_eff = params["lin_w_0"].T.astype(jnp.float32)
    b_eff = params["lin_b_0"].reshape(1, -1).astype(jnp.float32)
    for i in range(1, num_lin_layers):
        wi = params[f"lin_w_{i}"].T.astype(jnp.float32)
        bi = params[f"lin_b_{i}"].reshape(1, -1).astype(jnp.float32)
        w_eff = jnp.dot(w_eff, wi, precision=hp)
        b_eff = jnp.dot(b_eff, wi, precision=hp) + bi

    # Lane-dense padding of the final output block (avoid masked vst).
    out_pad = ((output_shape + _LANE - 1) // _LANE) * _LANE
    w_eff = jnp.pad(w_eff, ((0, 0), (0, out_pad - output_shape)))
    b_eff = jnp.pad(b_eff, ((0, 0), (0, out_pad - output_shape)))

    return {"wih_t": wih_t, "b": b, "whh_s": whh_s,
            "w_eff": w_eff, "b_eff": b_eff}


def lstm_model_forward(x, prepared, *, hidden_units, output_shape):
    """Jittable per-call wrapper.

    x: (1, seq, input_shape) float32.  `prepared` is the output of
    prepare_params (already folded/padded).  Returns (1, output_shape).
    """
    assert x.shape[0] == 1, "stateful model is batch=1"
    seq_len, input_shape = x.shape[1], x.shape[2]
    in_pad = prepared["wih_t"].shape[0]
    out_pad = prepared["w_eff"].shape[1]

    # Only per-call data prep: reshape + lane-dense pad of x.
    x2d = x.reshape(seq_len, input_shape).astype(jnp.float32)
    x2d = jnp.pad(x2d, ((0, 0), (0, in_pad - input_shape)))

    inputs = [x2d, prepared["wih_t"], prepared["b"], prepared["whh_s"],
              prepared["w_eff"], prepared["b_eff"]]
    kernel = _make_lstm_kernel(seq_len, hidden_units)

    vmem = pltpu.MemorySpace.VMEM
    out = pl.pallas_call(
        kernel,
        out_shape=jax.ShapeDtypeStruct((1, out_pad), jnp.float32),
        in_specs=[pl.BlockSpec(memory_space=vmem) for _ in inputs],
        out_specs=pl.BlockSpec(memory_space=vmem),
    )(*inputs)
    return out[:, :output_shape]


def _init_params(key, input_shape, hidden_units, output_shape, num_lin_layers):
    """Deterministic synthetic params, PyTorch-style uniform(-1/sqrt(H), 1/sqrt(H))."""
    params = {}
    k = 1.0 / jnp.sqrt(hidden_units)
    keys = jax.random.split(key, 4 + 2 * num_lin_layers)
    params["w_ih"] = jax.random.uniform(
        keys[0], (4 * hidden_units, input_shape), jnp.float32, -k, k)
    params["w_hh"] = jax.random.uniform(
        keys[1], (4 * hidden_units, hidden_units), jnp.float32, -k, k)
    params["b_ih"] = jax.random.uniform(
        keys[2], (4 * hidden_units,), jnp.float32, -k, k)
    params["b_hh"] = jax.random.uniform(
        keys[3], (4 * hidden_units,), jnp.float32, -k, k)
    in_dim = hidden_units
    for i in range(num_lin_layers):
        out_dim = output_shape if i == num_lin_layers - 1 else hidden_units
        kk = 1.0 / jnp.sqrt(in_dim)
        params[f"lin_w_{i}"] = jax.random.uniform(
            keys[4 + 2 * i], (out_dim, in_dim), jnp.float32, -kk, kk)
        params[f"lin_b_{i}"] = jax.random.uniform(
            keys[5 + 2 * i], (out_dim,), jnp.float32, -kk, kk)
        in_dim = out_dim
    return params


def _reference_forward(x, params, hidden_units, output_shape, num_lin_layers):
    """Pure-JAX reference mirroring the PyTorch forward (eval mode)."""
    hp = lax.Precision.HIGHEST
    seq = x.shape[1]
    x2d = x.reshape(seq, -1)
    H = hidden_units
    w_ih, w_hh = params["w_ih"], params["w_hh"]
    b = params["b_ih"] + params["b_hh"]

    def step(carry, x_t):
        h, c = carry
        gates = (jnp.dot(x_t, w_ih.T, precision=hp)
                 + jnp.dot(h, w_hh.T, precision=hp) + b)
        i_g = jax.nn.sigmoid(gates[0:H])
        f_g = jax.nn.sigmoid(gates[H:2 * H])
        g_g = jnp.tanh(gates[2 * H:3 * H])
        o_g = jax.nn.sigmoid(gates[3 * H:4 * H])
        c_new = f_g * c + i_g * g_g
        h_new = o_g * jnp.tanh(c_new)
        return (h_new, c_new), h_new

    (h, c), hs = lax.scan(step, (jnp.zeros(H), jnp.zeros(H)), x2d)
    out = hs                                                 # (seq, H)
    for i in range(num_lin_layers):
        out = jnp.dot(out, params[f"lin_w_{i}"].T, precision=hp) \
            + params[f"lin_b_{i}"]
        if i == num_lin_layers - 1:
            out = out[-1][None, :]
    return out


if __name__ == "__main__":
    # Small shapes consistent with the module's forward (stateful => batch 1).
    input_shape = 4
    hidden_units = 32
    output_shape = 4
    num_lin_layers = 2
    batch, seq = 1, 8

    key = jax.random.PRNGKey(0)
    kx, kp = jax.random.split(key)
    x = jax.random.normal(kx, (batch, seq, input_shape), jnp.float32)
    params = _init_params(kp, input_shape, hidden_units, output_shape,
                          num_lin_layers)

    # One-time weight preparation (outside the jitted per-call path).
    prepared = prepare_params(
        params,
        input_shape=input_shape,
        hidden_units=hidden_units,
        output_shape=output_shape,
        num_lin_layers=num_lin_layers,
    )

    fwd = jax.jit(functools.partial(
        lstm_model_forward,
        hidden_units=hidden_units,
        output_shape=output_shape,
    ))
    y = jax.block_until_ready(fwd(x, prepared))
    assert y.shape == (1, output_shape), y.shape

    y_ref = _reference_forward(x, params, hidden_units, output_shape,
                               num_lin_layers)
    assert jnp.allclose(y, y_ref, atol=1e-4, rtol=1e-4), (y, y_ref)

    print("KERNEL_OK")
</pallas_src>

<mosaic_0001>
module attributes {stable_mosaic.version = 11 : i64} {
  func.func @kernel(%arg0: memref<8x128xf32, #tpu.memory_space<vmem>>, %arg1: memref<128x128xf32, #tpu.memory_space<vmem>>, %arg2: memref<1x128xf32, #tpu.memory_space<vmem>>, %arg3: memref<4x32x32xf32, #tpu.memory_space<vmem>>, %arg4: memref<32x128xf32, #tpu.memory_space<vmem>>, %arg5: memref<1x128xf32, #tpu.memory_space<vmem>>, %arg6: memref<1x128xf32, #tpu.memory_space<vmem>>) attributes {dimension_semantics = [], scalar_prefetch = 0 : i64, scratch_operands = 0 : i64, tpu.core_type = #tpu.core_type<tc>} {
    %c0 = arith.constant 0 : index
    %c0_0 = arith.constant 0 : index
    %0 = vector.load %arg0[%c0, %c0_0] : memref<8x128xf32, #tpu.memory_space<vmem>>, vector<8x128xf32>
    %c0_1 = arith.constant 0 : index
    %c0_2 = arith.constant 0 : index
    %1 = vector.load %arg1[%c0_1, %c0_2] : memref<128x128xf32, #tpu.memory_space<vmem>>, vector<128x128xf32>
    %cst = arith.constant dense<0.000000e+00> : vector<8x128xf32>
    %2 = tpu.matmul %0, %1, %cst {dimension_numbers = #tpu.dot_dimension_numbers<[1], [0], [0], [1], [0, 0, 1, 1], [], []>, precision = #tpu.contract_precision<fp32>} : vector<8x128xf32>, vector<128x128xf32>, vector<8x128xf32> -> vector<8x128xf32>
    %c0_3 = arith.constant 0 : index
    %c0_4 = arith.constant 0 : index
    %3 = vector.load %arg2[%c0_3, %c0_4] : memref<1x128xf32, #tpu.memory_space<vmem>>, vector<1x128xf32>
    %4 = vector.broadcast %3 : vector<1x128xf32> to vector<8x128xf32>
    %5 = arith.addf %2, %4 : vector<8x128xf32>
    %6 = vector.extract_strided_slice %5 {offsets = [0, 0], sizes = [8, 32], strides = [1, 1]} : vector<8x128xf32> to vector<8x32xf32>
    %7 = vector.extract_strided_slice %5 {offsets = [0, 32], sizes = [8, 32], strides = [1, 1]} : vector<8x128xf32> to vector<8x32xf32>
    %8 = vector.extract_strided_slice %5 {offsets = [0, 64], sizes = [8, 32], strides = [1, 1]} : vector<8x128xf32> to vector<8x32xf32>
    %9 = vector.extract_strided_slice %5 {offsets = [0, 96], sizes = [8, 32], strides = [1, 1]} : vector<8x128xf32> to vector<8x32xf32>
    %c0_5 = arith.constant 0 : index
    %c0_6 = arith.constant 0 : index
    %c0_7 = arith.constant 0 : index
    %10 = vector.load %arg3[%c0_5, %c0_6, %c0_7] : memref<4x32x32xf32, #tpu.memory_space<vmem>>, vector<1x32x32xf32>
    %11 = vector.shape_cast %10 : vector<1x32x32xf32> to vector<32x32xf32>
    %c1 = arith.constant 1 : index
    %c0_8 = arith.constant 0 : index
    %c0_9 = arith.constant 0 : index
    %12 = vector.load %arg3[%c1, %c0_8, %c0_9] : memref<4x32x32xf32, #tpu.memory_space<vmem>>, vector<1x32x32xf32>
    %13 = vector.shape_cast %12 : vector<1x32x32xf32> to vector<32x32xf32>
    %c2 = arith.constant 2 : index
    %c0_10 = arith.constant 0 : index
    %c0_11 = arith.constant 0 : index
    %14 = vector.load %arg3[%c2, %c0_10, %c0_11] : memref<4x32x32xf32, #tpu.memory_space<vmem>>, vector<1x32x32xf32>
    %15 = vector.shape_cast %14 : vector<1x32x32xf32> to vector<32x32xf32>
    %c3 = arith.constant 3 : index
    %c0_12 = arith.constant 0 : index
    %c0_13 = arith.constant 0 : index
    %16 = vector.load %arg3[%c3, %c0_12, %c0_13] : memref<4x32x32xf32, #tpu.memory_space<vmem>>, vector<1x32x32xf32>
    %17 = vector.shape_cast %16 : vector<1x32x32xf32> to vector<32x32xf32>
    %cst_14 = arith.constant 0.000000e+00 : f32
    %18 = vector.broadcast %cst_14 : f32 to vector<1x32xf32>
    %cst_15 = arith.constant 0.000000e+00 : f32
    %19 = vector.broadcast %cst_15 : f32 to vector<1x32xf32>
    %20 = vector.extract_strided_slice %6 {offsets = [0, 0], sizes = [1, 32], strides = [1, 1]} : vector<8x32xf32> to vector<1x32xf32>
    %cst_16 = arith.constant dense<0.000000e+00> : vector<1x32xf32>
    %21 = tpu.matmul %18, %11, %cst_16 {dimension_numbers = #tpu.dot_dimension_numbers<[1], [0], [0], [1], [0, 0, 1, 1], [], []>, precision = #tpu.contract_precision<fp32>} : vector<1x32xf32>, vector<32x32xf32>, vector<1x32xf32> -> vector<1x32xf32>
    %22 = arith.addf %20, %21 : vector<1x32xf32>
    %23 = arith.negf %22 : vector<1x32xf32>
    %24 = math.exp %23 : vector<1x32xf32>
    %cst_17 = arith.constant 1.000000e+00 : f32
    %25 = vector.broadcast %cst_17 : f32 to vector<1x32xf32>
    %26 = arith.addf %25, %24 : vector<1x32xf32>
    %27 = arith.divf %25, %26 : vector<1x32xf32>
    %28 = vector.extract_strided_slice %7 {offsets = [0, 0], sizes = [1, 32], strides = [1, 1]} : vector<8x32xf32> to vector<1x32xf32>
    %cst_18 = arith.constant dense<0.000000e+00> : vector<1x32xf32>
    %29 = tpu.matmul %18, %13, %cst_18 {dimension_numbers = #tpu.dot_dimension_numbers<[1], [0], [0], [1], [0, 0, 1, 1], [], []>, precision = #tpu.contract_precision<fp32>} : vector<1x32xf32>, vector<32x32xf32>, vector<1x32xf32> -> vector<1x32xf32>
    %30 = arith.addf %28, %29 : vector<1x32xf32>
    %31 = arith.negf %30 : vector<1x32xf32>
    %32 = math.exp %31 : vector<1x32xf32>
    %cst_19 = arith.constant 1.000000e+00 : f32
    %33 = vector.broadcast %cst_19 : f32 to vector<1x32xf32>
    %34 = arith.addf %33, %32 : vector<1x32xf32>
    %35 = arith.divf %33, %34 : vector<1x32xf32>
    %36 = vector.extract_strided_slice %8 {offsets = [0, 0], sizes = [1, 32], strides = [1, 1]} : vector<8x32xf32> to vector<1x32xf32>
    %cst_20 = arith.constant dense<0.000000e+00> : vector<1x32xf32>
    %37 = tpu.matmul %18, %15, %cst_20 {dimension_numbers = #tpu.dot_dimension_numbers<[1], [0], [0], [1], [0, 0, 1, 1], [], []>, precision = #tpu.contract_precision<fp32>} : vector<1x32xf32>, vector<32x32xf32>, vector<1x32xf32> -> vector<1x32xf32>
    %38 = arith.addf %36, %37 : vector<1x32xf32>
    %39 = math.tanh %38 : vector<1x32xf32>
    %40 = vector.extract_strided_slice %9 {offsets = [0, 0], sizes = [1, 32], strides = [1, 1]} : vector<8x32xf32> to vector<1x32xf32>
    %cst_21 = arith.constant dense<0.000000e+00> : vector<1x32xf32>
    %41 = tpu.matmul %18, %17, %cst_21 {dimension_numbers = #tpu.dot_dimension_numbers<[1], [0], [0], [1], [0, 0, 1, 1], [], []>, precision = #tpu.contract_precision<fp32>} : vector<1x32xf32>, vector<32x32xf32>, vector<1x32xf32> -> vector<1x32xf32>
    %42 = arith.addf %40, %41 : vector<1x32xf32>
    %43 = arith.negf %42 : vector<1x32xf32>
    %44 = math.exp %43 : vector<1x32xf32>
    %cst_22 = arith.constant 1.000000e+00 : f32
    %45 = vector.broadcast %cst_22 : f32 to vector<1x32xf32>
    %46 = arith.addf %45, %44 : vector<1x32xf32>
    %47 = arith.divf %45, %46 : vector<1x32xf32>
    %48 = arith.mulf %35, %19 : vector<1x32xf32>
    %49 = arith.mulf %27, %39 : vector<1x32xf32>
    %50 = arith.addf %48, %49 : vector<1x32xf32>
    %51 = math.tanh %50 : vector<1x32xf32>
    %52 = arith.mulf %47, %51 : vector<1x32xf32>
    %53 = vector.extract_strided_slice %6 {offsets = [1, 0], sizes = [1, 32], strides = [1, 1]} : vector<8x32xf32> to vector<1x32xf32>
    %cst_23 = arith.constant dense<0.000000e+00> : vector<1x32xf32>
    %54 = tpu.matmul %52, %11, %cst_23 {dimension_numbers = #tpu.dot_dimension_numbers<[1], [0], [0], [1], [0, 0, 1, 1], [], []>, precision = #tpu.contract_precision<fp32>} : vector<1x32xf32>, vector<32x32xf32>, vector<1x32xf32> -> vector<1x32xf32>
    %55 = arith.addf %53, %54 : vector<1x32xf32>
    %56 = arith.negf %55 : vector<1x32xf32>
    %57 = math.exp %56 : vector<1x32xf32>
    %cst_24 = arith.constant 1.000000e+00 : f32
    %58 = vector.broadcast %cst_24 : f32 to vector<1x32xf32>
    %59 = arith.addf %58, %57 : vector<1x32xf32>
    %60 = arith.divf %58, %59 : vector<1x32xf32>
    %61 = vector.extract_strided_slice %7 {offsets = [1, 0], sizes = [1, 32], strides = [1, 1]} : vector<8x32xf32> to vector<1x32xf32>
    %cst_25 = arith.constant dense<0.000000e+00> : vector<1x32xf32>
    %62 = tpu.matmul %52, %13, %cst_25 {dimension_numbers = #tpu.dot_dimension_numbers<[1], [0], [0], [1], [0, 0, 1, 1], [], []>, precision = #tpu.contract_precision<fp32>} : vector<1x32xf32>, vector<32x32xf32>, vector<1x32xf32> -> vector<1x32xf32>
    %63 = arith.addf %61, %62 : vector<1x32xf32>
    %64 = arith.negf %63 : vector<1x32xf32>
    %65 = math.exp %64 : vector<1x32xf32>
    %cst_26 = arith.constant 1.000000e+00 : f32
    %66 = vector.broadcast %cst_26 : f32 to vector<1x32xf32>
    %67 = arith.addf %66, %65 : vector<1x32xf32>
    %68 = arith.divf %66, %67 : vector<1x32xf32>
    %69 = vector.extract_strided_slice %8 {offsets = [1, 0], sizes = [1, 32], strides = [1, 1]} : vector<8x32xf32> to vector<1x32xf32>
    %cst_27 = arith.constant dense<0.000000e+00> : vector<1x32xf32>
    %70 = tpu.matmul %52, %15, %cst_27 {dimension_numbers = #tpu.dot_dimension_numbers<[1], [0], [0], [1], [0, 0, 1, 1], [], []>, precision = #tpu.contract_precision<fp32>} : vector<1x32xf32>, vector<32x32xf32>, vector<1x32xf32> -> vector<1x32xf32>
    %71 = arith.addf %69, %70 : vector<1x32xf32>
    %72 = math.tanh %71 : vector<1x32xf32>
    %73 = vector.extract_strided_slice %9 {offsets = [1, 0], sizes = [1, 32], strides = [1, 1]} : vector<8x32xf32> to vector<1x32xf32>
    %cst_28 = arith.constant dense<0.000000e+00> : vector<1x32xf32>
    %74 = tpu.matmul %52, %17, %cst_28 {dimension_numbers = #tpu.dot_dimension_numbers<[1], [0], [0], [1], [0, 0, 1, 1], [], []>, precision = #tpu.contract_precision<fp32>} : vector<1x32xf32>, vector<32x32xf32>, vector<1x32xf32> -> vector<1x32xf32>
    %75 = arith.addf %73, %74 : vector<1x32xf32>
    %76 = arith.negf %75 : vector<1x32xf32>
    %77 = math.exp %76 : vector<1x32xf32>
    %cst_29 = arith.constant 1.000000e+00 : f32
    %78 = vector.broadcast %cst_29 : f32 to vector<1x32xf32>
    %79 = arith.addf %78, %77 : vector<1x32xf32>
    %80 = arith.divf %78, %79 : vector<1x32xf32>
    %81 = arith.mulf %68, %50 : vector<1x32xf32>
    %82 = arith.mulf %60, %72 : vector<1x32xf32>
    %83 = arith.addf %81, %82 : vector<1x32xf32>
    %84 = math.tanh %83 : vector<1x32xf32>
    %85 = arith.mulf %80, %84 : vector<1x32xf32>
    %86 = vector.extract_strided_slice %6 {offsets = [2, 0], sizes = [1, 32], strides = [1, 1]} : vector<8x32xf32> to vector<1x32xf32>
    %cst_30 = arith.constant dense<0.000000e+00> : vector<1x32xf32>
    %87 = tpu.matmul %85, %11, %cst_30 {dimension_numbers = #tpu.dot_dimension_numbers<[1], [0], [0], [1], [0, 0, 1, 1], [], []>, precision = #tpu.contract_precision<fp32>} : vector<1x32xf32>, vector<32x32xf32>, vector<1x32xf32> -> vector<1x32xf32>
    %88 = arith.addf %86, %87 : vector<1x32xf32>
    %89 = arith.negf %88 : vector<1x32xf32>
    %90 = math.exp %89 : vector<1x32xf32>
    %cst_31 = arith.constant 1.000000e+00 : f32
    %91 = vector.broadcast %cst_31 : f32 to vector<1x32xf32>
    %92 = arith.addf %91, %90 : vector<1x32xf32>
    %93 = arith.divf %91, %92 : vector<1x32xf32>
    %94 = vector.extract_strided_slice %7 {offsets = [2, 0], sizes = [1, 32], strides = [1, 1]} : vector<8x32xf32> to vector<1x32xf32>
    %cst_32 = arith.constant dense<0.000000e+00> : vector<1x32xf32>
    %95 = tpu.matmul %85, %13, %cst_32 {dimension_numbers = #tpu.dot_dimension_numbers<[1], [0], [0], [1], [0, 0, 1, 1], [], []>, precision = #tpu.contract_precision<fp32>} : vector<1x32xf32>, vector<32x32xf32>, vector<1x32xf32> -> vector<1x32xf32>
    %96 = arith.addf %94, %95 : vector<1x32xf32>
    %97 = arith.negf %96 : vector<1x32xf32>
    %98 = math.exp %97 : vector<1x32xf32>
    %cst_33 = arith.constant 1.000000e+00 : f32
    %99 = vector.broadcast %cst_33 : f32 to vector<1x32xf32>
    %100 = arith.addf %99, %98 : vector<1x32xf32>
    %101 = arith.divf %99, %100 : vector<1x32xf32>
    %102 = vector.extract_strided_slice %8 {offsets = [2, 0], sizes = [1, 32], strides = [1, 1]} : vector<8x32xf32> to vector<1x32xf32>
    %cst_34 = arith.constant dense<0.000000e+00> : vector<1x32xf32>
    %103 = tpu.matmul %85, %15, %cst_34 {dimension_numbers = #tpu.dot_dimension_numbers<[1], [0], [0], [1], [0, 0, 1, 1], [], []>, precision = #tpu.contract_precision<fp32>} : vector<1x32xf32>, vector<32x32xf32>, vector<1x32xf32> -> vector<1x32xf32>
    %104 = arith.addf %102, %103 : vector<1x32xf32>
    %105 = math.tanh %104 : vector<1x32xf32>
    %106 = vector.extract_strided_slice %9 {offsets = [2, 0], sizes = [1, 32], strides = [1, 1]} : vector<8x32xf32> to vector<1x32xf32>
    %cst_35 = arith.constant dense<0.000000e+00> : vector<1x32xf32>
    %107 = tpu.matmul %85, %17, %cst_35 {dimension_numbers = #tpu.dot_dimension_numbers<[1], [0], [0], [1], [0, 0, 1, 1], [], []>, precision = #tpu.contract_precision<fp32>} : vector<1x32xf32>, vector<32x32xf32>, vector<1x32xf32> -> vector<1x32xf32>
    %108 = arith.addf %106, %107 : vector<1x32xf32>
    %109 = arith.negf %108 : vector<1x32xf32>
    %110 = math.exp %109 : vector<1x32xf32>
    %cst_36 = arith.constant 1.000000e+00 : f32
    %111 = vector.broadcast %cst_36 : f32 to vector<1x32xf32>
    %112 = arith.addf %111, %110 : vector<1x32xf32>
    %113 = arith.divf %111, %112 : vector<1x32xf32>
    %114 = arith.mulf %101, %83 : vector<1x32xf32>
    %115 = arith.mulf %93, %105 : vector<1x32xf32>
    %116 = arith.addf %114, %115 : vector<1x32xf32>
    %117 = math.tanh %116 : vector<1x32xf32>
    %118 = arith.mulf %113, %117 : vector<1x32xf32>
    %119 = vector.extract_strided_slice %6 {offsets = [3, 0], sizes = [1, 32], strides = [1, 1]} : vector<8x32xf32> to vector<1x32xf32>
    %cst_37 = arith.constant dense<0.000000e+00> : vector<1x32xf32>
    %120 = tpu.matmul %118, %11, %cst_37 {dimension_numbers = #tpu.dot_dimension_numbers<[1], [0], [0], [1], [0, 0, 1, 1], [], []>, precision = #tpu.contract_precision<fp32>} : vector<1x32xf32>, vector<32x32xf32>, vector<1x32xf32> -> vector<1x32xf32>
    %121 = arith.addf %119, %120 : vector<1x32xf32>
    %122 = arith.negf %121 : vector<1x32xf32>
    %123 = math.exp %122 : vector<1x32xf32>
    %cst_38 = arith.constant 1.000000e+00 : f32
    %124 = vector.broadcast %cst_38 : f32 to vector<1x32xf32>
    %125 = arith.addf %124, %123 : vector<1x32xf32>
    %126 = arith.divf %124, %125 : vector<1x32xf32>
    %127 = vector.extract_strided_slice %7 {offsets = [3, 0], sizes = [1, 32], strides = [1, 1]} : vector<8x32xf32> to vector<1x32xf32>
    %cst_39 = arith.constant dense<0.000000e+00> : vector<1x32xf32>
    %128 = tpu.matmul %118, %13, %cst_39 {dimension_numbers = #tpu.dot_dimension_numbers<[1], [0], [0], [1], [0, 0, 1, 1], [], []>, precision = #tpu.contract_precision<fp32>} : vector<1x32xf32>, vector<32x32xf32>, vector<1x32xf32> -> vector<1x32xf32>
    %129 = arith.addf %127, %128 : vector<1x32xf32>
    %130 = arith.negf %129 : vector<1x32xf32>
    %131 = math.exp %130 : vector<1x32xf32>
    %cst_40 = arith.constant 1.000000e+00 : f32
    %132 = vector.broadcast %cst_40 : f32 to vector<1x32xf32>
    %133 = arith.addf %132, %131 : vector<1x32xf32>
    %134 = arith.divf %132, %133 : vector<1x32xf32>
    %135 = vector.extract_strided_slice %8 {offsets = [3, 0], sizes = [1, 32], strides = [1, 1]} : vector<8x32xf32> to vector<1x32xf32>
    %cst_41 = arith.constant dense<0.000000e+00> : vector<1x32xf32>
    %136 = tpu.matmul %118, %15, %cst_41 {dimension_numbers = #tpu.dot_dimension_numbers<[1], [0], [0], [1], [0, 0, 1, 1], [], []>, precision = #tpu.contract_precision<fp32>} : vector<1x32xf32>, vector<32x32xf32>, vector<1x32xf32> -> vector<1x32xf32>
    %137 = arith.addf %135, %136 : vector<1x32xf32>
    %138 = math.tanh %137 : vector<1x32xf32>
    %139 = vector.extract_strided_slice %9 {offsets = [3, 0], sizes = [1, 32], strides = [1, 1]} : vector<8x32xf32> to vector<1x32xf32>
    %cst_42 = arith.constant dense<0.000000e+00> : vector<1x32xf32>
    %140 = tpu.matmul %118, %17, %cst_42 {dimension_numbers = #tpu.dot_dimension_numbers<[1], [0], [0], [1], [0, 0, 1, 1], [], []>, precision = #tpu.contract_precision<fp32>} : vector<1x32xf32>, vector<32x32xf32>, vector<1x32xf32> -> vector<1x32xf32>
    %141 = arith.addf %139, %140 : vector<1x32xf32>
    %142 = arith.negf %141 : vector<1x32xf32>
    %143 = math.exp %142 : vector<1x32xf32>
    %cst_43 = arith.constant 1.000000e+00 : f32
    %144 = vector.broadcast %cst_43 : f32 to vector<1x32xf32>
    %145 = arith.addf %144, %143 : vector<1x32xf32>
    %146 = arith.divf %144, %145 : vector<1x32xf32>
    %147 = arith.mulf %134, %116 : vector<1x32xf32>
    %148 = arith.mulf %126, %138 : vector<1x32xf32>
    %149 = arith.addf %147, %148 : vector<1x32xf32>
    %150 = math.tanh %149 : vector<1x32xf32>
    %151 = arith.mulf %146, %150 : vector<1x32xf32>
    %152 = vector.extract_strided_slice %6 {offsets = [4, 0], sizes = [1, 32], strides = [1, 1]} : vector<8x32xf32> to vector<1x32xf32>
    %cst_44 = arith.constant dense<0.000000e+00> : vector<1x32xf32>
    %153 = tpu.matmul %151, %11, %cst_44 {dimension_numbers = #tpu.dot_dimension_numbers<[1], [0], [0], [1], [0, 0, 1, 1], [], []>, precision = #tpu.contract_precision<fp32>} : vector<1x32xf32>, vector<32x32xf32>, vector<1x32xf32> -> vector<1x32xf32>
    %154 = arith.addf %152, %153 : vector<1x32xf32>
    %155 = arith.negf %154 : vector<1x32xf32>
    %156 = math.exp %155 : vector<1x32xf32>
    %cst_45 = arith.constant 1.000000e+00 : f32
    %157 = vector.broadcast %cst_45 : f32 to vector<1x32xf32>
    %158 = arith.addf %157, %156 : vector<1x32xf32>
    %159 = arith.divf %157, %158 : vector<1x32xf32>
    %160 = vector.extract_strided_slice %7 {offsets = [4, 0], sizes = [1, 32], strides = [1, 1]} : vector<8x32xf32> to vector<1x32xf32>
    %cst_46 = arith.constant dense<0.000000e+00> : vector<1x32xf32>
    %161 = tpu.matmul %151, %13, %cst_46 {dimension_numbers = #tpu.dot_dimension_numbers<[1], [0], [0], [1], [0, 0, 1, 1], [], []>, precision = #tpu.contract_precision<fp32>} : vector<1x32xf32>, vector<32x32xf32>, vector<1x32xf32> -> vector<1x32xf32>
    %162 = arith.addf %160, %161 : vector<1x32xf32>
    %163 = arith.negf %162 : vector<1x32xf32>
    %164 = math.exp %163 : vector<1x32xf32>
    %cst_47 = arith.constant 1.000000e+00 : f32
    %165 = vector.broadcast %cst_47 : f32 to vector<1x32xf32>
    %166 = arith.addf %165, %164 : vector<1x32xf32>
    %167 = arith.divf %165, %166 : vector<1x32xf32>
    %168 = vector.extract_strided_slice %8 {offsets = [4, 0], sizes = [1, 32], strides = [1, 1]} : vector<8x32xf32> to vector<1x32xf32>
    %cst_48 = arith.constant dense<0.000000e+00> : vector<1x32xf32>
    %169 = tpu.matmul %151, %15, %cst_48 {dimension_numbers = #tpu.dot_dimension_numbers<[1], [0], [0], [1], [0, 0, 1, 1], [], []>, precision = #tpu.contract_precision<fp32>} : vector<1x32xf32>, vector<32x32xf32>, vector<1x32xf32> -> vector<1x32xf32>
    %170 = arith.addf %168, %169 : vector<1x32xf32>
    %171 = math.tanh %170 : vector<1x32xf32>
    %172 = vector.extract_strided_slice %9 {offsets = [4, 0], sizes = [1, 32], strides = [1, 1]} : vector<8x32xf32> to vector<1x32xf32>
    %cst_49 = arith.constant dense<0.000000e+00> : vector<1x32xf32>
    %173 = tpu.matmul %151, %17, %cst_49 {dimension_numbers = #tpu.dot_dimension_numbers<[1], [0], [0], [1], [0, 0, 1, 1], [], []>, precision = #tpu.contract_precision<fp32>} : vector<1x32xf32>, vector<32x32xf32>, vector<1x32xf32> -> vector<1x32xf32>
    %174 = arith.addf %172, %173 : vector<1x32xf32>
    %175 = arith.negf %174 : vector<1x32xf32>
    %176 = math.exp %175 : vector<1x32xf32>
    %cst_50 = arith.constant 1.000000e+00 : f32
    %177 = vector.broadcast %cst_50 : f32 to vector<1x32xf32>
    %178 = arith.addf %177, %176 : vector<1x32xf32>
    %179 = arith.divf %177, %178 : vector<1x32xf32>
    %180 = arith.mulf %167, %149 : vector<1x32xf32>
    %181 = arith.mulf %159, %171 : vector<1x32xf32>
    %182 = arith.addf %180, %181 : vector<1x32xf32>
    %183 = math.tanh %182 : vector<1x32xf32>
    %184 = arith.mulf %179, %183 : vector<1x32xf32>
    %185 = vector.extract_strided_slice %6 {offsets = [5, 0], sizes = [1, 32], strides = [1, 1]} : vector<8x32xf32> to vector<1x32xf32>
    %cst_51 = arith.constant dense<0.000000e+00> : vector<1x32xf32>
    %186 = tpu.matmul %184, %11, %cst_51 {dimension_numbers = #tpu.dot_dimension_numbers<[1], [0], [0], [1], [0, 0, 1, 1], [], []>, precision = #tpu.contract_precision<fp32>} : vector<1x32xf32>, vector<32x32xf32>, vector<1x32xf32> -> vector<1x32xf32>
    %187 = arith.addf %185, %186 : vector<1x32xf32>
    %188 = arith.negf %187 : vector<1x32xf32>
    %189 = math.exp %188 : vector<1x32xf32>
    %cst_52 = arith.constant 1.000000e+00 : f32
    %190 = vector.broadcast %cst_52 : f32 to vector<1x32xf32>
    %191 = arith.addf %190, %189 : vector<1x32xf32>
    %192 = arith.divf %190, %191 : vector<1x32xf32>
    %193 = vector.extract_strided_slice %7 {offsets = [5, 0], sizes = [1, 32], strides = [1, 1]} : vector<8x32xf32> to vector<1x32xf32>
    %cst_53 = arith.constant dense<0.000000e+00> : vector<1x32xf32>
    %194 = tpu.matmul %184, %13, %cst_53 {dimension_numbers = #tpu.dot_dimension_numbers<[1], [0], [0], [1], [0, 0, 1, 1], [], []>, precision = #tpu.contract_precision<fp32>} : vector<1x32xf32>, vector<32x32xf32>, vector<1x32xf32> -> vector<1x32xf32>
    %195 = arith.addf %193, %194 : vector<1x32xf32>
    %196 = arith.negf %195 : vector<1x32xf32>
    %197 = math.exp %196 : vector<1x32xf32>
    %cst_54 = arith.constant 1.000000e+00 : f32
    %198 = vector.broadcast %cst_54 : f32 to vector<1x32xf32>
    %199 = arith.addf %198, %197 : vector<1x32xf32>
    %200 = arith.divf %198, %199 : vector<1x32xf32>
    %201 = vector.extract_strided_slice %8 {offsets = [5, 0], sizes = [1, 32], strides = [1, 1]} : vector<8x32xf32> to vector<1x32xf32>
    %cst_55 = arith.constant dense<0.000000e+00> : vector<1x32xf32>
    %202 = tpu.matmul %184, %15, %cst_55 {dimension_numbers = #tpu.dot_dimension_numbers<[1], [0], [0], [1], [0, 0, 1, 1], [], []>, precision = #tpu.contract_precision<fp32>} : vector<1x32xf32>, vector<32x32xf32>, vector<1x32xf32> -> vector<1x32xf32>
    %203 = arith.addf %201, %202 : vector<1x32xf32>
    %204 = math.tanh %203 : vector<1x32xf32>
    %205 = vector.extract_strided_slice %9 {offsets = [5, 0], sizes = [1, 32], strides = [1, 1]} : vector<8x32xf32> to vector<1x32xf32>
    %cst_56 = arith.constant dense<0.000000e+00> : vector<1x32xf32>
    %206 = tpu.matmul %184, %17, %cst_56 {dimension_numbers = #tpu.dot_dimension_numbers<[1], [0], [0], [1], [0, 0, 1, 1], [], []>, precision = #tpu.contract_precision<fp32>} : vector<1x32xf32>, vector<32x32xf32>, vector<1x32xf32> -> vector<1x32xf32>
    %207 = arith.addf %205, %206 : vector<1x32xf32>
    %208 = arith.negf %207 : vector<1x32xf32>
    %209 = math.exp %208 : vector<1x32xf32>
    %cst_57 = arith.constant 1.000000e+00 : f32
    %210 = vector.broadcast %cst_57 : f32 to vector<1x32xf32>
    %211 = arith.addf %210, %209 : vector<1x32xf32>
    %212 = arith.divf %210, %211 : vector<1x32xf32>
    %213 = arith.mulf %200, %182 : vector<1x32xf32>
    %214 = arith.mulf %192, %204 : vector<1x32xf32>
    %215 = arith.addf %213, %214 : vector<1x32xf32>
    %216 = math.tanh %215 : vector<1x32xf32>
    %217 = arith.mulf %212, %216 : vector<1x32xf32>
    %218 = vector.extract_strided_slice %6 {offsets = [6, 0], sizes = [1, 32], strides = [1, 1]} : vector<8x32xf32> to vector<1x32xf32>
    %cst_58 = arith.constant dense<0.000000e+00> : vector<1x32xf32>
    %219 = tpu.matmul %217, %11, %cst_58 {dimension_numbers = #tpu.dot_dimension_numbers<[1], [0], [0], [1], [0, 0, 1, 1], [], []>, precision = #tpu.contract_precision<fp32>} : vector<1x32xf32>, vector<32x32xf32>, vector<1x32xf32> -> vector<1x32xf32>
    %220 = arith.addf %218, %219 : vector<1x32xf32>
    %221 = arith.negf %220 : vector<1x32xf32>
    %222 = math.exp %221 : vector<1x32xf32>
    %cst_59 = arith.constant 1.000000e+00 : f32
    %223 = vector.broadcast %cst_59 : f32 to vector<1x32xf32>
    %224 = arith.addf %223, %222 : vector<1x32xf32>
    %225 = arith.divf %223, %224 : vector<1x32xf32>
    %226 = vector.extract_strided_slice %7 {offsets = [6, 0], sizes = [1, 32], strides = [1, 1]} : vector<8x32xf32> to vector<1x32xf32>
    %cst_60 = arith.constant dense<0.000000e+00> : vector<1x32xf32>
    %227 = tpu.matmul %217, %13, %cst_60 {dimension_numbers = #tpu.dot_dimension_numbers<[1], [0], [0], [1], [0, 0, 1, 1], [], []>, precision = #tpu.contract_precision<fp32>} : vector<1x32xf32>, vector<32x32xf32>, vector<1x32xf32> -> vector<1x32xf32>
    %228 = arith.addf %226, %227 : vector<1x32xf32>
    %229 = arith.negf %228 : vector<1x32xf32>
    %230 = math.exp %229 : vector<1x32xf32>
    %cst_61 = arith.constant 1.000000e+00 : f32
    %231 = vector.broadcast %cst_61 : f32 to vector<1x32xf32>
    %232 = arith.addf %231, %230 : vector<1x32xf32>
    %233 = arith.divf %231, %232 : vector<1x32xf32>
    %234 = vector.extract_strided_slice %8 {offsets = [6, 0], sizes = [1, 32], strides = [1, 1]} : vector<8x32xf32> to vector<1x32xf32>
    %cst_62 = arith.constant dense<0.000000e+00> : vector<1x32xf32>
    %235 = tpu.matmul %217, %15, %cst_62 {dimension_numbers = #tpu.dot_dimension_numbers<[1], [0], [0], [1], [0, 0, 1, 1], [], []>, precision = #tpu.contract_precision<fp32>} : vector<1x32xf32>, vector<32x32xf32>, vector<1x32xf32> -> vector<1x32xf32>
    %236 = arith.addf %234, %235 : vector<1x32xf32>
    %237 = math.tanh %236 : vector<1x32xf32>
    %238 = vector.extract_strided_slice %9 {offsets = [6, 0], sizes = [1, 32], strides = [1, 1]} : vector<8x32xf32> to vector<1x32xf32>
    %cst_63 = arith.constant dense<0.000000e+00> : vector<1x32xf32>
    %239 = tpu.matmul %217, %17, %cst_63 {dimension_numbers = #tpu.dot_dimension_numbers<[1], [0], [0], [1], [0, 0, 1, 1], [], []>, precision = #tpu.contract_precision<fp32>} : vector<1x32xf32>, vector<32x32xf32>, vector<1x32xf32> -> vector<1x32xf32>
    %240 = arith.addf %238, %239 : vector<1x32xf32>
    %241 = arith.negf %240 : vector<1x32xf32>
    %242 = math.exp %241 : vector<1x32xf32>
    %cst_64 = arith.constant 1.000000e+00 : f32
    %243 = vector.broadcast %cst_64 : f32 to vector<1x32xf32>
    %244 = arith.addf %243, %242 : vector<1x32xf32>
    %245 = arith.divf %243, %244 : vector<1x32xf32>
    %246 = arith.mulf %233, %215 : vector<1x32xf32>
    %247 = arith.mulf %225, %237 : vector<1x32xf32>
    %248 = arith.addf %246, %247 : vector<1x32xf32>
    %249 = math.tanh %248 : vector<1x32xf32>
    %250 = arith.mulf %245, %249 : vector<1x32xf32>
    %251 = vector.extract_strided_slice %6 {offsets = [7, 0], sizes = [1, 32], strides = [1, 1]} : vector<8x32xf32> to vector<1x32xf32>
    %cst_65 = arith.constant dense<0.000000e+00> : vector<1x32xf32>
    %252 = tpu.matmul %250, %11, %cst_65 {dimension_numbers = #tpu.dot_dimension_numbers<[1], [0], [0], [1], [0, 0, 1, 1], [], []>, precision = #tpu.contract_precision<fp32>} : vector<1x32xf32>, vector<32x32xf32>, vector<1x32xf32> -> vector<1x32xf32>
    %253 = arith.addf %251, %252 : vector<1x32xf32>
    %254 = arith.negf %253 : vector<1x32xf32>
    %255 = math.exp %254 : vector<1x32xf32>
    %cst_66 = arith.constant 1.000000e+00 : f32
    %256 = vector.broadcast %cst_66 : f32 to vector<1x32xf32>
    %257 = arith.addf %256, %255 : vector<1x32xf32>
    %258 = arith.divf %256, %257 : vector<1x32xf32>
    %259 = vector.extract_strided_slice %7 {offsets = [7, 0], sizes = [1, 32], strides = [1, 1]} : vector<8x32xf32> to vector<1x32xf32>
    %cst_67 = arith.constant dense<0.000000e+00> : vector<1x32xf32>
    %260 = tpu.matmul %250, %13, %cst_67 {dimension_numbers = #tpu.dot_dimension_numbers<[1], [0], [0], [1], [0, 0, 1, 1], [], []>, precision = #tpu.contract_precision<fp32>} : vector<1x32xf32>, vector<32x32xf32>, vector<1x32xf32> -> vector<1x32xf32>
    %261 = arith.addf %259, %260 : vector<1x32xf32>
    %262 = arith.negf %261 : vector<1x32xf32>
    %263 = math.exp %262 : vector<1x32xf32>
    %cst_68 = arith.constant 1.000000e+00 : f32
    %264 = vector.broadcast %cst_68 : f32 to vector<1x32xf32>
    %265 = arith.addf %264, %263 : vector<1x32xf32>
    %266 = arith.divf %264, %265 : vector<1x32xf32>
    %267 = vector.extract_strided_slice %8 {offsets = [7, 0], sizes = [1, 32], strides = [1, 1]} : vector<8x32xf32> to vector<1x32xf32>
    %cst_69 = arith.constant dense<0.000000e+00> : vector<1x32xf32>
    %268 = tpu.matmul %250, %15, %cst_69 {dimension_numbers = #tpu.dot_dimension_numbers<[1], [0], [0], [1], [0, 0, 1, 1], [], []>, precision = #tpu.contract_precision<fp32>} : vector<1x32xf32>, vector<32x32xf32>, vector<1x32xf32> -> vector<1x32xf32>
    %269 = arith.addf %267, %268 : vector<1x32xf32>
    %270 = math.tanh %269 : vector<1x32xf32>
    %271 = vector.extract_strided_slice %9 {offsets = [7, 0], sizes = [1, 32], strides = [1, 1]} : vector<8x32xf32> to vector<1x32xf32>
    %cst_70 = arith.constant dense<0.000000e+00> : vector<1x32xf32>
    %272 = tpu.matmul %250, %17, %cst_70 {dimension_numbers = #tpu.dot_dimension_numbers<[1], [0], [0], [1], [0, 0, 1, 1], [], []>, precision = #tpu.contract_precision<fp32>} : vector<1x32xf32>, vector<32x32xf32>, vector<1x32xf32> -> vector<1x32xf32>
    %273 = arith.addf %271, %272 : vector<1x32xf32>
    %274 = arith.negf %273 : vector<1x32xf32>
    %275 = math.exp %274 : vector<1x32xf32>
    %cst_71 = arith.constant 1.000000e+00 : f32
    %276 = vector.broadcast %cst_71 : f32 to vector<1x32xf32>
    %277 = arith.addf %276, %275 : vector<1x32xf32>
    %278 = arith.divf %276, %277 : vector<1x32xf32>
    %279 = arith.mulf %266, %248 : vector<1x32xf32>
    %280 = arith.mulf %258, %270 : vector<1x32xf32>
    %281 = arith.addf %279, %280 : vector<1x32xf32>
    %282 = math.tanh %281 : vector<1x32xf32>
    %283 = arith.mulf %278, %282 : vector<1x32xf32>
    %c0_72 = arith.constant 0 : index
    %c0_73 = arith.constant 0 : index
    %284 = vector.load %arg4[%c0_72, %c0_73] : memref<32x128xf32, #tpu.memory_space<vmem>>, vector<32x128xf32>
    %cst_74 = arith.constant dense<0.000000e+00> : vector<1x128xf32>
    %285 = tpu.matmul %283, %284, %cst_74 {dimension_numbers = #tpu.dot_dimension_numbers<[1], [0], [0], [1], [0, 0, 1, 1], [], []>, precision = #tpu.contract_precision<fp32>} : vector<1x32xf32>, vector<32x128xf32>, vector<1x128xf32> -> vector<1x128xf32>
    %c0_75 = arith.constant 0 : index
    %c0_76 = arith.constant 0 : index
    %286 = vector.load %arg5[%c0_75, %c0_76] : memref<1x128xf32, #tpu.memory_space<vmem>>, vector<1x128xf32>
    %287 = arith.addf %285, %286 : vector<1x128xf32>
    %c0_77 = arith.constant 0 : index
    %c0_78 = arith.constant 0 : index
    %288 = vector.load %arg6[%c0_77, %c0_78] : memref<1x128xf32, #tpu.memory_space<vmem>>, vector<1x128xf32>
    tpu.vector_store %arg6[%c0_77, %c0_78], %287 {strides = array<i32>} : memref<1x128xf32, #tpu.memory_space<vmem>>, vector<1x128xf32>,
    return
  }
}

</mosaic_0001>

<bundles_post_ra>
// kernel: lstm_model_forward.1
= control target key start
LH: loop header
LB: loop body
LE: loop exit
PB: predicated region body
PF: predicated region fallthrough
CT: control target
= control target key end

     0   :  { %11 = vsyncpa [#allocation3], 0  ;;  %s24868_s0 = inlined_call_operand.vmem [shape: f32[8,128], index: 0, kind: input, shape index: {}]   ;;  %s24869_s1 = inlined_call_operand.hbm [shape: f32[128,128], index: 1, kind: input, shape index: {}]   ;;  %s24870_s2 = inlined_call_operand.vmem [shape: f32[1,128], index: 2, kind: input, shape index: {}]   ;;  %s24871_s3 = inlined_call_operand.hbm [shape: f32[4,32,32], index: 3, kind: input, shape index: {}]   ;;  %s24872_s4 = inlined_call_operand.vmem [shape: f32[32,128], index: 4, kind: input, shape index: {}]   ;;  %s24873_s5 = inlined_call_operand.vmem [shape: f32[1,128], index: 5, kind: input, shape index: {}]   ;;  %s24874_s6 = inlined_call_operand.hbm [shape: f32[1,128], index: 6, kind: output, shape index: {}]  }
   0x1   :  { %12 = vsyncpa [#allocation6], 0 }
   0x2   :  { %13 = vsyncpa [#allocation4], 0  ;;  %s22672_s21 = smov [#allocation2]   ;;  %s22600_s25 = scalar_lea.hbm %s24869_s1, 2048 }
   0x3   :  { %s21_s22 = sshll.u32 %s22672_s21, 4  ;;  %p22601_p0 = scmp.ne.s32.totalorder %s24869_s1, %s22600_s25  ;;  %s22_s22 = int_to_ptr.vmem [resolvable:$true] %s21_s22 }
   0x4   :  { %p22604_p1 = scmp.lt.u32.totalorder %s22600_s25, %s24869_s1 }
   0x6   :  { %p22606_p2 = pnand %p22604_p1, %p22601_p0 }
   0x8   :  { %22609 = shalt.err (!%p22606_p2)
}
   0x9   :  { %s22610_s30 = scalar_lea.vmem %s22_s22, 2048  ;;  %p22615_p4 = scmp.lt.s32.totalorder %s22_s22, %s22_s22 }
   0xa   :  { %p22611_p3 = scmp.ne.s32.totalorder %s22_s22, %s22610_s30  ;;  %p22616_p5 = scmp.lt.s32.totalorder %s22610_s30, %s22610_s30 }
   0xc   :  { %p22617_p6 = por %p22616_p5, %p22615_p4 }
   0xe   :  { %p22618_p7 = pnand %p22617_p6, %p22611_p3 }
  0x10   :  { %22621 = shalt.err (!%p22618_p7)
}
  0x11   :  { %s22673_s7 = smov 128   ;;  %s22674_s8 = smov 8  }
  0x12   :  { %27 = dma.hbm_to_vmem [thread:$0]  %s24869_s1, 2048, %s22_s22, [#allocation3], %s22673_s7, %s22673_s7, %s22674_s8  }
  0x13   :  { %s22675_s11 = smov [#allocation5]   ;;  %s22622_s15 = scalar_lea.hbm %s24871_s3, 2048 }
  0x14   :  { %s35_s12 = sshll.u32 %s22675_s11, 4  ;;  %p22623_p8 = scmp.ne.s32.totalorder %s24871_s3, %s22622_s15  ;;  %s36_s12 = int_to_ptr.vmem [resolvable:$true] %s35_s12 }
  0x15   :  { %p22626_p9 = scmp.lt.u32.totalorder %s22622_s15, %s24871_s3 }
  0x17   :  { %p22628_p10 = pnand %p22626_p9, %p22623_p8 }
  0x19   :  { %22631 = shalt.err (!%p22628_p10)
}
  0x1a   :  { %s22632_s20 = scalar_lea.vmem %s36_s12, 2048  ;;  %p22637_p12 = scmp.lt.s32.totalorder %s36_s12, %s36_s12 }
  0x1b   :  { %p22633_p11 = scmp.ne.s32.totalorder %s36_s12, %s22632_s20  ;;  %p22638_p13 = scmp.lt.s32.totalorder %s22632_s20, %s22632_s20 }
  0x1d   :  { %p22639_p0 = por %p22638_p13, %p22637_p12 }
  0x1f   :  { %p22640_p1 = pnand %p22639_p0, %p22633_p11 }
  0x21   :  { %22643 = shalt.err (!%p22640_p1)
}
  0x22   :  { %41 = dma.hbm_to_vmem [thread:$0]  %s24871_s3, 2048, %s36_s12, [#allocation6], %s22673_s7, %s22673_s7, %s22674_s8  }
  0x23   :  { %22666 = dma.done.wait [#allocation3], 2048  }
  0x24   :  { %22667 = vsyncadd [#allocation3], 4294965248 }
  0x25   :  { %22668 = dma.done.wait [#allocation6], 2048  }
  0x26   :  { %22669 = vsyncadd [#allocation6], 4294965248  ;;  %v22676_v0 = vmov 0.0|0.0   ;;  %vm22677_vm0 = vmmov 0   ;;  %v22678_v1 = vmov 0.0   ;;  %v53_v2 = vld [vmem:[#allocation2] sm:$0xff] }
  0x27   :  { %20798 = vmatprep.subr.bf16.mxu1 %v22676_v0  ;;  %20822 = vmatprep.subr.bf16.mxu0 %v22676_v0  ;;  %v54_v3 = vld [vmem:[#allocation2 + $0x8] sm:$0xff]  ;;  %v55_v4 = vld [vmem:[#allocation2 + $0x10] sm:$0xff]  ;;  %v77_v5 = vand.u32 4294901760, %v53_v2  ;;  %v56_v7 = vld [vmem:[#allocation2 + $0x18] sm:$0xff]  ;;  %s22680_s25 = smov 64   ;;  %vm736_vm1 = vcmask 261120  }
  0x28   :  { %18442 = vmatprep.mubr.msk.f32.mxu1 %vm22677_vm0, %v22678_v1  ;;  %18477 = vmatprep.mubr.msk.f32.mxu0 %vm22677_vm0, %v22678_v1  ;;  %v80_v6 = vand.u32 4294901760, %v54_v3  ;;  %v83_v8 = vand.u32 4294901760, %v55_v4  ;;  %v57_v9 = vld [vmem:[#allocation2 + $0x20] sm:$0xff]  ;;  %v58_v10 = vld [vmem:[#allocation2 + $0x28] sm:$0xff]  ;;  %v86_v11 = vand.u32 4294901760, %v56_v7  ;;  %v59_v14 = vld [vmem:[#allocation2 + $0x30] sm:$0xff] }
  0x29   :  { %v89_v12 = vand.u32 4294901760, %v57_v9  ;;  %v92_v13 = vand.u32 4294901760, %v58_v10  ;;  %v22750_v16 = vsub.f32 %v53_v2, %v77_v5  ;;  %v60_v19 = vld [vmem:[#allocation2 + $0x38] sm:$0xff]  ;;  %v61_v20 = vld [vmem:[#allocation2 + $0x40] sm:$0xff]  ;;  %v95_v26 = vand.u32 4294901760, %v59_v14  ;;  %v62_v27 = vld [vmem:[#allocation2 + $0x48] sm:$0xff] }
  0x2a   :  { %v22748_v15 = vpack.c.bf16 %v80_v6, %v77_v5  ;;  %v22752_v17 = vsub.f32 %v54_v3, %v80_v6  ;;  %v22754_v18 = vsub.f32 %v55_v4, %v83_v8  ;;  %v22756_v21 = vpack.c.bf16 %v86_v11, %v83_v8  ;;  %v63_v40 = vld [vmem:[#allocation2 + $0x50] sm:$0xff]  ;;  %v64_v41 = vld [vmem:[#allocation2 + $0x58] sm:$0xff]  ;;  %v22795_v50 = vld [vmem:[#allocation2 + $0x60] sm:$0xff]  ;;  %s22682_s11 = smov [#allocation7]  }
  0x2b   :  { %v22758_v22 = vsub.f32 %v56_v7, %v86_v11  ;;  %v22761_v23 = vsub.f32 %v57_v9, %v89_v12  ;;  %v170_v24 = vand.u32 4294901760, %v22750_v16  ;;  %v98_v28 = vand.u32 4294901760, %v60_v19  ;;  %v22805_v59 = vld [vmem:[#allocation2 + $0x68] sm:$0xff]  ;;  %v22814_v2 = vld [vmem:[#allocation2 + $0x70] sm:$0xff]  ;;  %v68_v11 = vld [vmem:[#allocation2 + $0x78] sm:$0xff]  ;;  %s17283_s12 = sshll.u32 %s22682_s11, 4  ;;  %s17284_s12 = int_to_ptr.vmem [resolvable:$true] %s17283_s12 }
  0x2c   :  { %20800 = vmatpush3.bf16.msra.mxu1 %v22748_v15  ;;  %v177_v25 = vand.u32 4294901760, %v22752_v17  ;;  %v184_v29 = vand.u32 4294901760, %v22754_v18  ;;  %v101_v31 = vand.u32 4294901760, %v61_v20  ;;  %v22768_v32 = vsub.f32 %v58_v10, %v92_v13  ;;  %s22644_s13 = scalar_lea.vmem %s17284_s12, 16  ;;  %s22648_s14 = scalar_lea.vmem %s17284_s12, 32 }
  0x2d   :  { %20801 = vmatprep.subr.bf16.mxu1 %v22676_v0  ;;  %v191_v30 = vand.u32 4294901760, %v22758_v22  ;;  %v171_v33 = vsub.f32 %v22750_v16, %v170_v24  ;;  %v22776_v35 = vsub.f32 %v59_v14, %v95_v26  ;;  %v22778_v36 = vsub.f32 %v60_v19, %v98_v28  ;;  %p22645_p2 = scmp.ne.s32.totalorder %s17284_s12, %s22644_s13  ;;  %p22649_p3 = scmp.lt.s32.totalorder %s17284_s12, %s17284_s12 }
  0x2e   :  { %v178_v34 = vsub.f32 %v22752_v17, %v177_v25  ;;  %v185_v37 = vsub.f32 %v22754_v18, %v184_v29  ;;  %v104_v39 = vand.u32 4294901760, %v62_v27  ;;  %v22787_v42 = vpack.c.bf16 %v92_v13, %v89_v12  ;;  %p22650_p4 = scmp.lt.s32.totalorder %s22648_s14, %s22644_s13 }
  0x2f   :  { %v192_v38 = vsub.f32 %v22758_v22, %v191_v30  ;;  %v172_v43 = vand.u32 4294901760, %v171_v33  ;;  %v22789_v45 = vpack.c.bf16 %v98_v28, %v95_v26  ;;  %v22792_v48 = vsub.f32 %v61_v20, %v101_v31  ;;  %v52_v28 = vld [vmem:[%s24868_s0] sm:$0xff]  ;;  %s22679_s0 = smov 32  }
  0x30   :  { %20803 = vmatpush3.bf16.msra.mxu1 %v22756_v21  ;;  %v179_v44 = vand.u32 4294901760, %v178_v34  ;;  %v186_v46 = vand.u32 4294901760, %v185_v37  ;;  %v198_v49 = vand.u32 4294901760, %v22761_v23  ;;  %v205_v52 = vand.u32 4294901760, %v22768_v32  ;;  %p22651_p5 = por %p22650_p4, %p22649_p3 }
  0x31   :  { %20804 = vmatprep.subr.bf16.mxu1 %v22676_v0  ;;  %v193_v47 = vand.u32 4294901760, %v192_v38  ;;  %v107_v53 = vand.u32 4294901760, %v63_v40  ;;  %v110_v54 = vand.u32 4294901760, %v64_v41  ;;  %v22798_v55 = vsub.f32 %v62_v27, %v104_v39  ;;  %v22851_v38 = vld [vmem:[#allocation5] sm:$0xff] }
  0x32   :  { %v20823_v51 = vpack.c.bf16 %v179_v44, %v172_v43  ;;  %v199_v56 = vsub.f32 %v22761_v23, %v198_v49  ;;  %v212_v57 = vand.u32 4294901760, %v22776_v35  ;;  %v219_v58 = vand.u32 4294901760, %v22778_v36  ;;  %v22859_v44 = vld [vmem:[#allocation5 + $0x8] sm:$0xff]  ;;  %p22652_p6 = pnand %p22651_p5, %p22645_p2 }
  0x33   :  { %v20826_v60 = vpack.c.bf16 %v193_v47, %v186_v46  ;;  %v22808_v61 = vpack.c.bf16 %v104_v39, %v101_v31  ;;  %v206_v62 = vsub.f32 %v22768_v32, %v205_v52  ;;  %v113_v63 = vand.u32 4294901760, %v22795_v50 }
  0x34   :  { %20806 = vmatpush3.bf16.msra.mxu1 %v22787_v42  ;;  %20824 = vmatpush3.bf16.msra.mxu0 %v20823_v51  ;;  %v200_v3 = vand.u32 4294901760, %v199_v56  ;;  %v22818_v4 = vsub.f32 %v63_v40, %v107_v53  ;;  %v213_v5 = vsub.f32 %v22776_v35, %v212_v57  ;;  %v220_v6 = vsub.f32 %v22778_v36, %v219_v58 }
  0x35   :  { %20807 = vmatprep.subr.bf16.mxu1 %v22676_v0  ;;  %20825 = vmatprep.subr.bf16.mxu0 %v22676_v0  ;;  %v207_v7 = vand.u32 4294901760, %v206_v62  ;;  %v22826_v8 = vsub.f32 %v64_v41, %v110_v54  ;;  %v116_v9 = vand.u32 4294901760, %v22805_v59  ;;  %v226_v10 = vand.u32 4294901760, %v22792_v48 }
  0x36   :  { %v214_v12 = vand.u32 4294901760, %v213_v5  ;;  %v221_v13 = vand.u32 4294901760, %v220_v6  ;;  %v233_v14 = vand.u32 4294901760, %v22798_v55  ;;  %v119_v19 = vand.u32 4294901760, %v22814_v2 }
  0x37   :  { %v20829_v20 = vpack.c.bf16 %v207_v7, %v200_v3  ;;  %v22834_v26 = vsub.f32 %v22795_v50, %v113_v63  ;;  %v22837_v27 = vsub.f32 %v22805_v59, %v116_v9  ;;  %v227_v31 = vsub.f32 %v22792_v48, %v226_v10 }
  0x38   :  { %20809 = vmatpush3.bf16.msra.mxu1 %v22789_v45  ;;  %20827 = vmatpush3.bf16.msra.mxu0 %v20826_v60  ;;  %v234_v33 = vsub.f32 %v22798_v55, %v233_v14  ;;  %v122_v34 = vand.u32 4294901760, %v68_v11  ;;  %v240_v37 = vand.u32 4294901760, %v22818_v4  ;;  %v22853_v39 = vpack.c.bf16 %v110_v54, %v107_v53 }
  0x39   :  { %20810 = vmatprep.subr.bf16.mxu1 %v22676_v0  ;;  %20828 = vmatprep.subr.bf16.mxu0 %v22676_v0  ;;  %v20832_v40 = vpack.c.bf16 %v221_v13, %v214_v12  ;;  %v22856_v41 = vsub.f32 %v22814_v2, %v119_v19  ;;  %v24879_v43 = vand.u32 4294901760, %v22826_v8  ;;  %v228_v46 = vand.u32 4294901760, %v227_v31  ;;  %v22901_v31 = vld [vmem:[#allocation5 + $0x18] sm:$0xff] }
  0x3a   :  { %v235_v47 = vand.u32 4294901760, %v234_v33  ;;  %v241_v50 = vsub.f32 %v22818_v4, %v240_v37  ;;  %v22864_v51 = vand.u32 4294901760, %v52_v28  ;;  %v24878_v54 = vand.u32 4294901760, %v22834_v26 }
  0x3b   :  { %v248_v53 = vsub.f32 %v22826_v8, %v24879_v43  ;;  %v24877_v56 = vand.u32 4294901760, %v22837_v27  ;;  %v24876_v59 = vand.u32 4294901760, %v22851_v38  ;;  %v22875_v60 = vsub.f32 %v68_v11, %v122_v34 }
  0x3c   :  { %20812 = vmatpush3.bf16.msra.mxu1 %v22808_v61  ;;  %20830 = vmatpush3.bf16.msra.mxu0 %v20829_v20  ;;  %v242_v62 = vand.u32 4294901760, %v241_v50  ;;  %v22878_v2 = vsub.f32 %v52_v28, %v22864_v51  ;;  %v24875_v3 = vand.u32 4294901760, %v22859_v44  ;;  %v255_v6 = vsub.f32 %v22834_v26, %v24878_v54  ;;  %v22899_v28 = vld [vmem:[#allocation5 + $0x10] sm:$0xff] }
  0x3d   :  { %20813 = vmatprep.subr.bf16.mxu1 %v22676_v0  ;;  %20831 = vmatprep.subr.bf16.mxu0 %v22676_v0  ;;  %v249_v5 = vand.u32 4294901760, %v248_v53  ;;  %v22887_v7 = vsub.f32 %v22851_v38, %v24876_v59  ;;  %v262_v11 = vsub.f32 %v22837_v27, %v24877_v56  ;;  %v24885_v20 = vand.u32 4294901760, %v22856_v41 }
  0x3e   :  { %v24880_v12 = vand.u32 4294901760, %v22878_v2  ;;  %v22896_v13 = vsub.f32 %v22859_v44, %v24875_v3  ;;  %v22904_v33 = vpack.c.bf16 %v116_v9, %v113_v63  ;;  %v20835_v50 = vpack.c.bf16 %v235_v47, %v228_v46 }
  0x3f   :  { %v24882_v53 = vand.u32 4294901760, %v22887_v7  ;;  %v22909_v3 = vpack.c.bf16 %v122_v34, %v119_v19  ;;  %v20838_v59 = vpack.c.bf16 %v249_v5, %v242_v62  ;;  %v24883_v54 = vand.u32 4294901760, %v22875_v60 }
  0x40   :  { %20815 = vmatpush3.bf16.msra.mxu1 %v22853_v39  ;;  %20833 = vmatpush3.bf16.msra.mxu0 %v20832_v40  ;;  %v24881_v56 = vand.u32 4294901760, %v22896_v13  ;;  %v256_v43 = vand.u32 4294901760, %v255_v6  ;;  %v24884_v9 = vand.u32 4294901760, %v22899_v28  ;;  %v24886_v40 = vand.u32 4294901760, %v22901_v31 }
  0x41   :  { %20816 = vmatprep.subr.bf16.mxu1 %v22676_v0  ;;  %20834 = vmatprep.subr.bf16.mxu0 %v22676_v0  ;;  %v823_v63 = vsub.f32 %v22887_v7, %v24882_v53  ;;  %v160_v46 = vsub.f32 %v22878_v2, %v24880_v12  ;;  %v263_v19 = vand.u32 4294901760, %v262_v11  ;;  %v269_v47 = vsub.f32 %v22856_v41, %v24885_v20 }
  0x42   :  { %v830_v34 = vsub.f32 %v22896_v13, %v24881_v56  ;;  %v276_v5 = vsub.f32 %v22875_v60, %v24883_v54  ;;  %v22934_v6 = vsub.f32 %v22899_v28, %v24884_v9  ;;  %v22939_v11 = vsub.f32 %v22901_v31, %v24886_v40 }
  0x43   :  { %v824_v62 = vand.u32 4294901760, %v823_v63  ;;  %v161_v56 = vand.u32 4294901760, %v160_v46  ;;  %v20841_v53 = vpack.c.bf16 %v263_v19, %v256_v43  ;;  %v270_v54 = vand.u32 4294901760, %v269_v47 }
  0x44   :  { %20818 = vmatpush3.bf16.msra.mxu1 %v22904_v33  ;;  %20836 = vmatpush3.bf16.msra.mxu0 %v20835_v50  ;;  %v831_v50 = vand.u32 4294901760, %v830_v34  ;;  %v836_v63 = vand.u32 4294901760, %v22934_v6  ;;  %v843_v12 = vand.u32 4294901760, %v22939_v11  ;;  %v277_v20 = vand.u32 4294901760, %v276_v5 }
  0x45   :  { %20819 = vmatprep.subr.bf16.mxu1 %v22676_v0  ;;  %20837 = vmatprep.subr.bf16.mxu0 %v22676_v0  ;;  %v22963_v47 = vpack.c.bf16 %v177_v25, %v170_v24  ;;  %v20847_v24 = vpack.c.bf16 %v22752_v17, %v22750_v16  ;;  %v22986_v25 = vpack.c.bf16 %v22896_v13, %v22887_v7  ;;  %v24887_v16 = vand.u32 4294901760, %v22826_v8 }
  0x46   :  { %v22946_v9 = vpack.c.bf16 %v831_v50, %v824_v62  ;;  %v837_v40 = vsub.f32 %v22934_v6, %v836_v63  ;;  %v844_v34 = vsub.f32 %v22939_v11, %v843_v12  ;;  %v24894_v62 = vand.u32 4294901760, %v22899_v28  ;;  %v724_v50 = vld [vmem:[#allocation5 + $0x30] sm:$0xff] }
  0x47   :  { %v23006_v17 = vpack.c.bf16 %v24887_v16, %v240_v37  ;;  %v24892_v37 = vand.u32 4294901760, %v22851_v38  ;;  %v24895_v38 = vand.u32 4294901760, %v22901_v31  ;;  %v24897_v28 = vand.u32 4294901760, %v22896_v13 }
  0x48   :  { %20821 = vmatpush3.bf16.msra.mxu1 %v22909_v3  ;;  %20839 = vmatpush3.bf16.msra.mxu0 %v20838_v59  ;;  %v838_v43 = vand.u32 4294901760, %v837_v40  ;;  %v845_v46 = vand.u32 4294901760, %v844_v34  ;;  %v20844_v59 = vpack.c.bf16 %v277_v20, %v270_v54  ;;  %v22973_v54 = vpack.c.bf16 %v191_v30, %v184_v29  ;;  %v725_v34 = vld [vmem:[#allocation5 + $0x38] sm:$0xff] }
  0x49   :  { %20840 = vmatprep.subr.bf16.mxu0 %v22676_v0  ;;  %20948 = vmatprep.subr.bf16.mxu1 %v22676_v0  ;;  %v22992_v29 = vpack.c.bf16 %v219_v58, %v212_v57  ;;  %v23000_v30 = vpack.c.bf16 %v233_v14, %v226_v10  ;;  %v24888_v57 = vand.u32 4294901760, %v22834_v26  ;;  %v24889_v58 = vand.u32 4294901760, %v22837_v27 }
  0x4a   :  { %v22957_v19 = vpack.c.bf16 %v845_v46, %v838_v43  ;;  %v24893_v20 = vand.u32 4294901760, %v22859_v44  ;;  %v20853_v40 = vpack.c.bf16 %v22768_v32, %v22761_v23  ;;  %v23051_v5 = vpack.c.bf16 %v24895_v38, %v24894_v62 }
  0x4b   :  { %18443 = vmatmul.mubr.f32.vlgmr.msra.gmra.mrb[0].mxu1 %v161_v56  ;;  %v22979_v56 = vpack.c.bf16 %v205_v52, %v198_v49  ;;  %v20850_v49 = vpack.c.bf16 %v22758_v22, %v22754_v18  ;;  %v23015_v52 = vpack.c.bf16 %v22939_v11, %v22934_v6  ;;  %v23021_v10 = vpack.c.bf16 %v24889_v58, %v24888_v57 }
  0x4c   :  { %20842 = vmatpush3.bf16.msra.mxu0 %v20841_v53  ;;  %20950 = vmatpush3.bf16.msra.mxu1 %v22946_v9  ;;  %v24890_v18 = vand.u32 4294901760, %v22856_v41  ;;  %v24891_v22 = vand.u32 4294901760, %v22875_v60  ;;  %v23039_v53 = vpack.c.bf16 %v24893_v20, %v24892_v37  ;;  %v20856_v44 = vpack.c.bf16 %v22778_v36, %v22776_v35  ;;  %v722_v35 = vld [vmem:[#allocation5 + $0x20] sm:$0xff]  ;;  %v723_v36 = vld [vmem:[#allocation5 + $0x28] sm:$0xff] }
  0x4d   :  { %20843 = vmatprep.subr.bf16.mxu0 %v22676_v0  ;;  %20951 = vmatprep.subr.bf16.mxu1 %v22676_v0  ;;  %v20859_v23 = vpack.c.bf16 %v22798_v55, %v22792_v48  ;;  %v24896_v32 = vand.u32 4294901760, %v22887_v7  ;;  %v20862_v48 = vpack.c.bf16 %v22826_v8, %v22818_v4  ;;  %v23079_v55 = vpack.c.bf16 %v843_v12, %v836_v63 }
  0x4e   :  { %18639 = vmatprep.mubr.msk.f32.mxu1 %vm22677_vm0, %v22678_v1  ;;  %v23033_v14 = vpack.c.bf16 %v24891_v22, %v24890_v18  ;;  %v1233_v7 = vand.u32 4294901760, %v722_v35  ;;  %v1236_v13 = vand.u32 4294901760, %v723_v36  ;;  %v20865_v4 = vpack.c.bf16 %v22837_v27, %v22834_v26 }
  0x4f   :  { %v23067_v31 = vpack.c.bf16 %v24897_v28, %v24896_v32  ;;  %v1239_v8 = vand.u32 4294901760, %v724_v50  ;;  %v1242_v12 = vand.u32 4294901760, %v725_v34  ;;  %v20868_v63 = vpack.c.bf16 %v22875_v60, %v22856_v41  ;;  %v727_v32 = vld [vmem:[#allocation5 + $0x40] sm:$0xff]  ;;  %v728_v28 = vld [vmem:[#allocation5 + $0x48] sm:$0xff] }
  0x50   :  { %20845 = vmatpush3.bf16.msra.mxu0 %v20844_v59  ;;  %20953 = vmatpush3.bf16.msra.mxu1 %v22957_v19  ;;  %v23088_v6 = vsub.f32 %v722_v35, %v1233_v7  ;;  %v23090_v11 = vsub.f32 %v723_v36, %v1236_v13  ;;  %v23108_v59 = vpack.c.bf16 %v1236_v13, %v1233_v7  ;;  %v24898_v35 = vand.u32 4294901760, %v22878_v2  ;;  %v729_v13 = vld [vmem:[#allocation5 + $0x50] sm:$0xff] }
  0x51   :  { %20846 = vmatprep.subr.bf16.mxu0 %v22676_v0  ;;  %20954 = vmatprep.subr.bf16.mxu1 %v22676_v0  ;;  %v23100_v43 = vsub.f32 %v724_v50, %v1239_v8  ;;  %v23102_v46 = vsub.f32 %v725_v34, %v1242_v12  ;;  %v1732_v7 = vand.u32 4294901760, %v728_v28  ;;  %v730_v50 = vld [vmem:[#allocation5 + $0x58] sm:$0xff] }
  0x52   :  { %v1314_v26 = vand.u32 4294901760, %v23088_v6  ;;  %v1321_v27 = vand.u32 4294901760, %v23090_v11  ;;  %v23158_v38 = vpack.c.bf16 %v23090_v11, %v23088_v6 }
  0x53   :  { %18640 = vmatmul.mubr.f32.vlgmr.msra.gmra.mrb[2].mxu1 %v22678_v1  ;;  %18478 = vmatmul.mubr.f32.vlgmr.msra.gmra.mrb[0].mxu0 %v22864_v51  ;;  %v1335_v16 = vand.u32 4294901760, %v23102_v46 }
  0x54   :  { %20848 = vmatpush3.bf16.msra.mxu0 %v20847_v24  ;;  %20956 = vmatpush3.bf16.msra.mxu1 %v22986_v25  ;;  %v1315_v41 = vsub.f32 %v23088_v6, %v1314_v26  ;;  %v1322_v60 = vsub.f32 %v23090_v11, %v1321_v27  ;;  %v1328_v24 = vand.u32 4294901760, %v23100_v43 }
  0x55   :  { %20849 = vmatprep.subr.bf16.mxu0 %v22676_v0  ;;  %20957 = vmatprep.subr.bf16.mxu1 %v22676_v0  ;;  %v1336_v22 = vsub.f32 %v23102_v46, %v1335_v16 }
  0x56   :  { %18650 = vmatprep.mubr.msk.f32.mxu1 %vm22677_vm0, %v22678_v1  ;;  %18512 = vmatprep.mubr.msk.f32.mxu0 %vm22677_vm0, %v22678_v1  ;;  %v1316_v57 = vand.u32 4294901760, %v1315_v41  ;;  %v1323_v58 = vand.u32 4294901760, %v1322_v60  ;;  %v1329_v18 = vsub.f32 %v23100_v43, %v1328_v24  ;;  %v23203_v36 = vpack.c.bf16 %v1335_v16, %v1328_v24 }
  0x58   :  { %20851 = vmatpush3.bf16.msra.mxu0 %v20850_v49  ;;  %20959 = vmatpush3.bf16.msra.mxu1 %v23015_v52  ;;  %v23123_v49 = vpack.c.bf16 %v1242_v12, %v1239_v8  ;;  %v23141_v37 = vpack.c.bf16 %v1323_v58, %v1316_v57  ;;  %v1330_v20 = vand.u32 4294901760, %v1329_v18  ;;  %v734_v18 = vld [vmem:[#allocation5 + $0x70] sm:$0xff] }
  0x59   :  { %20852 = vmatprep.subr.bf16.mxu0 %v22676_v0  ;;  %20960 = vmatprep.subr.bf16.mxu1 %v22676_v0 }
  0x5b   :  { %18651 = vmatmul.mubr.f32.vlgmr.msra.gmra.mrb[4].mxu1 %v22678_v1 }
  0x5c   :  { %20854 = vmatpush3.bf16.msra.mxu0 %v20853_v40  ;;  %20962 = vmatpush3.bf16.msra.mxu1 %v23039_v53  ;;  %v1337_v40 = vand.u32 4294901760, %v1336_v22  ;;  %v735_v22 = vld [vmem:[#allocation5 + $0x78] sm:$0xff] }
  0x5d   :  { %20855 = vmatprep.subr.bf16.mxu0 %v22676_v0  ;;  %20963 = vmatprep.subr.bf16.mxu1 %v22676_v0 }
  0x5e   :  { %18661 = vmatprep.mubr.msk.f32.mxu1 %vm22677_vm0, %v22678_v1  ;;  %v23148_v62 = vpack.c.bf16 %v1337_v40, %v1330_v20  ;;  %v2229_v20 = vand.u32 4294901760, %v735_v22 }
  0x60   :  { %20857 = vmatpush3.bf16.msra.mxu0 %v20856_v44  ;;  %20965 = vmatpush3.bf16.msra.mxu1 %v23051_v5  ;;  %v23167_v44 = vpack.c.bf16 %v23102_v46, %v23100_v43 }
  0x61   :  { %20858 = vmatprep.subr.bf16.mxu0 %v22676_v0  ;;  %20966 = vmatprep.subr.bf16.mxu1 %v22676_v0 }
  0x63   :  { %18662 = vmatmul.mubr.f32.vlgmr.msra.gmra.mrb[6].mxu1 %v22678_v1 }
  0x64   :  { %20860 = vmatpush3.bf16.msra.mxu0 %v20859_v23  ;;  %20968 = vmatpush3.bf16.msra.mxu1 %v23067_v31  ;;  %v23190_v23 = vpack.c.bf16 %v1321_v27, %v1314_v26 }
  0x65   :  { %20861 = vmatprep.subr.bf16.mxu0 %v22676_v0  ;;  %20969 = vmatprep.subr.bf16.mxu1 %v22676_v0 }
  0x66   :  { %18672 = vmatprep.mubr.msk.f32.mxu1 %vm22677_vm0, %v22678_v1 }
  0x68   :  { %20863 = vmatpush3.bf16.msra.mxu0 %v20862_v48  ;;  %20971 = vmatpush3.bf16.msra.mxu1 %v23079_v55  ;;  %v1729_v48 = vand.u32 4294901760, %v727_v32 }
  0x69   :  { %20864 = vmatprep.subr.bf16.mxu0 %v22676_v0  ;;  %20972 = vmatprep.subr.bf16.mxu1 %v22676_v0 }
  0x6a   :  { %v23213_v34 = vsub.f32 %v727_v32, %v1729_v48  ;;  %v23232_v11 = vpack.c.bf16 %v1732_v7, %v1729_v48  ;;  %v2321_v48 = vsub.f32 %v735_v22, %v2229_v20 }
  0x6b   :  { %18673 = vmatmul.mubr.f32.vlgmr.msra.gmra.mrb[8].mxu1 %v22678_v1 }
  0x6c   :  { %20866 = vmatpush3.bf16.msra.mxu0 %v20865_v4  ;;  %20974 = vmatpush3.bf16.msra.mxu1 %v23039_v53  ;;  %v23215_v4 = vsub.f32 %v728_v28, %v1732_v7 }
  0x6d   :  { %20867 = vmatprep.subr.bf16.mxu0 %v22676_v0  ;;  %20975 = vmatprep.subr.bf16.mxu1 %v22676_v0 }
  0x6e   :  { %18683 = vmatprep.mubr.msk.f32.mxu1 %vm22677_vm0, %v22678_v1  ;;  %v1817_v8 = vand.u32 4294901760, %v23215_v4 }
  0x70   :  { %20869 = vmatpush3.bf16.msra.mxu0 %v20868_v63  ;;  %20977 = vmatpush3.bf16.msra.mxu1 %v23051_v5  ;;  %v1818_v63 = vsub.f32 %v23215_v4, %v1817_v8 }
  0x71   :  { %20870 = vmatprep.subr.bf16.mxu0 %v22676_v0  ;;  %20978 = vmatprep.subr.bf16.mxu1 %v22676_v0 }
  0x72   :  { %v1819_v46 = vand.u32 4294901760, %v1818_v63 }
  0x73   :  { %18684 = vmatmul.mubr.f32.vlgmr.msra.gmra.mrb[10].mxu1 %v22678_v1  ;;  %18513 = vmatmul.mubr.f32.vlgmr.msra.gmra.mrb[0].mxu0 %v22878_v2  ;;  %v1735_v2 = vand.u32 4294901760, %v729_v13 }
  0x74   :  { %20872 = vmatpush3.bf16.msra.mxu0 %v22748_v15  ;;  %20980 = vmatpush3.bf16.msra.mxu1 %v23108_v59 }
  0x75   :  { %20873 = vmatprep.subr.bf16.mxu0 %v22676_v0  ;;  %20981 = vmatprep.subr.bf16.mxu1 %v22676_v0  ;;  %v23224_v12 = vsub.f32 %v729_v13, %v1735_v2 }
  0x76   :  { %18694 = vmatprep.mubr.msk.f32.mxu1 %vm22677_vm0, %v22678_v1  ;;  %18547 = vmatprep.mubr.msk.f32.mxu0 %vm22677_vm0, %v22678_v1 }
  0x77   :  { %v1824_v26 = vand.u32 4294901760, %v23224_v12 }
  0x78   :  { %20875 = vmatpush3.bf16.msra.mxu0 %v22756_v21  ;;  %20983 = vmatpush3.bf16.msra.mxu1 %v23123_v49 }
  0x79   :  { %20876 = vmatprep.subr.bf16.mxu0 %v22676_v0  ;;  %20984 = vmatprep.subr.bf16.mxu1 %v22676_v0  ;;  %v1825_v41 = vsub.f32 %v23224_v12, %v1824_v26 }
  0x7b   :  { %18695 = vmatmul.mubr.f32.vlgmr.msra.gmra.mrb[12].mxu1 %v22678_v1  ;;  %v1826_v24 = vand.u32 4294901760, %v1825_v41 }
  0x7c   :  { %20878 = vmatpush3.bf16.msra.mxu0 %v22787_v42  ;;  %20986 = vmatpush3.bf16.msra.mxu1 %v23141_v37 }
  0x7d   :  { %20879 = vmatprep.subr.bf16.mxu0 %v22676_v0  ;;  %20987 = vmatprep.subr.bf16.mxu1 %v22676_v0 }
  0x7e   :  { %18705 = vmatprep.mubr.msk.f32.mxu1 %vm22677_vm0, %v22678_v1 }
  0x80   :  { %20881 = vmatpush3.bf16.msra.mxu0 %v22789_v45  ;;  %20989 = vmatpush3.bf16.msra.mxu1 %v23148_v62 }
  0x81   :  { %20882 = vmatprep.subr.bf16.mxu0 %v22676_v0  ;;  %20990 = vmatprep.subr.bf16.mxu1 %v22676_v0 }
  0x83   :  { %18706 = vmatmul.mubr.f32.vlgmr.msra.gmra.mrb[12].mxu1 %v22678_v1 }
  0x84   :  { %20884 = vmatpush3.bf16.msra.mxu0 %v22808_v61  ;;  %20992 = vmatpush3.bf16.msra.mxu1 %v23158_v38 }
  0x85   :  { %20885 = vmatprep.subr.bf16.mxu0 %v22676_v0  ;;  %20993 = vmatprep.subr.bf16.mxu1 %v22676_v0 }
  0x86   :  { %18716 = vmatprep.mubr.msk.f32.mxu1 %vm22677_vm0, %v22678_v1 }
  0x88   :  { %20887 = vmatpush3.bf16.msra.mxu0 %v22853_v39  ;;  %20995 = vmatpush3.bf16.msra.mxu1 %v23167_v44 }
  0x89   :  { %20888 = vmatprep.subr.bf16.mxu0 %v22676_v0  ;;  %20996 = vmatprep.subr.bf16.mxu1 %v22676_v0 }
  0x8b   :  { %18717 = vmatmul.mubr.f32.vlgmr.msra.gmra.mrb[12].mxu1 %v22678_v1 }
  0x8c   :  { %20890 = vmatpush3.bf16.msra.mxu0 %v22904_v33  ;;  %20998 = vmatpush3.bf16.msra.mxu1 %v23108_v59 }
  0x8d   :  { %20891 = vmatprep.subr.bf16.mxu0 %v22676_v0  ;;  %20999 = vmatprep.subr.bf16.mxu1 %v22676_v0 }
  0x8e   :  { %18727 = vmatprep.mubr.msk.f32.mxu1 %vm22677_vm0, %v22678_v1 }
  0x90   :  { %20893 = vmatpush3.bf16.msra.mxu0 %v22909_v3  ;;  %21001 = vmatpush3.bf16.msra.mxu1 %v23123_v49 }
  0x91   :  { %20894 = vmatprep.subr.bf16.mxu0 %v22676_v0  ;;  %21002 = vmatprep.subr.bf16.mxu1 %v22676_v0 }
  0x93   :  { %18728 = vmatmul.mubr.f32.vlgmr.msra.gmra.mrb[12].mxu1 %v22678_v1  ;;  %18548 = vmatmul.mubr.f32.vlgmr.msra.gmra.mrb[0].mxu0 %v24898_v35 }
  0x94   :  { %20896 = vmatpush3.bf16.msra.mxu0 %v22963_v47  ;;  %21004 = vmatpush3.bf16.msra.mxu1 %v23190_v23  ;;  %v1738_v47 = vand.u32 4294901760, %v730_v50 }
  0x95   :  { %20897 = vmatprep.subr.bf16.mxu0 %v22676_v0  ;;  %21005 = vmatprep.subr.bf16.mxu1 %v22676_v0 }
  0x96   :  { %18738 = vmatprep.mubr.msk.f32.mxu1 %vm22677_vm0, %v22678_v1  ;;  %18582 = vmatprep.mubr.msk.f32.mxu0 %vm22677_vm0, %v22678_v1  ;;  %v23226_v6 = vsub.f32 %v730_v50, %v1738_v47 }
  0x98   :  { %20899 = vmatpush3.bf16.msra.mxu0 %v22973_v54  ;;  %21007 = vmatpush3.bf16.msra.mxu1 %v23203_v36  ;;  %v1810_v54 = vand.u32 4294901760, %v23213_v34  ;;  %v1831_v27 = vand.u32 4294901760, %v23226_v6 }
  0x99   :  { %20900 = vmatprep.subr.bf16.mxu0 %v22676_v0  ;;  %21008 = vmatprep.subr.bf16.mxu1 %v22676_v0 }
  0x9a   :  { %v1832_v60 = vsub.f32 %v23226_v6, %v1831_v27 }
  0x9b   :  { %18739 = vmatmul.mubr.f32.vlgmr.msra.gmra.mrb[12].mxu1 %v22678_v1 }
  0x9c   :  { %20902 = vmatpush3.bf16.msra.mxu0 %v22979_v56  ;;  %21010 = vmatpush3.bf16.msra.mxu1 %v23108_v59  ;;  %v1811_v56 = vsub.f32 %v23213_v34, %v1810_v54  ;;  %v1833_v16 = vand.u32 4294901760, %v1832_v60 }
  0x9d   :  { %20903 = vmatprep.subr.bf16.mxu0 %v22676_v0  ;;  %21011 = vmatprep.subr.bf16.mxu1 %v22676_v0 }
  0x9e   :  { %18749 = vmatprep.mubr.msk.f32.mxu1 %vm22677_vm0, %v22678_v1  ;;  %v1812_v43 = vand.u32 4294901760, %v1811_v56  ;;  %v23268_v57 = vpack.c.bf16 %v1833_v16, %v1826_v24 }
  0xa0   :  { %20905 = vmatpush3.bf16.msra.mxu0 %v22992_v29  ;;  %21013 = vmatpush3.bf16.msra.mxu1 %v23123_v49  ;;  %v23247_v29 = vpack.c.bf16 %v1738_v47, %v1735_v2  ;;  %v2322_v2 = vand.u32 4294901760, %v2321_v48 }
  0xa1   :  { %20906 = vmatprep.subr.bf16.mxu0 %v22676_v0  ;;  %21014 = vmatprep.subr.bf16.mxu1 %v22676_v0 }
  0xa3   :  { %18750 = vmatmul.mubr.f32.vlgmr.msra.gmra.mrb[12].mxu1 %v22678_v1 }
  0xa4   :  { %20908 = vmatpush3.bf16.msra.mxu0 %v23000_v30  ;;  %21016 = vmatpush3.bf16.msra.mxu1 %v23232_v11  ;;  %v23261_v30 = vpack.c.bf16 %v1819_v46, %v1812_v43 }
  0xa5   :  { %20909 = vmatprep.subr.bf16.mxu0 %v22676_v0  ;;  %21017 = vmatprep.subr.bf16.mxu1 %v22676_v0 }
  0xa6   :  { %18760 = vmatprep.mubr.msk.f32.mxu1 %vm22677_vm0, %v22678_v1 }
  0xa8   :  { %20911 = vmatpush3.bf16.msra.mxu0 %v23006_v17  ;;  %21019 = vmatpush3.bf16.msra.mxu1 %v23247_v29  ;;  %v23278_v17 = vpack.c.bf16 %v23215_v4, %v23213_v34 }
  0xa9   :  { %20912 = vmatprep.subr.bf16.mxu0 %v22676_v0  ;;  %21020 = vmatprep.subr.bf16.mxu1 %v22676_v0 }
  0xab   :  { %18761 = vmatmul.mubr.f32.vlgmr.msra.gmra.mrb[14].mxu1 %v22678_v1 }
  0xac   :  { %20914 = vmatpush3.bf16.msra.mxu0 %v23021_v10  ;;  %21022 = vmatpush3.bf16.msra.mxu1 %v23261_v30  ;;  %v23288_v10 = vpack.c.bf16 %v23226_v6, %v23224_v12 }
  0xad   :  { %20915 = vmatprep.subr.bf16.mxu0 %v22676_v0  ;;  %21023 = vmatprep.subr.bf16.mxu1 %v22676_v0 }
  0xae   :  { %18771 = vmatprep.mubr.msk.f32.mxu1 %vm22677_vm0, %v22678_v1 }
  0xb0   :  { %20917 = vmatpush3.bf16.msra.mxu0 %v23033_v14  ;;  %21025 = vmatpush3.bf16.msra.mxu1 %v23268_v57 }
  0xb1   :  { %20918 = vmatprep.subr.bf16.mxu0 %v22676_v0  ;;  %21026 = vmatprep.subr.bf16.mxu1 %v22676_v0 }
  0xb3   :  { %18772 = vmatmul.mubr.f32.vlgmr.msra.gmra.mrb[14].mxu1 %v22678_v1  ;;  %18583 = vmatmul.mubr.f32.vlgmr.msra.gmra.mrb[0].mxu0 %v22864_v51 }
  0xb4   :  { %20920 = vmatpush3.bf16.msra.mxu0 %v22748_v15  ;;  %21028 = vmatpush3.bf16.msra.mxu1 %v23278_v17  ;;  %v23313_v15 = vpack.c.bf16 %v1817_v8, %v1810_v54  ;;  %v2323_v54 = vsub.f32 %v2321_v48, %v2322_v2 }
  0xb5   :  { %20921 = vmatprep.subr.bf16.mxu0 %v22676_v0  ;;  %21029 = vmatprep.subr.bf16.mxu1 %v22676_v0 }
  0xb6   :  { %18782 = vmatprep.mubr.msk.f32.mxu1 %vm22677_vm0, %v22678_v1  ;;  %18617 = vmatprep.mubr.msk.f32.mxu0 %vm22677_vm0, %v22678_v1  ;;  %v2324_v12 = vand.u32 4294901760, %v2323_v54 }
  0xb8   :  { %20923 = vmatpush3.bf16.msra.mxu0 %v22756_v21  ;;  %21031 = vmatpush3.bf16.msra.mxu1 %v23288_v10  ;;  %v732_v21 = vld [vmem:[#allocation5 + $0x60] sm:$0xff] }
  0xb9   :  { %20924 = vmatprep.subr.bf16.mxu0 %v22676_v0  ;;  %21032 = vmatprep.subr.bf16.mxu1 %v22676_v0  ;;  %v2220_v14 = vand.u32 4294901760, %v732_v21 }
  0xbb   :  { %18783 = vmatmul.mubr.f32.vlgmr.msra.gmra.mrb[14].mxu1 %v22678_v1  ;;  %v23332_v40 = vsub.f32 %v732_v21, %v2220_v14 }
  0xbc   :  { %20926 = vmatpush3.bf16.msra.mxu0 %v22787_v42  ;;  %21034 = vmatpush3.bf16.msra.mxu1 %v23232_v11  ;;  %v733_v42 = vld [vmem:[#allocation5 + $0x68] sm:$0xff] }
  0xbd   :  { %20927 = vmatprep.subr.bf16.mxu0 %v22676_v0  ;;  %21035 = vmatprep.subr.bf16.mxu1 %v22676_v0  ;;  %v2223_v58 = vand.u32 4294901760, %v733_v42 }
  0xbe   :  { %18793 = vmatprep.mubr.msk.f32.mxu1 %vm22677_vm0, %v22678_v1 }
  0xbf   :  { %v23334_v32 = vsub.f32 %v733_v42, %v2223_v58 }
  0xc0   :  { %20929 = vmatpush3.bf16.msra.mxu0 %v22789_v45  ;;  %21037 = vmatpush3.bf16.msra.mxu1 %v23247_v29  ;;  %v23322_v45 = vpack.c.bf16 %v1831_v27, %v1824_v26 }
  0xc1   :  { %20930 = vmatprep.subr.bf16.mxu0 %v22676_v0  ;;  %21038 = vmatprep.subr.bf16.mxu1 %v22676_v0  ;;  %v2308_v28 = vand.u32 4294901760, %v23334_v32  ;;  %v23391_v56 = vpack.c.bf16 %v23334_v32, %v23332_v40 }
  0xc3   :  { %18794 = vmatmul.mubr.f32.vlgmr.msra.gmra.mrb[14].mxu1 %v22678_v1  ;;  %v2309_v13 = vsub.f32 %v23334_v32, %v2308_v28 }
  0xc4   :  { %20932 = vmatpush3.bf16.msra.mxu0 %v22808_v61  ;;  %21040 = vmatpush3.bf16.msra.mxu1 %v23313_v15  ;;  %v2226_v61 = vand.u32 4294901760, %v734_v18 }
  0xc5   :  { %20933 = vmatprep.subr.bf16.mxu0 %v22676_v0  ;;  %21041 = vmatprep.subr.bf16.mxu1 %v22676_v0  ;;  %v2310_v34 = vand.u32 4294901760, %v2309_v13 }
  0xc6   :  { %18804 = vmatprep.mubr.msk.f32.mxu1 %vm22677_vm0, %v22678_v1  ;;  %v23343_v35 = vsub.f32 %v734_v18, %v2226_v61 }
  0xc8   :  { %20935 = vmatpush3.bf16.msra.mxu0 %v22853_v39  ;;  %21043 = vmatpush3.bf16.msra.mxu1 %v23322_v45  ;;  %v2301_v39 = vand.u32 4294901760, %v23332_v40  ;;  %v2315_v50 = vand.u32 4294901760, %v23343_v35  ;;  %v23398_v63 = vpack.c.bf16 %v2321_v48, %v23343_v35 }
  0xc9   :  { %20936 = vmatprep.subr.bf16.mxu0 %v22676_v0  ;;  %21044 = vmatprep.subr.bf16.mxu1 %v22676_v0 }
  0xca   :  { %v2302_v7 = vsub.f32 %v23332_v40, %v2301_v39  ;;  %v2316_v4 = vsub.f32 %v23343_v35, %v2315_v50  ;;  %v23411_v26 = vpack.c.bf16 %v2308_v28, %v2301_v39  ;;  %v23416_v27 = vpack.c.bf16 %v2322_v2, %v2315_v50  ;;  %v17293_v40 = vld [vmem:[%s24870_s2] ss:$0 sm:$0xff]  ;;  %s22681_s2 = smov 96  }
  0xcb   :  { %18805 = vmatmul.mubr.f32.vlgmr.msra.gmra.mrb[14].mxu1 %v22678_v1 }
  0xcc   :  { %20938 = vmatpush3.bf16.msra.mxu0 %v22904_v33  ;;  %21046 = vmatpush3.bf16.msra.mxu1 %v23232_v11  ;;  %v23349_v33 = vpack.c.bf16 %v2223_v58, %v2220_v14  ;;  %v2303_v47 = vand.u32 4294901760, %v2302_v7  ;;  %v2317_v8 = vand.u32 4294901760, %v2316_v4 }
  0xcd   :  { %20939 = vmatprep.subr.bf16.mxu0 %v22676_v0  ;;  %21047 = vmatprep.subr.bf16.mxu1 %v22676_v0 }
  0xce   :  { %18815 = vmatprep.mubr.msk.f32.mxu1 %vm22677_vm0, %v22678_v1  ;;  %v23379_v6 = vpack.c.bf16 %v2324_v12, %v2317_v8 }
  0xd0   :  { %20941 = vmatpush3.bf16.msra.mxu0 %v22909_v3  ;;  %21049 = vmatpush3.bf16.msra.mxu1 %v23247_v29  ;;  %v23361_v3 = vpack.c.bf16 %v2229_v20, %v2226_v61 }
  0xd1   :  { %20942 = vmatprep.subr.bf16.mxu0 %v22676_v0  ;;  %21050 = vmatprep.subr.bf16.mxu1 %v22676_v0 }
  0xd3   :  { %18618 = vmatmul.mubr.f32.vlgmr.msra.gmra.mrb[0].mxu0 %v22864_v51  ;;  %18816 = vmatmul.mubr.f32.vlgmr.msra.gmra.mrb[14].mxu1 %v22678_v1  ;;  %v23371_v51 = vpack.c.bf16 %v2310_v34, %v2303_v47 }
  0xd4   :  { %20944 = vmatpush3.bf16.msra.mxu0 %v23039_v53  ;;  %18628 = vmatprep.mubr.msk.f32.mxu0 %vm22677_vm0, %v22678_v1 }
  0xd5   :  { %20945 = vmatprep.subr.bf16.mxu0 %v22676_v0  ;;  %21052 = vmatpush3.bf16.msra.mxu1 %v23349_v33 }
  0xd6   :  { %21053 = vmatprep.subr.bf16.mxu1 %v22676_v0  ;;  %18826 = vmatprep.mubr.msk.f32.mxu1 %vm22677_vm0, %v22678_v1 }
  0xd8   :  { %20947 = vmatpush3.bf16.msra.mxu0 %v23051_v5 }
  0xd9   :  { %21055 = vmatpush3.bf16.msra.mxu1 %v23361_v3  ;;  %21086 = vmatprep.subr.bf16.mxu0 %v22676_v0 }
  0xda   :  { %21056 = vmatprep.subr.bf16.mxu1 %v22676_v0 }
  0xdb   :  { %18629 = vmatmul.mubr.f32.vlgmr.msra.gmra.mrb[2].mxu0 %v22678_v1 }
  0xdc   :  { %18827 = vmatmul.mubr.f32.vlgmr.msra.gmra.mrb[16].mxu1 %v22678_v1  ;;  %21088 = vmatpush3.bf16.msra.mxu0 %v23039_v53 }
  0xdd   :  { %21058 = vmatpush3.bf16.msra.mxu1 %v23371_v51  ;;  %18837 = vmatprep.mubr.msk.f32.mxu1 %vm22677_vm0, %v22678_v1 }
  0xde   :  { %21059 = vmatprep.subr.bf16.mxu1 %v22676_v0  ;;  %21089 = vmatprep.subr.bf16.mxu0 %v22676_v0 }
  0xdf   :  { %18892 = vmatprep.mubr.msk.f32.mxu0 %vm22677_vm0, %v22678_v1 }
  0xe0   :  { %21091 = vmatpush3.bf16.msra.mxu0 %v23051_v5 }
  0xe1   :  { %21061 = vmatpush3.bf16.msra.mxu1 %v23379_v6  ;;  %21092 = vmatprep.subr.bf16.mxu0 %v22676_v0 }
  0xe2   :  { %21062 = vmatprep.subr.bf16.mxu1 %v22676_v0 }
  0xe4   :  { %18838 = vmatmul.mubr.f32.vlgmr.msra.gmra.mrb[16].mxu1 %v22678_v1 }
  0xe5   :  { %21064 = vmatpush3.bf16.msra.mxu1 %v23391_v56  ;;  %18848 = vmatprep.mubr.msk.f32.mxu1 %vm22677_vm0, %v22678_v1 }
  0xe6   :  { %21065 = vmatprep.subr.bf16.mxu1 %v22676_v0 }
  0xe9   :  { %21067 = vmatpush3.bf16.msra.mxu1 %v23398_v63 }
  0xea   :  { %21068 = vmatprep.subr.bf16.mxu1 %v22676_v0 }
  0xec   :  { %18849 = vmatmul.mubr.f32.vlgmr.msra.gmra.mrb[16].mxu1 %v22678_v1 }
  0xed   :  { %21070 = vmatpush3.bf16.msra.mxu1 %v23349_v33  ;;  %18859 = vmatprep.mubr.msk.f32.mxu1 %vm22677_vm0, %v22678_v1 }
  0xee   :  { %21071 = vmatprep.subr.bf16.mxu1 %v22676_v0 }
  0xf1   :  { %21073 = vmatpush3.bf16.msra.mxu1 %v23361_v3 }
  0xf2   :  { %21074 = vmatprep.subr.bf16.mxu1 %v22676_v0 }
  0xf4   :  { %18860 = vmatmul.mubr.f32.vlgmr.msra.gmra.mrb[16].mxu1 %v22678_v1 }
  0xf5   :  { %21076 = vmatpush3.bf16.msra.mxu1 %v23411_v26  ;;  %18870 = vmatprep.mubr.msk.f32.mxu1 %vm22677_vm0, %v22678_v1 }
  0xf6   :  { %21077 = vmatprep.subr.bf16.mxu1 %v22676_v0 }
  0xf9   :  { %21079 = vmatpush3.bf16.msra.mxu1 %v23416_v27 }
  0xfa   :  { %21080 = vmatprep.subr.bf16.mxu1 %v22676_v0 }
  0xfc   :  { %18871 = vmatmul.mubr.f32.vlgmr.msra.gmra.mrb[16].mxu1 %v22678_v1 }
  0xfd   :  { %21082 = vmatpush3.bf16.msra.mxu1 %v23349_v33  ;;  %18881 = vmatprep.mubr.msk.f32.mxu1 %vm22677_vm0, %v22678_v1 }
  0xfe   :  { %21083 = vmatprep.subr.bf16.mxu1 %v22676_v0 }
 0x101   :  { %21085 = vmatpush3.bf16.msra.mxu1 %v23361_v3 }
 0x102   :  { %21122 = vmatprep.subr.bf16.mxu1 %v22676_v0 }
 0x104   :  { %18882 = vmatmul.mubr.f32.vlgmr.msra.gmra.mrb[16].mxu1 %v22678_v1 }
 0x105   :  { %21124 = vmatpush3.bf16.msra.mxu1 %v23108_v59  ;;  %18958 = vmatprep.mubr.msk.f32.mxu1 %vm22677_vm0, %v22678_v1 }
 0x106   :  { %21125 = vmatprep.subr.bf16.mxu1 %v22676_v0 }
 0x109   :  { %21127 = vmatpush3.bf16.msra.mxu1 %v23123_v49 }
 0x10a   :  { %21128 = vmatprep.subr.bf16.mxu1 %v22676_v0 }
 0x11e   :  { %v163_v43 = vpop.f32.mrb[0].mxu1 }
 0x11f   :  { %v18444_v46 = vpop.f32.mrb[1].mxu1  ;;  %v164_v32 = vadd.f32 %v17293_v40, %v163_v43 }
 0x126   :  { %v906_v41 = vpop.f32.mrb[2].mxu1 }
 0x127   :  { %v18641_v60 = vpop.f32.mrb[3].mxu1 }
 0x12e   :  { %v986_v24 = vpop.f32.mrb[4].mxu1 }
 0x12f   :  { %v18652_v16 = vpop.f32.mrb[5].mxu1 }
 0x136   :  { %v1063_v21 = vpop.f32.mrb[6].mxu1 }
 0x137   :  { %v18663_v42 = vpop.f32.mrb[7].mxu1 }
 0x13e   :  { %v1146_v14 = vpop.f32.mrb[8].mxu1 }
 0x13f   :  { %v18674_v58 = vpop.f32.mrb[9].mxu1 }
 0x146   :  { %v1221_v18 = vpop.f32.mrb[10].mxu1 }
 0x147   :  { %v18685_v22 = vpop.f32.mrb[11].mxu1 }
 0x176   :  { %v1713_v61 = vpop.f32.mrb[12].mxu1 }
 0x177   :  { %1718 = vrot.lane.b32.xlu1 %v1713_v61, %s22679_s0  ;;  %v18751_v20 = vpop.f32.mrb[13].mxu1 }
 0x1a6   :  { %v713_v39 = vpop.f32.mrb[0].mxu0  ;;  %v2209_v28 = vpop.f32.mrb[14].mxu1 }
 0x1a7   :  { %v23441_v35 = vadd.f32 %v713_v39, %v164_v32  ;;  %v18619_v48 = vpop.f32.mrb[1].mxu0  ;;  %2214 = vrot.lane.b32.xlu0 %v2209_v28, %s22680_s25  ;;  %v18817_v7 = vpop.f32.mrb[15].mxu1 }
 0x1ae   :  { %v815_v13 = vpop.f32.mrb[2].mxu0 }
 0x1af   :  { %v907_v50 = vadd.f32 %v906_v41, %v815_v13  ;;  %v18630_v2 = vpop.f32.mrb[3].mxu0 }
 0x1b1   :  { %v987_v47 = vadd.f32 %v986_v24, %v907_v50 }
 0x1b3   :  { %v1064_v34 = vadd.f32 %v1063_v21, %v987_v47 }
 0x1b5   :  { %v1147_v4 = vadd.f32 %v1146_v14, %v1064_v34 }
 0x1b7   :  { %v1222_v54 = vadd.f32 %v1221_v18, %v1147_v4 }
 0x1b9   :  { %v1225_v16 = vadd.f32 %v23441_v35, %v1222_v54 }
 0x1bb   :  { %v17294_v41 = vmul.f32 -1.442695, %v1225_v16 }
 0x1d7   :  { %v2700_v8 = vpop.f32.mrb[16].mxu1 }
 0x1d8   :  { %v18883_v12 = vpop.f32.mrb[17].mxu1 }
 0x1e9   :  { %v1719_v18 = vpop.permute.xlu1 %1718 }
 0x1ea   :  { %v1721_v22 = vadd.f32 %v23441_v35, %v1719_v18 }
 0x1ec   :  { %v17295_v61 = vmul.f32 -1.442695, %v1721_v22 }
 0x219   :  { %v2215_v46 = vpop.permute.xlu0 %2214 }
 0x21a   :  { %v2217_v43 = vadd.f32 %v23441_v35, %v2215_v46 }
 0x21c   :  { %22472 = vtanh.f32 %v2217_v43 }
 0x21d   :  { %22474 = vpow2.f32 %v17294_v41 }
 0x226   :  { %v22473_v60 = vpop.eup %22472 }
 0x227   :  { %2717 = vrot.lane.b32.xlu0 %v22473_v60, %s22680_s25  ;;  %v22475_v24 = vpop.eup %22474 }
 0x228   :  { %v1229_v21 = vadd.f32 1.0, %v22475_v24 }
 0x22a   :  { %22476 = vrcp.f32 %v1229_v21 }
 0x22b   :  { %2705 = vrot.lane.b32.xlu0 %v2700_v8, %s22681_s2  ;;  %22478 = vpow2.f32 %v17295_v61 }
 0x234   :  { %v22477_v42 = vpop.eup %22476 }
 0x235   :  { %v22479_v20 = vpop.eup %22478 }
 0x236   :  { %v1725_v40 = vadd.f32 1.0, %v22479_v20 }
 0x238   :  { %22480 = vrcp.f32 %v1725_v40 }
 0x242   :  { %v22481_v32 = vpop.eup %22480 }
 0x243   :  { %v2715_v39 = vmul.f32 0.0, %v22481_v32 }
 0x299   :  { %v2718_v14 = vpop.permute.xlu0 %2717 }
 0x29a   :  { %v2720_v58 = vmul.f32 %v22477_v42, %v2718_v14 }
 0x29c   :  { %2722 = vrot.lane.b32.xlu1 %v2720_v58, %s22679_s0 }
 0x29d   :  { %v2706_v13 = vpop.permute.xlu0 %2705 }
 0x29e   :  { %v2708_v50 = vadd.f32 %v23441_v35, %v2706_v13 }
 0x2a0   :  { %v17296_v2 = vmul.f32 -1.442695, %v2708_v50 }
 0x30e   :  { %v2723_v28 = vpop.permute.xlu1 %2722 }
 0x30f   :  { %v23450_v48 = vadd.f32 %v2723_v28, %v2715_v39 }
 0x311   :  { %22482 = vtanh.f32 %v23450_v48 }
 0x312   :  { %22484 = vpow2.f32 %v17296_v2 }
 0x31b   :  { %v22483_v7 = vpop.eup %22482 }
 0x31c   :  { %2728 = vrot.lane.b32.xlu1 %v22483_v7, %s22680_s25  ;;  %v22485_v47 = vpop.eup %22484 }
 0x31d   :  { %v2712_v34 = vadd.f32 1.0, %v22485_v47 }
 0x31f   :  { %22486 = vrcp.f32 %v2712_v34 }
 0x329   :  { %v22487_v4 = vpop.eup %22486 }
 0x38e   :  { %v2729_v54 = vpop.permute.xlu1 %2728 }
 0x38f   :  { %v2731_v8 = vmul.f32 %v22487_v4, %v2729_v54 }
 0x391   :  { %2733 = vrot.lane.b32.xlu0 %v2731_v8, %s22679_s0 }
 0x403   :  { %v2734_v12 = vpop.permute.xlu0 %2733 }
 0x404   :  { %v2735_v46 = vsel %vm736_vm1, %v2734_v12, 0 }
 0x405   :  { %v23457_v43 = vand.u32 4294901760, %v2735_v46 }
 0x407   :  { %v23460_v60 = vsub.f32 %v2735_v46, %v23457_v43 }
 0x409   :  { %v23463_v16 = vand.u32 4294901760, %v23460_v60 }
 0x40b   :  { %v2809_v41 = vsub.f32 %v23460_v60, %v23463_v16 }
 0x40d   :  { %v23467_v24 = vand.u32 4294901760, %v2809_v41 }
 0x40f   :  { %18893 = vmatmul.mubr.f32.vlgmr.msra.gmra.mrb[4].mxu0 %v23467_v24  ;;  %18959 = vmatmul.mubr.f32.vlgmr.msra.gmra.mrb[18].mxu1 %v23467_v24 }
 0x410   :  { %21094 = vmatpush3.bf16.msra.mxu0 %v22946_v9  ;;  %21130 = vmatpush3.bf16.msra.mxu1 %v23141_v37 }
 0x411   :  { %21095 = vmatprep.subr.bf16.mxu0 %v22676_v0  ;;  %21131 = vmatprep.subr.bf16.mxu1 %v22676_v0 }
 0x412   :  { %18903 = vmatprep.mubr.msk.f32.mxu0 %vm22677_vm0, %v22678_v1  ;;  %18969 = vmatprep.mubr.msk.f32.mxu1 %vm22677_vm0, %v22678_v1 }
 0x414   :  { %21097 = vmatpush3.bf16.msra.mxu0 %v22957_v19  ;;  %21133 = vmatpush3.bf16.msra.mxu1 %v23148_v62 }
 0x415   :  { %21098 = vmatprep.subr.bf16.mxu0 %v22676_v0  ;;  %21134 = vmatprep.subr.bf16.mxu1 %v22676_v0 }
 0x417   :  { %18904 = vmatmul.mubr.f32.vlgmr.msra.gmra.mrb[4].mxu0 %v23457_v43  ;;  %18970 = vmatmul.mubr.f32.vlgmr.msra.gmra.mrb[18].mxu1 %v23457_v43 }
 0x418   :  { %21100 = vmatpush3.bf16.msra.mxu0 %v22986_v25  ;;  %21136 = vmatpush3.bf16.msra.mxu1 %v23158_v38 }
 0x419   :  { %21101 = vmatprep.subr.bf16.mxu0 %v22676_v0  ;;  %21137 = vmatprep.subr.bf16.mxu1 %v22676_v0 }
 0x41a   :  { %18914 = vmatprep.mubr.msk.f32.mxu0 %vm22677_vm0, %v22678_v1  ;;  %18980 = vmatprep.mubr.msk.f32.mxu1 %vm22677_vm0, %v22678_v1 }
 0x41c   :  { %21103 = vmatpush3.bf16.msra.mxu0 %v23015_v52  ;;  %21139 = vmatpush3.bf16.msra.mxu1 %v23167_v44 }
 0x41d   :  { %21104 = vmatprep.subr.bf16.mxu0 %v22676_v0  ;;  %21140 = vmatprep.subr.bf16.mxu1 %v22676_v0 }
 0x41f   :  { %18915 = vmatmul.mubr.f32.vlgmr.msra.gmra.mrb[4].mxu0 %v23460_v60  ;;  %18981 = vmatmul.mubr.f32.vlgmr.msra.gmra.mrb[18].mxu1 %v23460_v60 }
 0x420   :  { %21106 = vmatpush3.bf16.msra.mxu0 %v23039_v53  ;;  %21142 = vmatpush3.bf16.msra.mxu1 %v23108_v59 }
 0x421   :  { %21107 = vmatprep.subr.bf16.mxu0 %v22676_v0  ;;  %21143 = vmatprep.subr.bf16.mxu1 %v22676_v0 }
 0x422   :  { %18925 = vmatprep.mubr.msk.f32.mxu0 %vm22677_vm0, %v22678_v1  ;;  %18991 = vmatprep.mubr.msk.f32.mxu1 %vm22677_vm0, %v22678_v1 }
 0x424   :  { %21109 = vmatpush3.bf16.msra.mxu0 %v23051_v5  ;;  %21145 = vmatpush3.bf16.msra.mxu1 %v23123_v49 }
 0x425   :  { %21110 = vmatprep.subr.bf16.mxu0 %v22676_v0  ;;  %21146 = vmatprep.subr.bf16.mxu1 %v22676_v0 }
 0x427   :  { %18926 = vmatmul.mubr.f32.vlgmr.msra.gmra.mrb[4].mxu0 %v23463_v16  ;;  %18992 = vmatmul.mubr.f32.vlgmr.msra.gmra.mrb[18].mxu1 %v23463_v16 }
 0x428   :  { %21112 = vmatpush3.bf16.msra.mxu0 %v23067_v31  ;;  %21148 = vmatpush3.bf16.msra.mxu1 %v23190_v23 }
 0x429   :  { %21113 = vmatprep.subr.bf16.mxu0 %v22676_v0  ;;  %21149 = vmatprep.subr.bf16.mxu1 %v22676_v0 }
 0x42a   :  { %18936 = vmatprep.mubr.msk.f32.mxu0 %vm22677_vm0, %v22678_v1  ;;  %19002 = vmatprep.mubr.msk.f32.mxu1 %vm22677_vm0, %v22678_v1 }
 0x42c   :  { %21115 = vmatpush3.bf16.msra.mxu0 %v23079_v55  ;;  %21151 = vmatpush3.bf16.msra.mxu1 %v23203_v36 }
 0x42d   :  { %21116 = vmatprep.subr.bf16.mxu0 %v22676_v0  ;;  %21152 = vmatprep.subr.bf16.mxu1 %v22676_v0 }
 0x42f   :  { %18937 = vmatmul.mubr.f32.vlgmr.msra.gmra.mrb[4].mxu0 %v23457_v43  ;;  %19003 = vmatmul.mubr.f32.vlgmr.msra.gmra.mrb[18].mxu1 %v23457_v43 }
 0x430   :  { %21118 = vmatpush3.bf16.msra.mxu0 %v23039_v53  ;;  %21154 = vmatpush3.bf16.msra.mxu1 %v23108_v59 }
 0x431   :  { %21119 = vmatprep.subr.bf16.mxu0 %v22676_v0  ;;  %21155 = vmatprep.subr.bf16.mxu1 %v22676_v0 }
 0x432   :  { %18947 = vmatprep.mubr.msk.f32.mxu0 %vm22677_vm0, %v22678_v1  ;;  %19013 = vmatprep.mubr.msk.f32.mxu1 %vm22677_vm0, %v22678_v1 }
 0x434   :  { %21121 = vmatpush3.bf16.msra.mxu0 %v23051_v5  ;;  %21157 = vmatpush3.bf16.msra.mxu1 %v23123_v49 }
 0x435   :  { %21158 = vmatprep.subr.bf16.mxu0 %v22676_v0  ;;  %21194 = vmatprep.subr.bf16.mxu1 %v22676_v0 }
 0x437   :  { %18948 = vmatmul.mubr.f32.vlgmr.msra.gmra.mrb[4].mxu0 %v23457_v43  ;;  %19014 = vmatmul.mubr.f32.vlgmr.msra.gmra.mrb[18].mxu1 %v23457_v43 }
 0x438   :  { %21160 = vmatpush3.bf16.msra.mxu0 %v23232_v11  ;;  %21196 = vmatpush3.bf16.msra.mxu1 %v23349_v33 }
 0x439   :  { %21161 = vmatprep.subr.bf16.mxu0 %v22676_v0  ;;  %21197 = vmatprep.subr.bf16.mxu1 %v22676_v0 }
 0x43a   :  { %19024 = vmatprep.mubr.msk.f32.mxu0 %vm22677_vm0, %v22678_v1  ;;  %19090 = vmatprep.mubr.msk.f32.mxu1 %vm22677_vm0, %v22678_v1 }
 0x43c   :  { %21163 = vmatpush3.bf16.msra.mxu0 %v23247_v29  ;;  %21199 = vmatpush3.bf16.msra.mxu1 %v23361_v3 }
 0x43d   :  { %21164 = vmatprep.subr.bf16.mxu0 %v22676_v0  ;;  %21200 = vmatprep.subr.bf16.mxu1 %v22676_v0 }
 0x43f   :  { %19025 = vmatmul.mubr.f32.vlgmr.msra.gmra.mrb[6].mxu0 %v23467_v24  ;;  %19091 = vmatmul.mubr.f32.vlgmr.msra.gmra.mrb[20].mxu1 %v23467_v24 }
 0x440   :  { %21166 = vmatpush3.bf16.msra.mxu0 %v23261_v30  ;;  %21202 = vmatpush3.bf16.msra.mxu1 %v23371_v51 }
 0x441   :  { %21167 = vmatprep.subr.bf16.mxu0 %v22676_v0  ;;  %21203 = vmatprep.subr.bf16.mxu1 %v22676_v0 }
 0x442   :  { %19035 = vmatprep.mubr.msk.f32.mxu0 %vm22677_vm0, %v22678_v1  ;;  %19101 = vmatprep.mubr.msk.f32.mxu1 %vm22677_vm0, %v22678_v1 }
 0x444   :  { %21169 = vmatpush3.bf16.msra.mxu0 %v23268_v57  ;;  %21205 = vmatpush3.bf16.msra.mxu1 %v23379_v6 }
 0x445   :  { %21170 = vmatprep.subr.bf16.mxu0 %v22676_v0  ;;  %21206 = vmatprep.subr.bf16.mxu1 %v22676_v0 }
 0x447   :  { %19036 = vmatmul.mubr.f32.vlgmr.msra.gmra.mrb[6].mxu0 %v23457_v43  ;;  %19102 = vmatmul.mubr.f32.vlgmr.msra.gmra.mrb[20].mxu1 %v23457_v43 }
 0x448   :  { %21172 = vmatpush3.bf16.msra.mxu0 %v23278_v17  ;;  %21208 = vmatpush3.bf16.msra.mxu1 %v23391_v56 }
 0x449   :  { %21173 = vmatprep.subr.bf16.mxu0 %v22676_v0  ;;  %21209 = vmatprep.subr.bf16.mxu1 %v22676_v0 }
 0x44a   :  { %19046 = vmatprep.mubr.msk.f32.mxu0 %vm22677_vm0, %v22678_v1  ;;  %19112 = vmatprep.mubr.msk.f32.mxu1 %vm22677_vm0, %v22678_v1 }
 0x44c   :  { %21175 = vmatpush3.bf16.msra.mxu0 %v23288_v10  ;;  %21211 = vmatpush3.bf16.msra.mxu1 %v23398_v63 }
 0x44d   :  { %21176 = vmatprep.subr.bf16.mxu0 %v22676_v0  ;;  %21212 = vmatprep.subr.bf16.mxu1 %v22676_v0 }
 0x44f   :  { %19047 = vmatmul.mubr.f32.vlgmr.msra.gmra.mrb[6].mxu0 %v23460_v60  ;;  %19113 = vmatmul.mubr.f32.vlgmr.msra.gmra.mrb[20].mxu1 %v23460_v60 }
 0x450   :  { %21178 = vmatpush3.bf16.msra.mxu0 %v23232_v11  ;;  %21214 = vmatpush3.bf16.msra.mxu1 %v23349_v33 }
 0x451   :  { %21179 = vmatprep.subr.bf16.mxu0 %v22676_v0  ;;  %21215 = vmatprep.subr.bf16.mxu1 %v22676_v0 }
 0x452   :  { %19057 = vmatprep.mubr.msk.f32.mxu0 %vm22677_vm0, %v22678_v1  ;;  %19123 = vmatprep.mubr.msk.f32.mxu1 %vm22677_vm0, %v22678_v1 }
 0x454   :  { %21181 = vmatpush3.bf16.msra.mxu0 %v23247_v29  ;;  %21217 = vmatpush3.bf16.msra.mxu1 %v23361_v3 }
 0x455   :  { %21182 = vmatprep.subr.bf16.mxu0 %v22676_v0  ;;  %21218 = vmatprep.subr.bf16.mxu1 %v22676_v0 }
 0x457   :  { %19058 = vmatmul.mubr.f32.vlgmr.msra.gmra.mrb[6].mxu0 %v23463_v16  ;;  %19124 = vmatmul.mubr.f32.vlgmr.msra.gmra.mrb[20].mxu1 %v23463_v16 }
 0x458   :  { %21184 = vmatpush3.bf16.msra.mxu0 %v23313_v15  ;;  %21220 = vmatpush3.bf16.msra.mxu1 %v23411_v26 }
 0x459   :  { %21185 = vmatprep.subr.bf16.mxu0 %v22676_v0  ;;  %21221 = vmatprep.subr.bf16.mxu1 %v22676_v0 }
 0x45a   :  { %19068 = vmatprep.mubr.msk.f32.mxu0 %vm22677_vm0, %v22678_v1  ;;  %19134 = vmatprep.mubr.msk.f32.mxu1 %vm22677_vm0, %v22678_v1 }
 0x45c   :  { %21187 = vmatpush3.bf16.msra.mxu0 %v23322_v45  ;;  %21223 = vmatpush3.bf16.msra.mxu1 %v23416_v27 }
 0x45d   :  { %21188 = vmatprep.subr.bf16.mxu0 %v22676_v0  ;;  %21224 = vmatprep.subr.bf16.mxu1 %v22676_v0 }
 0x45f   :  { %19069 = vmatmul.mubr.f32.vlgmr.msra.gmra.mrb[6].mxu0 %v23457_v43  ;;  %19135 = vmatmul.mubr.f32.vlgmr.msra.gmra.mrb[20].mxu1 %v23457_v43 }
 0x460   :  { %21190 = vmatpush3.bf16.msra.mxu0 %v23232_v11  ;;  %21226 = vmatpush3.bf16.msra.mxu1 %v23349_v33 }
 0x461   :  { %21191 = vmatprep.subr.bf16.mxu0 %v22676_v0  ;;  %21227 = vmatprep.subr.bf16.mxu1 %v22676_v0 }
 0x462   :  { %19079 = vmatprep.mubr.msk.f32.mxu0 %vm22677_vm0, %v22678_v1  ;;  %19145 = vmatprep.mubr.msk.f32.mxu1 %vm22677_vm0, %v22678_v1 }
 0x464   :  { %21193 = vmatpush3.bf16.msra.mxu0 %v23247_v29  ;;  %21229 = vmatpush3.bf16.msra.mxu1 %v23361_v3 }
 0x465   :  { %21230 = vmatprep.subr.bf16.mxu0 %v22676_v0  ;;  %21266 = vmatprep.subr.bf16.mxu1 %v22676_v0 }
 0x467   :  { %19080 = vmatmul.mubr.f32.vlgmr.msra.gmra.mrb[6].mxu0 %v23457_v43  ;;  %19146 = vmatmul.mubr.f32.vlgmr.msra.gmra.mrb[20].mxu1 %v23457_v43 }
 0x468   :  { %21232 = vmatpush3.bf16.msra.mxu0 %v23039_v53  ;;  %21268 = vmatpush3.bf16.msra.mxu1 %v23108_v59 }
 0x469   :  { %21233 = vmatprep.subr.bf16.mxu0 %v22676_v0  ;;  %21269 = vmatprep.subr.bf16.mxu1 %v22676_v0 }
 0x46a   :  { %19156 = vmatprep.mubr.msk.f32.mxu0 %vm22677_vm0, %v22678_v1  ;;  %19222 = vmatprep.mubr.msk.f32.mxu1 %vm22677_vm0, %v22678_v1 }
 0x46c   :  { %21235 = vmatpush3.bf16.msra.mxu0 %v23051_v5  ;;  %21271 = vmatpush3.bf16.msra.mxu1 %v23123_v49 }
 0x46d   :  { %21236 = vmatprep.subr.bf16.mxu0 %v22676_v0  ;;  %21272 = vmatprep.subr.bf16.mxu1 %v22676_v0 }
 0x50a   :  { %v3218_v21 = vpop.f32.mrb[4].mxu0  ;;  %v3713_v42 = vpop.f32.mrb[18].mxu1 }
 0x50b   :  { %v18949_v14 = vpop.f32.mrb[5].mxu0  ;;  %v19015_v58 = vpop.f32.mrb[19].mxu1  ;;  %v3718_v32 = vrot.slane %v3713_v42, 7  ;;  %v3223_v50 = vrot.slane %v3218_v21, 7  ;;  %v4719_v21 = vrot.slane %v23450_v48, 7 }
 0x50d   :  { %v3225_v2 = vadd.f32 %v23441_v35, %v3223_v50 }
 0x50f   :  { %v17297_v47 = vmul.f32 -1.442695, %v3225_v2 }
 0x53a   :  { %v4210_v18 = vpop.f32.mrb[6].mxu0  ;;  %v4702_v22 = vpop.f32.mrb[20].mxu1 }
 0x53b   :  { %v4215_v61 = vrot.slane %v4210_v18, 7  ;;  %v19081_v20 = vpop.f32.mrb[7].mxu0  ;;  %v19147_v40 = vpop.f32.mrb[21].mxu1  ;;  %v4707_v39 = vrot.slane %v4702_v22, 7 }
 0x53d   :  { %4216 = vrot.lane.b32.xlu1 %v4215_v61, %s22680_s25 }
 0x541   :  { %3719 = vrot.lane.b32.xlu1 %v3718_v32, %s22679_s0 }
 0x545   :  { %4708 = vrot.lane.b32.xlu1 %v4707_v39, %s22681_s2 }
 0x5af   :  { %v4217_v28 = vpop.permute.xlu1 %4216 }
 0x5b0   :  { %v4219_v7 = vadd.f32 %v23441_v35, %v4217_v28 }
 0x5b2   :  { %22488 = vtanh.f32 %v4219_v7 }
 0x5b3   :  { %22490 = vpow2.f32 %v17297_v47  ;;  %v3720_v46 = vpop.permute.xlu1 %3719 }
 0x5b4   :  { %v3722_v43 = vadd.f32 %v23441_v35, %v3720_v46 }
 0x5b6   :  { %v17298_v60 = vmul.f32 -1.442695, %v3722_v43 }
 0x5b7   :  { %v4709_v22 = vpop.permute.xlu1 %4708 }
 0x5b8   :  { %v4711_v61 = vadd.f32 %v23441_v35, %v4709_v22 }
 0x5ba   :  { %v17299_v20 = vmul.f32 -1.442695, %v4711_v61 }
 0x5bc   :  { %v22489_v13 = vpop.eup %22488 }
 0x5bd   :  { %4723 = vrot.lane.b32.xlu0 %v22489_v13, %s22680_s25  ;;  %v22491_v34 = vpop.eup %22490 }
 0x5be   :  { %v3229_v4 = vadd.f32 1.0, %v22491_v34 }
 0x5c0   :  { %22492 = vrcp.f32 %v3229_v4 }
 0x5c1   :  { %22494 = vpow2.f32 %v17298_v60 }
 0x5ca   :  { %v22493_v54 = vpop.eup %22492 }
 0x5cb   :  { %v22495_v16 = vpop.eup %22494 }
 0x5cc   :  { %v3726_v41 = vadd.f32 1.0, %v22495_v16 }
 0x5ce   :  { %22496 = vrcp.f32 %v3726_v41 }
 0x5d8   :  { %v22497_v24 = vpop.eup %22496 }
 0x5d9   :  { %v4721_v42 = vmul.f32 %v22497_v24, %v4719_v21 }
 0x62f   :  { %v4724_v8 = vpop.permute.xlu0 %4723 }
 0x630   :  { %v4726_v12 = vmul.f32 %v22493_v54, %v4724_v8 }
 0x632   :  { %4728 = vrot.lane.b32.xlu0 %v4726_v12, %s22679_s0 }
 0x6a4   :  { %v4729_v14 = vpop.permute.xlu0 %4728 }
 0x6a5   :  { %v23646_v58 = vadd.f32 %v4729_v14, %v4721_v42 }
 0x6a7   :  { %22498 = vtanh.f32 %v23646_v58 }
 0x6a8   :  { %22500 = vpow2.f32 %v17299_v20 }
 0x6b1   :  { %v22499_v18 = vpop.eup %22498 }
 0x6b2   :  { %4734 = vrot.lane.b32.xlu0 %v22499_v18, %s22680_s25  ;;  %v22501_v40 = vpop.eup %22500 }
 0x6b3   :  { %v4715_v32 = vadd.f32 1.0, %v22501_v40 }
 0x6b5   :  { %22502 = vrcp.f32 %v4715_v32 }
 0x6bf   :  { %v22503_v39 = vpop.eup %22502 }
 0x724   :  { %v4735_v28 = vpop.permute.xlu0 %4734 }
 0x725   :  { %v4737_v48 = vmul.f32 %v22503_v39, %v4735_v28 }
 0x727   :  { %v4739_v7 = vrot.slane %v4737_v48, 1 }
 0x729   :  { %4740 = vrot.lane.b32.xlu1 %v4739_v7, %s22679_s0 }
 0x79b   :  { %v4741_v13 = vpop.permute.xlu1 %4740 }
 0x79c   :  { %v4742_v50 = vsel %vm736_vm1, %v4741_v13, 0 }
 0x79d   :  { %v23653_v2 = vand.u32 4294901760, %v4742_v50 }
 0x79f   :  { %v23656_v47 = vsub.f32 %v4742_v50, %v23653_v2 }
 0x7a1   :  { %v23659_v34 = vand.u32 4294901760, %v23656_v47 }
 0x7a3   :  { %v4816_v4 = vsub.f32 %v23656_v47, %v23659_v34 }
 0x7a5   :  { %v23663_v54 = vand.u32 4294901760, %v4816_v4 }
 0x7a7   :  { %19157 = vmatmul.mubr.f32.vlgmr.msra.gmra.mrb[8].mxu0 %v23663_v54  ;;  %19223 = vmatmul.mubr.f32.vlgmr.msra.gmra.mrb[22].mxu1 %v23663_v54 }
 0x7a8   :  { %21238 = vmatpush3.bf16.msra.mxu0 %v22946_v9  ;;  %21274 = vmatpush3.bf16.msra.mxu1 %v23141_v37 }
 0x7a9   :  { %21239 = vmatprep.subr.bf16.mxu0 %v22676_v0  ;;  %21275 = vmatprep.subr.bf16.mxu1 %v22676_v0 }
 0x7aa   :  { %19167 = vmatprep.mubr.msk.f32.mxu0 %vm22677_vm0, %v22678_v1  ;;  %19233 = vmatprep.mubr.msk.f32.mxu1 %vm22677_vm0, %v22678_v1 }
 0x7ac   :  { %21241 = vmatpush3.bf16.msra.mxu0 %v22957_v19  ;;  %21277 = vmatpush3.bf16.msra.mxu1 %v23148_v62 }
 0x7ad   :  { %21242 = vmatprep.subr.bf16.mxu0 %v22676_v0  ;;  %21278 = vmatprep.subr.bf16.mxu1 %v22676_v0 }
 0x7af   :  { %19168 = vmatmul.mubr.f32.vlgmr.msra.gmra.mrb[8].mxu0 %v23653_v2  ;;  %19234 = vmatmul.mubr.f32.vlgmr.msra.gmra.mrb[22].mxu1 %v23653_v2 }
 0x7b0   :  { %21244 = vmatpush3.bf16.msra.mxu0 %v22986_v25  ;;  %21280 = vmatpush3.bf16.msra.mxu1 %v23158_v38 }
 0x7b1   :  { %21245 = vmatprep.subr.bf16.mxu0 %v22676_v0  ;;  %21281 = vmatprep.subr.bf16.mxu1 %v22676_v0 }
 0x7b2   :  { %19178 = vmatprep.mubr.msk.f32.mxu0 %vm22677_vm0, %v22678_v1  ;;  %19244 = vmatprep.mubr.msk.f32.mxu1 %vm22677_vm0, %v22678_v1 }
 0x7b4   :  { %21247 = vmatpush3.bf16.msra.mxu0 %v23015_v52  ;;  %21283 = vmatpush3.bf16.msra.mxu1 %v23167_v44 }
 0x7b5   :  { %21248 = vmatprep.subr.bf16.mxu0 %v22676_v0  ;;  %21284 = vmatprep.subr.bf16.mxu1 %v22676_v0 }
 0x7b7   :  { %19179 = vmatmul.mubr.f32.vlgmr.msra.gmra.mrb[8].mxu0 %v23656_v47  ;;  %19245 = vmatmul.mubr.f32.vlgmr.msra.gmra.mrb[22].mxu1 %v23656_v47 }
 0x7b8   :  { %21250 = vmatpush3.bf16.msra.mxu0 %v23039_v53  ;;  %21286 = vmatpush3.bf16.msra.mxu1 %v23108_v59 }
 0x7b9   :  { %21251 = vmatprep.subr.bf16.mxu0 %v22676_v0  ;;  %21287 = vmatprep.subr.bf16.mxu1 %v22676_v0 }
 0x7ba   :  { %19189 = vmatprep.mubr.msk.f32.mxu0 %vm22677_vm0, %v22678_v1  ;;  %19255 = vmatprep.mubr.msk.f32.mxu1 %vm22677_vm0, %v22678_v1 }
 0x7bc   :  { %21253 = vmatpush3.bf16.msra.mxu0 %v23051_v5  ;;  %21289 = vmatpush3.bf16.msra.mxu1 %v23123_v49 }
 0x7bd   :  { %21254 = vmatprep.subr.bf16.mxu0 %v22676_v0  ;;  %21290 = vmatprep.subr.bf16.mxu1 %v22676_v0 }
 0x7bf   :  { %19190 = vmatmul.mubr.f32.vlgmr.msra.gmra.mrb[8].mxu0 %v23659_v34  ;;  %19256 = vmatmul.mubr.f32.vlgmr.msra.gmra.mrb[22].mxu1 %v23659_v34 }
 0x7c0   :  { %21256 = vmatpush3.bf16.msra.mxu0 %v23067_v31  ;;  %21292 = vmatpush3.bf16.msra.mxu1 %v23190_v23 }
 0x7c1   :  { %21257 = vmatprep.subr.bf16.mxu0 %v22676_v0  ;;  %21293 = vmatprep.subr.bf16.mxu1 %v22676_v0 }
 0x7c2   :  { %19200 = vmatprep.mubr.msk.f32.mxu0 %vm22677_vm0, %v22678_v1  ;;  %19266 = vmatprep.mubr.msk.f32.mxu1 %vm22677_vm0, %v22678_v1 }
 0x7c4   :  { %21259 = vmatpush3.bf16.msra.mxu0 %v23079_v55  ;;  %21295 = vmatpush3.bf16.msra.mxu1 %v23203_v36 }
 0x7c5   :  { %21260 = vmatprep.subr.bf16.mxu0 %v22676_v0  ;;  %21296 = vmatprep.subr.bf16.mxu1 %v22676_v0 }
 0x7c7   :  { %19201 = vmatmul.mubr.f32.vlgmr.msra.gmra.mrb[8].mxu0 %v23653_v2  ;;  %19267 = vmatmul.mubr.f32.vlgmr.msra.gmra.mrb[22].mxu1 %v23653_v2 }
 0x7c8   :  { %21262 = vmatpush3.bf16.msra.mxu0 %v23039_v53  ;;  %21298 = vmatpush3.bf16.msra.mxu1 %v23108_v59 }
 0x7c9   :  { %21263 = vmatprep.subr.bf16.mxu0 %v22676_v0  ;;  %21299 = vmatprep.subr.bf16.mxu1 %v22676_v0 }
 0x7ca   :  { %19211 = vmatprep.mubr.msk.f32.mxu0 %vm22677_vm0, %v22678_v1  ;;  %19277 = vmatprep.mubr.msk.f32.mxu1 %vm22677_vm0, %v22678_v1 }
 0x7cc   :  { %21265 = vmatpush3.bf16.msra.mxu0 %v23051_v5  ;;  %21301 = vmatpush3.bf16.msra.mxu1 %v23123_v49 }
 0x7cd   :  { %21302 = vmatprep.subr.bf16.mxu0 %v22676_v0  ;;  %21338 = vmatprep.subr.bf16.mxu1 %v22676_v0 }
 0x7cf   :  { %19212 = vmatmul.mubr.f32.vlgmr.msra.gmra.mrb[8].mxu0 %v23653_v2  ;;  %19278 = vmatmul.mubr.f32.vlgmr.msra.gmra.mrb[22].mxu1 %v23653_v2 }
 0x7d0   :  { %21304 = vmatpush3.bf16.msra.mxu0 %v23232_v11  ;;  %21340 = vmatpush3.bf16.msra.mxu1 %v23349_v33 }
 0x7d1   :  { %21305 = vmatprep.subr.bf16.mxu0 %v22676_v0  ;;  %21341 = vmatprep.subr.bf16.mxu1 %v22676_v0 }
 0x7d2   :  { %19288 = vmatprep.mubr.msk.f32.mxu0 %vm22677_vm0, %v22678_v1  ;;  %19354 = vmatprep.mubr.msk.f32.mxu1 %vm22677_vm0, %v22678_v1 }
 0x7d4   :  { %21307 = vmatpush3.bf16.msra.mxu0 %v23247_v29  ;;  %21343 = vmatpush3.bf16.msra.mxu1 %v23361_v3 }
 0x7d5   :  { %21308 = vmatprep.subr.bf16.mxu0 %v22676_v0  ;;  %21344 = vmatprep.subr.bf16.mxu1 %v22676_v0 }
 0x7d7   :  { %19289 = vmatmul.mubr.f32.vlgmr.msra.gmra.mrb[10].mxu0 %v23663_v54  ;;  %19355 = vmatmul.mubr.f32.vlgmr.msra.gmra.mrb[24].mxu1 %v23663_v54 }
 0x7d8   :  { %21310 = vmatpush3.bf16.msra.mxu0 %v23261_v30  ;;  %21346 = vmatpush3.bf16.msra.mxu1 %v23371_v51 }
 0x7d9   :  { %21311 = vmatprep.subr.bf16.mxu0 %v22676_v0  ;;  %21347 = vmatprep.subr.bf16.mxu1 %v22676_v0 }
 0x7da   :  { %19299 = vmatprep.mubr.msk.f32.mxu0 %vm22677_vm0, %v22678_v1  ;;  %19365 = vmatprep.mubr.msk.f32.mxu1 %vm22677_vm0, %v22678_v1 }
 0x7dc   :  { %21313 = vmatpush3.bf16.msra.mxu0 %v23268_v57  ;;  %21349 = vmatpush3.bf16.msra.mxu1 %v23379_v6 }
 0x7dd   :  { %21314 = vmatprep.subr.bf16.mxu0 %v22676_v0  ;;  %21350 = vmatprep.subr.bf16.mxu1 %v22676_v0 }
 0x7df   :  { %19300 = vmatmul.mubr.f32.vlgmr.msra.gmra.mrb[10].mxu0 %v23653_v2  ;;  %19366 = vmatmul.mubr.f32.vlgmr.msra.gmra.mrb[24].mxu1 %v23653_v2 }
 0x7e0   :  { %21316 = vmatpush3.bf16.msra.mxu0 %v23278_v17  ;;  %21352 = vmatpush3.bf16.msra.mxu1 %v23391_v56 }
 0x7e1   :  { %21317 = vmatprep.subr.bf16.mxu0 %v22676_v0  ;;  %21353 = vmatprep.subr.bf16.mxu1 %v22676_v0 }
 0x7e2   :  { %19310 = vmatprep.mubr.msk.f32.mxu0 %vm22677_vm0, %v22678_v1  ;;  %19376 = vmatprep.mubr.msk.f32.mxu1 %vm22677_vm0, %v22678_v1 }
 0x7e4   :  { %21319 = vmatpush3.bf16.msra.mxu0 %v23288_v10  ;;  %21355 = vmatpush3.bf16.msra.mxu1 %v23398_v63 }
 0x7e5   :  { %21320 = vmatprep.subr.bf16.mxu0 %v22676_v0  ;;  %21356 = vmatprep.subr.bf16.mxu1 %v22676_v0 }
 0x7e7   :  { %19311 = vmatmul.mubr.f32.vlgmr.msra.gmra.mrb[10].mxu0 %v23656_v47  ;;  %19377 = vmatmul.mubr.f32.vlgmr.msra.gmra.mrb[24].mxu1 %v23656_v47 }
 0x7e8   :  { %21322 = vmatpush3.bf16.msra.mxu0 %v23232_v11  ;;  %21358 = vmatpush3.bf16.msra.mxu1 %v23349_v33 }
 0x7e9   :  { %21323 = vmatprep.subr.bf16.mxu0 %v22676_v0  ;;  %21359 = vmatprep.subr.bf16.mxu1 %v22676_v0 }
 0x7ea   :  { %19321 = vmatprep.mubr.msk.f32.mxu0 %vm22677_vm0, %v22678_v1  ;;  %19387 = vmatprep.mubr.msk.f32.mxu1 %vm22677_vm0, %v22678_v1 }
 0x7ec   :  { %21325 = vmatpush3.bf16.msra.mxu0 %v23247_v29  ;;  %21361 = vmatpush3.bf16.msra.mxu1 %v23361_v3 }
 0x7ed   :  { %21326 = vmatprep.subr.bf16.mxu0 %v22676_v0  ;;  %21362 = vmatprep.subr.bf16.mxu1 %v22676_v0 }
 0x7ef   :  { %19322 = vmatmul.mubr.f32.vlgmr.msra.gmra.mrb[10].mxu0 %v23659_v34  ;;  %19388 = vmatmul.mubr.f32.vlgmr.msra.gmra.mrb[24].mxu1 %v23659_v34 }
 0x7f0   :  { %21328 = vmatpush3.bf16.msra.mxu0 %v23313_v15  ;;  %21364 = vmatpush3.bf16.msra.mxu1 %v23411_v26 }
 0x7f1   :  { %21329 = vmatprep.subr.bf16.mxu0 %v22676_v0  ;;  %21365 = vmatprep.subr.bf16.mxu1 %v22676_v0 }
 0x7f2   :  { %19332 = vmatprep.mubr.msk.f32.mxu0 %vm22677_vm0, %v22678_v1  ;;  %19398 = vmatprep.mubr.msk.f32.mxu1 %vm22677_vm0, %v22678_v1 }
 0x7f4   :  { %21331 = vmatpush3.bf16.msra.mxu0 %v23322_v45  ;;  %21367 = vmatpush3.bf16.msra.mxu1 %v23416_v27 }
 0x7f5   :  { %21332 = vmatprep.subr.bf16.mxu0 %v22676_v0  ;;  %21368 = vmatprep.subr.bf16.mxu1 %v22676_v0 }
 0x7f7   :  { %19333 = vmatmul.mubr.f32.vlgmr.msra.gmra.mrb[10].mxu0 %v23653_v2  ;;  %19399 = vmatmul.mubr.f32.vlgmr.msra.gmra.mrb[24].mxu1 %v23653_v2 }
 0x7f8   :  { %21334 = vmatpush3.bf16.msra.mxu0 %v23232_v11  ;;  %21370 = vmatpush3.bf16.msra.mxu1 %v23349_v33 }
 0x7f9   :  { %21335 = vmatprep.subr.bf16.mxu0 %v22676_v0  ;;  %21371 = vmatprep.subr.bf16.mxu1 %v22676_v0 }
 0x7fa   :  { %19343 = vmatprep.mubr.msk.f32.mxu0 %vm22677_vm0, %v22678_v1  ;;  %19409 = vmatprep.mubr.msk.f32.mxu1 %vm22677_vm0, %v22678_v1 }
 0x7fc   :  { %21337 = vmatpush3.bf16.msra.mxu0 %v23247_v29  ;;  %21373 = vmatpush3.bf16.msra.mxu1 %v23361_v3 }
 0x7fd   :  { %21374 = vmatprep.subr.bf16.mxu0 %v22676_v0  ;;  %21410 = vmatprep.subr.bf16.mxu1 %v22676_v0 }
 0x7ff   :  { %19344 = vmatmul.mubr.f32.vlgmr.msra.gmra.mrb[10].mxu0 %v23653_v2  ;;  %19410 = vmatmul.mubr.f32.vlgmr.msra.gmra.mrb[24].mxu1 %v23653_v2 }
 0x800   :  { %21376 = vmatpush3.bf16.msra.mxu0 %v23039_v53  ;;  %21412 = vmatpush3.bf16.msra.mxu1 %v23108_v59 }
 0x801   :  { %21377 = vmatprep.subr.bf16.mxu0 %v22676_v0  ;;  %21413 = vmatprep.subr.bf16.mxu1 %v22676_v0 }
 0x802   :  { %19420 = vmatprep.mubr.msk.f32.mxu0 %vm22677_vm0, %v22678_v1  ;;  %19486 = vmatprep.mubr.msk.f32.mxu1 %vm22677_vm0, %v22678_v1 }
 0x804   :  { %21379 = vmatpush3.bf16.msra.mxu0 %v23051_v5  ;;  %21415 = vmatpush3.bf16.msra.mxu1 %v23123_v49 }
 0x805   :  { %21380 = vmatprep.subr.bf16.mxu0 %v22676_v0  ;;  %21416 = vmatprep.subr.bf16.mxu1 %v22676_v0 }
 0x8a2   :  { %v5225_v8 = vpop.f32.mrb[8].mxu0  ;;  %v5720_v12 = vpop.f32.mrb[22].mxu1 }
 0x8a3   :  { %v19213_v46 = vpop.f32.mrb[9].mxu0  ;;  %v19279_v43 = vpop.f32.mrb[23].mxu1  ;;  %v5725_v42 = vrot.slane %v5720_v12, 6  ;;  %v5230_v20 = vrot.slane %v5225_v8, 6  ;;  %v6726_v8 = vrot.slane %v23646_v58, 7 }
 0x8a5   :  { %v5232_v40 = vadd.f32 %v23441_v35, %v5230_v20 }
 0x8a7   :  { %v17300_v32 = vmul.f32 -1.442695, %v5232_v40 }
 0x8d2   :  { %v6217_v60 = vpop.f32.mrb[10].mxu0  ;;  %v6709_v16 = vpop.f32.mrb[24].mxu1 }
 0x8d3   :  { %v6222_v41 = vrot.slane %v6217_v60, 6  ;;  %v19345_v24 = vpop.f32.mrb[11].mxu0  ;;  %v19411_v21 = vpop.f32.mrb[25].mxu1  ;;  %v6714_v14 = vrot.slane %v6709_v16, 6 }
 0x8d5   :  { %6223 = vrot.lane.b32.xlu0 %v6222_v41, %s22680_s25 }
 0x8d9   :  { %5726 = vrot.lane.b32.xlu0 %v5725_v42, %s22679_s0 }
 0x8dd   :  { %6715 = vrot.lane.b32.xlu0 %v6714_v14, %s22681_s2 }
 0x947   :  { %v6224_v18 = vpop.permute.xlu0 %6223 }
 0x948   :  { %v6226_v22 = vadd.f32 %v23441_v35, %v6224_v18 }
 0x94a   :  { %22504 = vtanh.f32 %v6226_v22 }
 0x94b   :  { %22506 = vpow2.f32 %v17300_v32  ;;  %v5727_v50 = vpop.permute.xlu0 %5726 }
 0x94c   :  { %v5729_v2 = vadd.f32 %v23441_v35, %v5727_v50 }
 0x94e   :  { %v17301_v47 = vmul.f32 -1.442695, %v5729_v2 }
 0x94f   :  { %v6716_v16 = vpop.permute.xlu0 %6715 }
 0x950   :  { %v6718_v41 = vadd.f32 %v23441_v35, %v6716_v16 }
 0x952   :  { %v17302_v24 = vmul.f32 -1.442695, %v6718_v41 }
 0x954   :  { %v22505_v61 = vpop.eup %22504 }
 0x955   :  { %6730 = vrot.lane.b32.xlu1 %v22505_v61, %s22680_s25  ;;  %v22507_v39 = vpop.eup %22506 }
 0x956   :  { %v5236_v28 = vadd.f32 1.0, %v22507_v39 }
 0x958   :  { %22508 = vrcp.f32 %v5236_v28 }
 0x959   :  { %22510 = vpow2.f32 %v17301_v47 }
 0x962   :  { %v22509_v48 = vpop.eup %22508 }
 0x963   :  { %v22511_v34 = vpop.eup %22510 }
 0x964   :  { %v5733_v4 = vadd.f32 1.0, %v22511_v34 }
 0x966   :  { %22512 = vrcp.f32 %v5733_v4 }
 0x970   :  { %v22513_v54 = vpop.eup %22512 }
 0x971   :  { %v6728_v12 = vmul.f32 %v22513_v54, %v6726_v8 }
 0x9c7   :  { %v6731_v7 = vpop.permute.xlu1 %6730 }
 0x9c8   :  { %v6733_v13 = vmul.f32 %v22509_v48, %v6731_v7 }
 0x9ca   :  { %6735 = vrot.lane.b32.xlu1 %v6733_v13, %s22679_s0 }
 0xa3c   :  { %v6736_v46 = vpop.permute.xlu1 %6735 }
 0xa3d   :  { %v23842_v43 = vadd.f32 %v6736_v46, %v6728_v12 }
 0xa3f   :  { %22514 = vtanh.f32 %v23842_v43 }
 0xa40   :  { %22516 = vpow2.f32 %v17302_v24 }
 0xa49   :  { %v22515_v60 = vpop.eup %22514 }
 0xa4a   :  { %6741 = vrot.lane.b32.xlu1 %v22515_v60, %s22680_s25  ;;  %v22517_v21 = vpop.eup %22516 }
 0xa4b   :  { %v6722_v42 = vadd.f32 1.0, %v22517_v21 }
 0xa4d   :  { %22518 = vrcp.f32 %v6722_v42 }
 0xa57   :  { %v22519_v14 = vpop.eup %22518 }
 0xabc   :  { %v6742_v18 = vpop.permute.xlu1 %6741 }
 0xabd   :  { %v6744_v58 = vmul.f32 %v22519_v14, %v6742_v18 }
 0xabf   :  { %v6746_v22 = vrot.slane %v6744_v58, 2 }
 0xac1   :  { %6747 = vrot.lane.b32.xlu0 %v6746_v22, %s22679_s0 }
 0xb33   :  { %v6748_v61 = vpop.permute.xlu0 %6747 }
 0xb34   :  { %v6749_v20 = vsel %vm736_vm1, %v6748_v61, 0 }
 0xb35   :  { %v23849_v40 = vand.u32 4294901760, %v6749_v20 }
 0xb37   :  { %v23852_v32 = vsub.f32 %v6749_v20, %v23849_v40 }
 0xb39   :  { %v23855_v39 = vand.u32 4294901760, %v23852_v32 }
 0xb3b   :  { %v6823_v28 = vsub.f32 %v23852_v32, %v23855_v39 }
 0xb3d   :  { %v23859_v48 = vand.u32 4294901760, %v6823_v28 }
 0xb3f   :  { %19421 = vmatmul.mubr.f32.vlgmr.msra.gmra.mrb[12].mxu0 %v23859_v48  ;;  %19487 = vmatmul.mubr.f32.vlgmr.msra.gmra.mrb[26].mxu1 %v23859_v48 }
 0xb40   :  { %21382 = vmatpush3.bf16.msra.mxu0 %v22946_v9  ;;  %21418 = vmatpush3.bf16.msra.mxu1 %v23141_v37 }
 0xb41   :  { %21383 = vmatprep.subr.bf16.mxu0 %v22676_v0  ;;  %21419 = vmatprep.subr.bf16.mxu1 %v22676_v0 }
 0xb42   :  { %19431 = vmatprep.mubr.msk.f32.mxu0 %vm22677_vm0, %v22678_v1  ;;  %19497 = vmatprep.mubr.msk.f32.mxu1 %vm22677_vm0, %v22678_v1 }
 0xb44   :  { %21385 = vmatpush3.bf16.msra.mxu0 %v22957_v19  ;;  %21421 = vmatpush3.bf16.msra.mxu1 %v23148_v62 }
 0xb45   :  { %21386 = vmatprep.subr.bf16.mxu0 %v22676_v0  ;;  %21422 = vmatprep.subr.bf16.mxu1 %v22676_v0 }
 0xb47   :  { %19432 = vmatmul.mubr.f32.vlgmr.msra.gmra.mrb[12].mxu0 %v23849_v40  ;;  %19498 = vmatmul.mubr.f32.vlgmr.msra.gmra.mrb[26].mxu1 %v23849_v40 }
 0xb48   :  { %21388 = vmatpush3.bf16.msra.mxu0 %v22986_v25  ;;  %21424 = vmatpush3.bf16.msra.mxu1 %v23158_v38 }
 0xb49   :  { %21389 = vmatprep.subr.bf16.mxu0 %v22676_v0  ;;  %21425 = vmatprep.subr.bf16.mxu1 %v22676_v0 }
 0xb4a   :  { %19442 = vmatprep.mubr.msk.f32.mxu0 %vm22677_vm0, %v22678_v1  ;;  %19508 = vmatprep.mubr.msk.f32.mxu1 %vm22677_vm0, %v22678_v1 }
 0xb4c   :  { %21391 = vmatpush3.bf16.msra.mxu0 %v23015_v52  ;;  %21427 = vmatpush3.bf16.msra.mxu1 %v23167_v44 }
 0xb4d   :  { %21392 = vmatprep.subr.bf16.mxu0 %v22676_v0  ;;  %21428 = vmatprep.subr.bf16.mxu1 %v22676_v0 }
 0xb4f   :  { %19443 = vmatmul.mubr.f32.vlgmr.msra.gmra.mrb[12].mxu0 %v23852_v32  ;;  %19509 = vmatmul.mubr.f32.vlgmr.msra.gmra.mrb[26].mxu1 %v23852_v32 }
 0xb50   :  { %21394 = vmatpush3.bf16.msra.mxu0 %v23039_v53  ;;  %21430 = vmatpush3.bf16.msra.mxu1 %v23108_v59 }
 0xb51   :  { %21395 = vmatprep.subr.bf16.mxu0 %v22676_v0  ;;  %21431 = vmatprep.subr.bf16.mxu1 %v22676_v0 }
 0xb52   :  { %19453 = vmatprep.mubr.msk.f32.mxu0 %vm22677_vm0, %v22678_v1  ;;  %19519 = vmatprep.mubr.msk.f32.mxu1 %vm22677_vm0, %v22678_v1 }
 0xb54   :  { %21397 = vmatpush3.bf16.msra.mxu0 %v23051_v5  ;;  %21433 = vmatpush3.bf16.msra.mxu1 %v23123_v49 }
 0xb55   :  { %21398 = vmatprep.subr.bf16.mxu0 %v22676_v0  ;;  %21434 = vmatprep.subr.bf16.mxu1 %v22676_v0 }
 0xb57   :  { %19454 = vmatmul.mubr.f32.vlgmr.msra.gmra.mrb[12].mxu0 %v23855_v39  ;;  %19520 = vmatmul.mubr.f32.vlgmr.msra.gmra.mrb[26].mxu1 %v23855_v39 }
 0xb58   :  { %21400 = vmatpush3.bf16.msra.mxu0 %v23067_v31  ;;  %21436 = vmatpush3.bf16.msra.mxu1 %v23190_v23 }
 0xb59   :  { %21401 = vmatprep.subr.bf16.mxu0 %v22676_v0  ;;  %21437 = vmatprep.subr.bf16.mxu1 %v22676_v0 }
 0xb5a   :  { %19464 = vmatprep.mubr.msk.f32.mxu0 %vm22677_vm0, %v22678_v1  ;;  %19530 = vmatprep.mubr.msk.f32.mxu1 %vm22677_vm0, %v22678_v1 }
 0xb5c   :  { %21403 = vmatpush3.bf16.msra.mxu0 %v23079_v55  ;;  %21439 = vmatpush3.bf16.msra.mxu1 %v23203_v36 }
 0xb5d   :  { %21404 = vmatprep.subr.bf16.mxu0 %v22676_v0  ;;  %21440 = vmatprep.subr.bf16.mxu1 %v22676_v0 }
 0xb5f   :  { %19465 = vmatmul.mubr.f32.vlgmr.msra.gmra.mrb[12].mxu0 %v23849_v40  ;;  %19531 = vmatmul.mubr.f32.vlgmr.msra.gmra.mrb[26].mxu1 %v23849_v40 }
 0xb60   :  { %21406 = vmatpush3.bf16.msra.mxu0 %v23039_v53  ;;  %21442 = vmatpush3.bf16.msra.mxu1 %v23108_v59 }
 0xb61   :  { %21407 = vmatprep.subr.bf16.mxu0 %v22676_v0  ;;  %21443 = vmatprep.subr.bf16.mxu1 %v22676_v0 }
 0xb62   :  { %19475 = vmatprep.mubr.msk.f32.mxu0 %vm22677_vm0, %v22678_v1  ;;  %19541 = vmatprep.mubr.msk.f32.mxu1 %vm22677_vm0, %v22678_v1 }
 0xb64   :  { %21409 = vmatpush3.bf16.msra.mxu0 %v23051_v5  ;;  %21445 = vmatpush3.bf16.msra.mxu1 %v23123_v49 }
 0xb65   :  { %21446 = vmatprep.subr.bf16.mxu0 %v22676_v0  ;;  %21482 = vmatprep.subr.bf16.mxu1 %v22676_v0 }
 0xb67   :  { %19476 = vmatmul.mubr.f32.vlgmr.msra.gmra.mrb[12].mxu0 %v23849_v40  ;;  %19542 = vmatmul.mubr.f32.vlgmr.msra.gmra.mrb[26].mxu1 %v23849_v40 }
 0xb68   :  { %21448 = vmatpush3.bf16.msra.mxu0 %v23232_v11  ;;  %21484 = vmatpush3.bf16.msra.mxu1 %v23349_v33 }
 0xb69   :  { %21449 = vmatprep.subr.bf16.mxu0 %v22676_v0  ;;  %21485 = vmatprep.subr.bf16.mxu1 %v22676_v0 }
 0xb6a   :  { %19552 = vmatprep.mubr.msk.f32.mxu0 %vm22677_vm0, %v22678_v1  ;;  %19618 = vmatprep.mubr.msk.f32.mxu1 %vm22677_vm0, %v22678_v1 }
 0xb6c   :  { %21451 = vmatpush3.bf16.msra.mxu0 %v23247_v29  ;;  %21487 = vmatpush3.bf16.msra.mxu1 %v23361_v3 }
 0xb6d   :  { %21452 = vmatprep.subr.bf16.mxu0 %v22676_v0  ;;  %21488 = vmatprep.subr.bf16.mxu1 %v22676_v0 }
 0xb6f   :  { %19553 = vmatmul.mubr.f32.vlgmr.msra.gmra.mrb[14].mxu0 %v23859_v48  ;;  %19619 = vmatmul.mubr.f32.vlgmr.msra.gmra.mrb[28].mxu1 %v23859_v48 }
 0xb70   :  { %21454 = vmatpush3.bf16.msra.mxu0 %v23261_v30  ;;  %21490 = vmatpush3.bf16.msra.mxu1 %v23371_v51 }
 0xb71   :  { %21455 = vmatprep.subr.bf16.mxu0 %v22676_v0  ;;  %21491 = vmatprep.subr.bf16.mxu1 %v22676_v0 }
 0xb72   :  { %19563 = vmatprep.mubr.msk.f32.mxu0 %vm22677_vm0, %v22678_v1  ;;  %19629 = vmatprep.mubr.msk.f32.mxu1 %vm22677_vm0, %v22678_v1 }
 0xb74   :  { %21457 = vmatpush3.bf16.msra.mxu0 %v23268_v57  ;;  %21493 = vmatpush3.bf16.msra.mxu1 %v23379_v6 }
 0xb75   :  { %21458 = vmatprep.subr.bf16.mxu0 %v22676_v0  ;;  %21494 = vmatprep.subr.bf16.mxu1 %v22676_v0 }
 0xb77   :  { %19564 = vmatmul.mubr.f32.vlgmr.msra.gmra.mrb[14].mxu0 %v23849_v40  ;;  %19630 = vmatmul.mubr.f32.vlgmr.msra.gmra.mrb[28].mxu1 %v23849_v40 }
 0xb78   :  { %21460 = vmatpush3.bf16.msra.mxu0 %v23278_v17  ;;  %21496 = vmatpush3.bf16.msra.mxu1 %v23391_v56 }
 0xb79   :  { %21461 = vmatprep.subr.bf16.mxu0 %v22676_v0  ;;  %21497 = vmatprep.subr.bf16.mxu1 %v22676_v0 }
 0xb7a   :  { %19574 = vmatprep.mubr.msk.f32.mxu0 %vm22677_vm0, %v22678_v1  ;;  %19640 = vmatprep.mubr.msk.f32.mxu1 %vm22677_vm0, %v22678_v1 }
 0xb7c   :  { %21463 = vmatpush3.bf16.msra.mxu0 %v23288_v10  ;;  %21499 = vmatpush3.bf16.msra.mxu1 %v23398_v63 }
 0xb7d   :  { %21464 = vmatprep.subr.bf16.mxu0 %v22676_v0  ;;  %21500 = vmatprep.subr.bf16.mxu1 %v22676_v0 }
 0xb7f   :  { %19575 = vmatmul.mubr.f32.vlgmr.msra.gmra.mrb[14].mxu0 %v23852_v32  ;;  %19641 = vmatmul.mubr.f32.vlgmr.msra.gmra.mrb[28].mxu1 %v23852_v32 }
 0xb80   :  { %21466 = vmatpush3.bf16.msra.mxu0 %v23232_v11  ;;  %21502 = vmatpush3.bf16.msra.mxu1 %v23349_v33 }
 0xb81   :  { %21467 = vmatprep.subr.bf16.mxu0 %v22676_v0  ;;  %21503 = vmatprep.subr.bf16.mxu1 %v22676_v0 }
 0xb82   :  { %19585 = vmatprep.mubr.msk.f32.mxu0 %vm22677_vm0, %v22678_v1  ;;  %19651 = vmatprep.mubr.msk.f32.mxu1 %vm22677_vm0, %v22678_v1 }
 0xb84   :  { %21469 = vmatpush3.bf16.msra.mxu0 %v23247_v29  ;;  %21505 = vmatpush3.bf16.msra.mxu1 %v23361_v3 }
 0xb85   :  { %21470 = vmatprep.subr.bf16.mxu0 %v22676_v0  ;;  %21506 = vmatprep.subr.bf16.mxu1 %v22676_v0 }
 0xb87   :  { %19586 = vmatmul.mubr.f32.vlgmr.msra.gmra.mrb[14].mxu0 %v23855_v39  ;;  %19652 = vmatmul.mubr.f32.vlgmr.msra.gmra.mrb[28].mxu1 %v23855_v39 }
 0xb88   :  { %21472 = vmatpush3.bf16.msra.mxu0 %v23313_v15  ;;  %21508 = vmatpush3.bf16.msra.mxu1 %v23411_v26 }
 0xb89   :  { %21473 = vmatprep.subr.bf16.mxu0 %v22676_v0  ;;  %21509 = vmatprep.subr.bf16.mxu1 %v22676_v0 }
 0xb8a   :  { %19596 = vmatprep.mubr.msk.f32.mxu0 %vm22677_vm0, %v22678_v1  ;;  %19662 = vmatprep.mubr.msk.f32.mxu1 %vm22677_vm0, %v22678_v1 }
 0xb8c   :  { %21475 = vmatpush3.bf16.msra.mxu0 %v23322_v45  ;;  %21511 = vmatpush3.bf16.msra.mxu1 %v23416_v27 }
 0xb8d   :  { %21476 = vmatprep.subr.bf16.mxu0 %v22676_v0  ;;  %21512 = vmatprep.subr.bf16.mxu1 %v22676_v0 }
 0xb8f   :  { %19597 = vmatmul.mubr.f32.vlgmr.msra.gmra.mrb[14].mxu0 %v23849_v40  ;;  %19663 = vmatmul.mubr.f32.vlgmr.msra.gmra.mrb[28].mxu1 %v23849_v40 }
 0xb90   :  { %21478 = vmatpush3.bf16.msra.mxu0 %v23232_v11  ;;  %21514 = vmatpush3.bf16.msra.mxu1 %v23349_v33 }
 0xb91   :  { %21479 = vmatprep.subr.bf16.mxu0 %v22676_v0  ;;  %21515 = vmatprep.subr.bf16.mxu1 %v22676_v0 }
 0xb92   :  { %19607 = vmatprep.mubr.msk.f32.mxu0 %vm22677_vm0, %v22678_v1  ;;  %19673 = vmatprep.mubr.msk.f32.mxu1 %vm22677_vm0, %v22678_v1 }
 0xb94   :  { %21481 = vmatpush3.bf16.msra.mxu0 %v23247_v29  ;;  %21517 = vmatpush3.bf16.msra.mxu1 %v23361_v3 }
 0xb95   :  { %21518 = vmatprep.subr.bf16.mxu0 %v22676_v0  ;;  %21554 = vmatprep.subr.bf16.mxu1 %v22676_v0 }
 0xb97   :  { %19608 = vmatmul.mubr.f32.vlgmr.msra.gmra.mrb[14].mxu0 %v23849_v40  ;;  %19674 = vmatmul.mubr.f32.vlgmr.msra.gmra.mrb[28].mxu1 %v23849_v40 }
 0xb98   :  { %21520 = vmatpush3.bf16.msra.mxu0 %v23039_v53  ;;  %21556 = vmatpush3.bf16.msra.mxu1 %v23108_v59 }
 0xb99   :  { %21521 = vmatprep.subr.bf16.mxu0 %v22676_v0  ;;  %21557 = vmatprep.subr.bf16.mxu1 %v22676_v0 }
 0xb9a   :  { %19684 = vmatprep.mubr.msk.f32.mxu0 %vm22677_vm0, %v22678_v1  ;;  %19750 = vmatprep.mubr.msk.f32.mxu1 %vm22677_vm0, %v22678_v1 }
 0xb9c   :  { %21523 = vmatpush3.bf16.msra.mxu0 %v23051_v5  ;;  %21559 = vmatpush3.bf16.msra.mxu1 %v23123_v49 }
 0xb9d   :  { %21524 = vmatprep.subr.bf16.mxu0 %v22676_v0  ;;  %21560 = vmatprep.subr.bf16.mxu1 %v22676_v0 }
 0xc3a   :  { %v7232_v7 = vpop.f32.mrb[12].mxu0  ;;  %v7727_v13 = vpop.f32.mrb[26].mxu1 }
 0xc3b   :  { %v19477_v50 = vpop.f32.mrb[13].mxu0  ;;  %v19543_v2 = vpop.f32.mrb[27].mxu1  ;;  %v7732_v12 = vrot.slane %v7727_v13, 5  ;;  %v7237_v24 = vrot.slane %v7232_v7, 5  ;;  %v8733_v7 = vrot.slane %v23842_v43, 7 }
 0xc3d   :  { %v7239_v21 = vadd.f32 %v23441_v35, %v7237_v24 }
 0xc3f   :  { %v17303_v42 = vmul.f32 -1.442695, %v7239_v21 }
 0xc6a   :  { %v8224_v47 = vpop.f32.mrb[14].mxu0  ;;  %v8716_v34 = vpop.f32.mrb[28].mxu1 }
 0xc6b   :  { %v8229_v4 = vrot.slane %v8224_v47, 5  ;;  %v19609_v54 = vpop.f32.mrb[15].mxu0  ;;  %v19675_v8 = vpop.f32.mrb[29].mxu1  ;;  %v8721_v46 = vrot.slane %v8716_v34, 5 }
 0xc6d   :  { %8230 = vrot.lane.b32.xlu1 %v8229_v4, %s22680_s25 }
 0xc71   :  { %7733 = vrot.lane.b32.xlu1 %v7732_v12, %s22679_s0 }
 0xc75   :  { %8722 = vrot.lane.b32.xlu1 %v8721_v46, %s22681_s2 }
 0xcdf   :  { %v8231_v60 = vpop.permute.xlu1 %8230 }
 0xce0   :  { %v8233_v16 = vadd.f32 %v23441_v35, %v8231_v60 }
 0xce2   :  { %22520 = vtanh.f32 %v8233_v16 }
 0xce3   :  { %22522 = vpow2.f32 %v17303_v42  ;;  %v7734_v20 = vpop.permute.xlu1 %7733 }
 0xce4   :  { %v7736_v40 = vadd.f32 %v23441_v35, %v7734_v20 }
 0xce6   :  { %v17304_v32 = vmul.f32 -1.442695, %v7736_v40 }
 0xce7   :  { %v8723_v34 = vpop.permute.xlu1 %8722 }
 0xce8   :  { %v8725_v4 = vadd.f32 %v23441_v35, %v8723_v34 }
 0xcea   :  { %v17305_v54 = vmul.f32 -1.442695, %v8725_v4 }
 0xcec   :  { %v22521_v41 = vpop.eup %22520 }
 0xced   :  { %8737 = vrot.lane.b32.xlu0 %v22521_v41, %s22680_s25  ;;  %v22523_v14 = vpop.eup %22522 }
 0xcee   :  { %v7243_v18 = vadd.f32 1.0, %v22523_v14 }
 0xcf0   :  { %22524 = vrcp.f32 %v7243_v18 }
 0xcf1   :  { %22526 = vpow2.f32 %v17304_v32 }
 0xcfa   :  { %v22525_v58 = vpop.eup %22524 }
 0xcfb   :  { %v22527_v39 = vpop.eup %22526 }
 0xcfc   :  { %v7740_v28 = vadd.f32 1.0, %v22527_v39 }
 0xcfe   :  { %22528 = vrcp.f32 %v7740_v28 }
 0xd08   :  { %v22529_v48 = vpop.eup %22528 }
 0xd09   :  { %v8735_v13 = vmul.f32 %v22529_v48, %v8733_v7 }
 0xd5f   :  { %v8738_v22 = vpop.permute.xlu0 %8737 }
 0xd60   :  { %v8740_v61 = vmul.f32 %v22525_v58, %v8738_v22 }
 0xd62   :  { %8742 = vrot.lane.b32.xlu0 %v8740_v61, %s22679_s0 }
 0xdd4   :  { %v8743_v50 = vpop.permute.xlu0 %8742 }
 0xdd5   :  { %v24038_v2 = vadd.f32 %v8743_v50, %v8735_v13 }
 0xdd7   :  { %22530 = vtanh.f32 %v24038_v2 }
 0xdd8   :  { %22532 = vpow2.f32 %v17305_v54 }
 0xde1   :  { %v22531_v47 = vpop.eup %22530 }
 0xde2   :  { %8748 = vrot.lane.b32.xlu0 %v22531_v47, %s22680_s25  ;;  %v22533_v8 = vpop.eup %22532 }
 0xde3   :  { %v8729_v12 = vadd.f32 1.0, %v22533_v8 }
 0xde5   :  { %22534 = vrcp.f32 %v8729_v12 }
 0xdef   :  { %v22535_v46 = vpop.eup %22534 }
 0xe54   :  { %v8749_v60 = vpop.permute.xlu0 %8748 }
 0xe55   :  { %v8751_v43 = vmul.f32 %v22535_v46, %v8749_v60 }
 0xe57   :  { %v8753_v16 = vrot.slane %v8751_v43, 3 }
 0xe59   :  { %8754 = vrot.lane.b32.xlu1 %v8753_v16, %s22679_s0 }
 0xecb   :  { %v8755_v41 = vpop.permute.xlu1 %8754 }
 0xecc   :  { %v8756_v24 = vsel %vm736_vm1, %v8755_v41, 0 }
 0xecd   :  { %v24045_v21 = vand.u32 4294901760, %v8756_v24 }
 0xecf   :  { %v24048_v42 = vsub.f32 %v8756_v24, %v24045_v21 }
 0xed1   :  { %v24051_v14 = vand.u32 4294901760, %v24048_v42 }
 0xed3   :  { %v8830_v18 = vsub.f32 %v24048_v42, %v24051_v14 }
 0xed5   :  { %v24055_v58 = vand.u32 4294901760, %v8830_v18 }
 0xed7   :  { %19685 = vmatmul.mubr.f32.vlgmr.msra.gmra.mrb[16].mxu0 %v24055_v58  ;;  %19751 = vmatmul.mubr.f32.vlgmr.msra.gmra.mrb[30].mxu1 %v24055_v58 }
 0xed8   :  { %21526 = vmatpush3.bf16.msra.mxu0 %v22946_v9  ;;  %21562 = vmatpush3.bf16.msra.mxu1 %v23141_v37 }
 0xed9   :  { %21527 = vmatprep.subr.bf16.mxu0 %v22676_v0  ;;  %21563 = vmatprep.subr.bf16.mxu1 %v22676_v0 }
 0xeda   :  { %19695 = vmatprep.mubr.msk.f32.mxu0 %vm22677_vm0, %v22678_v1  ;;  %19761 = vmatprep.mubr.msk.f32.mxu1 %vm22677_vm0, %v22678_v1 }
 0xedc   :  { %21529 = vmatpush3.bf16.msra.mxu0 %v22957_v19  ;;  %21565 = vmatpush3.bf16.msra.mxu1 %v23148_v62 }
 0xedd   :  { %21530 = vmatprep.subr.bf16.mxu0 %v22676_v0  ;;  %21566 = vmatprep.subr.bf16.mxu1 %v22676_v0 }
 0xedf   :  { %19696 = vmatmul.mubr.f32.vlgmr.msra.gmra.mrb[16].mxu0 %v24045_v21  ;;  %19762 = vmatmul.mubr.f32.vlgmr.msra.gmra.mrb[30].mxu1 %v24045_v21 }
 0xee0   :  { %21532 = vmatpush3.bf16.msra.mxu0 %v22986_v25  ;;  %21568 = vmatpush3.bf16.msra.mxu1 %v23158_v38 }
 0xee1   :  { %21533 = vmatprep.subr.bf16.mxu0 %v22676_v0  ;;  %21569 = vmatprep.subr.bf16.mxu1 %v22676_v0 }
 0xee2   :  { %19706 = vmatprep.mubr.msk.f32.mxu0 %vm22677_vm0, %v22678_v1  ;;  %19772 = vmatprep.mubr.msk.f32.mxu1 %vm22677_vm0, %v22678_v1 }
 0xee4   :  { %21535 = vmatpush3.bf16.msra.mxu0 %v23015_v52  ;;  %21571 = vmatpush3.bf16.msra.mxu1 %v23167_v44 }
 0xee5   :  { %21536 = vmatprep.subr.bf16.mxu0 %v22676_v0  ;;  %21572 = vmatprep.subr.bf16.mxu1 %v22676_v0 }
 0xee7   :  { %19707 = vmatmul.mubr.f32.vlgmr.msra.gmra.mrb[16].mxu0 %v24048_v42  ;;  %19773 = vmatmul.mubr.f32.vlgmr.msra.gmra.mrb[30].mxu1 %v24048_v42 }
 0xee8   :  { %21538 = vmatpush3.bf16.msra.mxu0 %v23039_v53  ;;  %21574 = vmatpush3.bf16.msra.mxu1 %v23108_v59 }
 0xee9   :  { %21539 = vmatprep.subr.bf16.mxu0 %v22676_v0  ;;  %21575 = vmatprep.subr.bf16.mxu1 %v22676_v0 }
 0xeea   :  { %19717 = vmatprep.mubr.msk.f32.mxu0 %vm22677_vm0, %v22678_v1  ;;  %19783 = vmatprep.mubr.msk.f32.mxu1 %vm22677_vm0, %v22678_v1 }
 0xeec   :  { %21541 = vmatpush3.bf16.msra.mxu0 %v23051_v5  ;;  %21577 = vmatpush3.bf16.msra.mxu1 %v23123_v49 }
 0xeed   :  { %21542 = vmatprep.subr.bf16.mxu0 %v22676_v0  ;;  %21578 = vmatprep.subr.bf16.mxu1 %v22676_v0 }
 0xeef   :  { %19718 = vmatmul.mubr.f32.vlgmr.msra.gmra.mrb[16].mxu0 %v24051_v14  ;;  %19784 = vmatmul.mubr.f32.vlgmr.msra.gmra.mrb[30].mxu1 %v24051_v14 }
 0xef0   :  { %21544 = vmatpush3.bf16.msra.mxu0 %v23067_v31  ;;  %21580 = vmatpush3.bf16.msra.mxu1 %v23190_v23 }
 0xef1   :  { %21545 = vmatprep.subr.bf16.mxu0 %v22676_v0  ;;  %21581 = vmatprep.subr.bf16.mxu1 %v22676_v0 }
 0xef2   :  { %19728 = vmatprep.mubr.msk.f32.mxu0 %vm22677_vm0, %v22678_v1  ;;  %19794 = vmatprep.mubr.msk.f32.mxu1 %vm22677_vm0, %v22678_v1 }
 0xef4   :  { %21547 = vmatpush3.bf16.msra.mxu0 %v23079_v55  ;;  %21583 = vmatpush3.bf16.msra.mxu1 %v23203_v36 }
 0xef5   :  { %21548 = vmatprep.subr.bf16.mxu0 %v22676_v0  ;;  %21584 = vmatprep.subr.bf16.mxu1 %v22676_v0 }
 0xef7   :  { %19729 = vmatmul.mubr.f32.vlgmr.msra.gmra.mrb[16].mxu0 %v24045_v21  ;;  %19795 = vmatmul.mubr.f32.vlgmr.msra.gmra.mrb[30].mxu1 %v24045_v21 }
 0xef8   :  { %21550 = vmatpush3.bf16.msra.mxu0 %v23039_v53  ;;  %21586 = vmatpush3.bf16.msra.mxu1 %v23108_v59 }
 0xef9   :  { %21551 = vmatprep.subr.bf16.mxu0 %v22676_v0  ;;  %21587 = vmatprep.subr.bf16.mxu1 %v22676_v0 }
 0xefa   :  { %19739 = vmatprep.mubr.msk.f32.mxu0 %vm22677_vm0, %v22678_v1  ;;  %19805 = vmatprep.mubr.msk.f32.mxu1 %vm22677_vm0, %v22678_v1 }
 0xefc   :  { %21553 = vmatpush3.bf16.msra.mxu0 %v23051_v5  ;;  %21589 = vmatpush3.bf16.msra.mxu1 %v23123_v49 }
 0xefd   :  { %21590 = vmatprep.subr.bf16.mxu0 %v22676_v0  ;;  %21626 = vmatprep.subr.bf16.mxu1 %v22676_v0 }
 0xeff   :  { %19740 = vmatmul.mubr.f32.vlgmr.msra.gmra.mrb[16].mxu0 %v24045_v21  ;;  %19806 = vmatmul.mubr.f32.vlgmr.msra.gmra.mrb[30].mxu1 %v24045_v21 }
 0xf00   :  { %21592 = vmatpush3.bf16.msra.mxu0 %v23232_v11  ;;  %21628 = vmatpush3.bf16.msra.mxu1 %v23349_v33 }
 0xf01   :  { %21593 = vmatprep.subr.bf16.mxu0 %v22676_v0  ;;  %21629 = vmatprep.subr.bf16.mxu1 %v22676_v0 }
 0xf02   :  { %19816 = vmatprep.mubr.msk.f32.mxu0 %vm22677_vm0, %v22678_v1  ;;  %19882 = vmatprep.mubr.msk.f32.mxu1 %vm22677_vm0, %v22678_v1 }
 0xf04   :  { %21595 = vmatpush3.bf16.msra.mxu0 %v23247_v29  ;;  %21631 = vmatpush3.bf16.msra.mxu1 %v23361_v3 }
 0xf05   :  { %21596 = vmatprep.subr.bf16.mxu0 %v22676_v0  ;;  %21632 = vmatprep.subr.bf16.mxu1 %v22676_v0 }
 0xf07   :  { %19817 = vmatmul.mubr.f32.vlgmr.msra.gmra.mrb[18].mxu0 %v24055_v58  ;;  %19883 = vmatmul.mubr.f32.vlgmr.msra.gmra.mrb[32].mxu1 %v24055_v58 }
 0xf08   :  { %21598 = vmatpush3.bf16.msra.mxu0 %v23261_v30  ;;  %21634 = vmatpush3.bf16.msra.mxu1 %v23371_v51 }
 0xf09   :  { %21599 = vmatprep.subr.bf16.mxu0 %v22676_v0  ;;  %21635 = vmatprep.subr.bf16.mxu1 %v22676_v0 }
 0xf0a   :  { %19827 = vmatprep.mubr.msk.f32.mxu0 %vm22677_vm0, %v22678_v1  ;;  %19893 = vmatprep.mubr.msk.f32.mxu1 %vm22677_vm0, %v22678_v1 }
 0xf0c   :  { %21601 = vmatpush3.bf16.msra.mxu0 %v23268_v57  ;;  %21637 = vmatpush3.bf16.msra.mxu1 %v23379_v6 }
 0xf0d   :  { %21602 = vmatprep.subr.bf16.mxu0 %v22676_v0  ;;  %21638 = vmatprep.subr.bf16.mxu1 %v22676_v0 }
 0xf0f   :  { %19828 = vmatmul.mubr.f32.vlgmr.msra.gmra.mrb[18].mxu0 %v24045_v21  ;;  %19894 = vmatmul.mubr.f32.vlgmr.msra.gmra.mrb[32].mxu1 %v24045_v21 }
 0xf10   :  { %21604 = vmatpush3.bf16.msra.mxu0 %v23278_v17  ;;  %21640 = vmatpush3.bf16.msra.mxu1 %v23391_v56 }
 0xf11   :  { %21605 = vmatprep.subr.bf16.mxu0 %v22676_v0  ;;  %21641 = vmatprep.subr.bf16.mxu1 %v22676_v0 }
 0xf12   :  { %19838 = vmatprep.mubr.msk.f32.mxu0 %vm22677_vm0, %v22678_v1  ;;  %19904 = vmatprep.mubr.msk.f32.mxu1 %vm22677_vm0, %v22678_v1 }
 0xf14   :  { %21607 = vmatpush3.bf16.msra.mxu0 %v23288_v10  ;;  %21643 = vmatpush3.bf16.msra.mxu1 %v23398_v63 }
 0xf15   :  { %21608 = vmatprep.subr.bf16.mxu0 %v22676_v0  ;;  %21644 = vmatprep.subr.bf16.mxu1 %v22676_v0 }
 0xf17   :  { %19839 = vmatmul.mubr.f32.vlgmr.msra.gmra.mrb[18].mxu0 %v24048_v42  ;;  %19905 = vmatmul.mubr.f32.vlgmr.msra.gmra.mrb[32].mxu1 %v24048_v42 }
 0xf18   :  { %21610 = vmatpush3.bf16.msra.mxu0 %v23232_v11  ;;  %21646 = vmatpush3.bf16.msra.mxu1 %v23349_v33 }
 0xf19   :  { %21611 = vmatprep.subr.bf16.mxu0 %v22676_v0  ;;  %21647 = vmatprep.subr.bf16.mxu1 %v22676_v0 }
 0xf1a   :  { %19849 = vmatprep.mubr.msk.f32.mxu0 %vm22677_vm0, %v22678_v1  ;;  %19915 = vmatprep.mubr.msk.f32.mxu1 %vm22677_vm0, %v22678_v1 }
 0xf1c   :  { %21613 = vmatpush3.bf16.msra.mxu0 %v23247_v29  ;;  %21649 = vmatpush3.bf16.msra.mxu1 %v23361_v3 }
 0xf1d   :  { %21614 = vmatprep.subr.bf16.mxu0 %v22676_v0  ;;  %21650 = vmatprep.subr.bf16.mxu1 %v22676_v0 }
 0xf1f   :  { %19850 = vmatmul.mubr.f32.vlgmr.msra.gmra.mrb[18].mxu0 %v24051_v14  ;;  %19916 = vmatmul.mubr.f32.vlgmr.msra.gmra.mrb[32].mxu1 %v24051_v14 }
 0xf20   :  { %21616 = vmatpush3.bf16.msra.mxu0 %v23313_v15  ;;  %21652 = vmatpush3.bf16.msra.mxu1 %v23411_v26 }
 0xf21   :  { %21617 = vmatprep.subr.bf16.mxu0 %v22676_v0  ;;  %21653 = vmatprep.subr.bf16.mxu1 %v22676_v0 }
 0xf22   :  { %19860 = vmatprep.mubr.msk.f32.mxu0 %vm22677_vm0, %v22678_v1  ;;  %19926 = vmatprep.mubr.msk.f32.mxu1 %vm22677_vm0, %v22678_v1 }
 0xf24   :  { %21619 = vmatpush3.bf16.msra.mxu0 %v23322_v45  ;;  %21655 = vmatpush3.bf16.msra.mxu1 %v23416_v27 }
 0xf25   :  { %21620 = vmatprep.subr.bf16.mxu0 %v22676_v0  ;;  %21656 = vmatprep.subr.bf16.mxu1 %v22676_v0 }
 0xf27   :  { %19861 = vmatmul.mubr.f32.vlgmr.msra.gmra.mrb[18].mxu0 %v24045_v21  ;;  %19927 = vmatmul.mubr.f32.vlgmr.msra.gmra.mrb[32].mxu1 %v24045_v21 }
 0xf28   :  { %21622 = vmatpush3.bf16.msra.mxu0 %v23232_v11  ;;  %21658 = vmatpush3.bf16.msra.mxu1 %v23349_v33 }
 0xf29   :  { %21623 = vmatprep.subr.bf16.mxu0 %v22676_v0  ;;  %21659 = vmatprep.subr.bf16.mxu1 %v22676_v0 }
 0xf2a   :  { %19871 = vmatprep.mubr.msk.f32.mxu0 %vm22677_vm0, %v22678_v1  ;;  %19937 = vmatprep.mubr.msk.f32.mxu1 %vm22677_vm0, %v22678_v1 }
 0xf2c   :  { %21625 = vmatpush3.bf16.msra.mxu0 %v23247_v29  ;;  %21661 = vmatpush3.bf16.msra.mxu1 %v23361_v3 }
 0xf2d   :  { %21662 = vmatprep.subr.bf16.mxu0 %v22676_v0  ;;  %21698 = vmatprep.subr.bf16.mxu1 %v22676_v0 }
 0xf2f   :  { %19872 = vmatmul.mubr.f32.vlgmr.msra.gmra.mrb[18].mxu0 %v24045_v21  ;;  %19938 = vmatmul.mubr.f32.vlgmr.msra.gmra.mrb[32].mxu1 %v24045_v21 }
 0xf30   :  { %21664 = vmatpush3.bf16.msra.mxu0 %v23039_v53  ;;  %21700 = vmatpush3.bf16.msra.mxu1 %v23108_v59 }
 0xf31   :  { %21665 = vmatprep.subr.bf16.mxu0 %v22676_v0  ;;  %21701 = vmatprep.subr.bf16.mxu1 %v22676_v0 }
 0xf32   :  { %19948 = vmatprep.mubr.msk.f32.mxu0 %vm22677_vm0, %v22678_v1  ;;  %20014 = vmatprep.mubr.msk.f32.mxu1 %vm22677_vm0, %v22678_v1 }
 0xf34   :  { %21667 = vmatpush3.bf16.msra.mxu0 %v23051_v5  ;;  %21703 = vmatpush3.bf16.msra.mxu1 %v23123_v49 }
 0xf35   :  { %21668 = vmatprep.subr.bf16.mxu0 %v22676_v0  ;;  %21704 = vmatprep.subr.bf16.mxu1 %v22676_v0 }
 0xfd2   :  { %v9239_v22 = vpop.f32.mrb[16].mxu0  ;;  %v9734_v61 = vpop.f32.mrb[30].mxu1 }
 0xfd3   :  { %v19741_v20 = vpop.f32.mrb[17].mxu0  ;;  %v19807_v40 = vpop.f32.mrb[31].mxu1  ;;  %v9739_v13 = vrot.slane %v9734_v61, 4  ;;  %v9244_v54 = vrot.slane %v9239_v22, 4  ;;  %v10740_v22 = vrot.slane %v24038_v2, 7 }
 0xfd5   :  { %v9246_v8 = vadd.f32 %v23441_v35, %v9244_v54 }
 0xfd7   :  { %v17306_v12 = vmul.f32 -1.442695, %v9246_v8 }
0x1002   :  { %v10231_v32 = vpop.f32.mrb[18].mxu0  ;;  %v10723_v39 = vpop.f32.mrb[32].mxu1 }
0x1003   :  { %v10236_v28 = vrot.slane %v10231_v32, 4  ;;  %v19873_v48 = vpop.f32.mrb[19].mxu0  ;;  %v19939_v7 = vpop.f32.mrb[33].mxu1  ;;  %v10728_v50 = vrot.slane %v10723_v39, 4 }
0x1005   :  { %10237 = vrot.lane.b32.xlu0 %v10236_v28, %s22680_s25 }
0x1009   :  { %9740 = vrot.lane.b32.xlu0 %v9739_v13, %s22679_s0 }
0x100d   :  { %10729 = vrot.lane.b32.xlu0 %v10728_v50, %s22681_s2 }
0x1077   :  { %v10238_v47 = vpop.permute.xlu0 %10237 }
0x1078   :  { %v10240_v34 = vadd.f32 %v23441_v35, %v10238_v47 }
0x107a   :  { %22536 = vtanh.f32 %v10240_v34 }
0x107b   :  { %22538 = vpow2.f32 %v17306_v12  ;;  %v9741_v24 = vpop.permute.xlu0 %9740 }
0x107c   :  { %v9743_v21 = vadd.f32 %v23441_v35, %v9741_v24 }
0x107e   :  { %v17307_v42 = vmul.f32 -1.442695, %v9743_v21 }
0x107f   :  { %v10730_v39 = vpop.permute.xlu0 %10729 }
0x1080   :  { %v10732_v28 = vadd.f32 %v23441_v35, %v10730_v39 }
0x1082   :  { %v17308_v48 = vmul.f32 -1.442695, %v10732_v28 }
0x1084   :  { %v22537_v4 = vpop.eup %22536 }
0x1085   :  { %10744 = vrot.lane.b32.xlu1 %v22537_v4, %s22680_s25  ;;  %v22539_v46 = vpop.eup %22538 }
0x1086   :  { %v9250_v60 = vadd.f32 1.0, %v22539_v46 }
0x1088   :  { %22540 = vrcp.f32 %v9250_v60 }
0x1089   :  { %22542 = vpow2.f32 %v17307_v42 }
0x1092   :  { %v22541_v43 = vpop.eup %22540 }
0x1093   :  { %v22543_v14 = vpop.eup %22542 }
0x1094   :  { %v9747_v18 = vadd.f32 1.0, %v22543_v14 }
0x1096   :  { %22544 = vrcp.f32 %v9747_v18 }
0x10a0   :  { %v22545_v58 = vpop.eup %22544 }
0x10a1   :  { %v10742_v61 = vmul.f32 %v22545_v58, %v10740_v22 }
0x10f7   :  { %v10745_v16 = vpop.permute.xlu1 %10744 }
0x10f8   :  { %v10747_v41 = vmul.f32 %v22541_v43, %v10745_v16 }
0x10fa   :  { %10749 = vrot.lane.b32.xlu1 %v10747_v41, %s22679_s0 }
0x116c   :  { %v10750_v20 = vpop.permute.xlu1 %10749 }
0x116d   :  { %v24234_v40 = vadd.f32 %v10750_v20, %v10742_v61 }
0x116f   :  { %22546 = vtanh.f32 %v24234_v40 }
0x1170   :  { %22548 = vpow2.f32 %v17308_v48 }
0x1179   :  { %v22547_v32 = vpop.eup %22546 }
0x117a   :  { %10755 = vrot.lane.b32.xlu1 %v22547_v32, %s22680_s25  ;;  %v22549_v7 = vpop.eup %22548 }
0x117b   :  { %v10736_v13 = vadd.f32 1.0, %v22549_v7 }
0x117d   :  { %22550 = vrcp.f32 %v10736_v13 }
0x1187   :  { %v22551_v50 = vpop.eup %22550 }
0x11ec   :  { %v10756_v47 = vpop.permute.xlu1 %10755 }
0x11ed   :  { %v10758_v2 = vmul.f32 %v22551_v50, %v10756_v47 }
0x11ef   :  { %v10760_v34 = vrot.slane %v10758_v2, 4 }
0x11f1   :  { %10761 = vrot.lane.b32.xlu0 %v10760_v34, %s22679_s0 }
0x1263   :  { %v10762_v4 = vpop.permute.xlu0 %10761 }
0x1264   :  { %v10763_v54 = vsel %vm736_vm1, %v10762_v4, 0 }
0x1265   :  { %v24241_v8 = vand.u32 4294901760, %v10763_v54 }
0x1267   :  { %v24244_v12 = vsub.f32 %v10763_v54, %v24241_v8 }
0x1269   :  { %v24247_v46 = vand.u32 4294901760, %v24244_v12 }
0x126b   :  { %v10837_v60 = vsub.f32 %v24244_v12, %v24247_v46 }
0x126d   :  { %v24251_v43 = vand.u32 4294901760, %v10837_v60 }
0x126f   :  { %19949 = vmatmul.mubr.f32.vlgmr.msra.gmra.mrb[20].mxu0 %v24251_v43  ;;  %20015 = vmatmul.mubr.f32.vlgmr.msra.gmra.mrb[34].mxu1 %v24251_v43 }
0x1270   :  { %21670 = vmatpush3.bf16.msra.mxu0 %v22946_v9  ;;  %21706 = vmatpush3.bf16.msra.mxu1 %v23141_v37 }
0x1271   :  { %21671 = vmatprep.subr.bf16.mxu0 %v22676_v0  ;;  %21707 = vmatprep.subr.bf16.mxu1 %v22676_v0 }
0x1272   :  { %19959 = vmatprep.mubr.msk.f32.mxu0 %vm22677_vm0, %v22678_v1  ;;  %20025 = vmatprep.mubr.msk.f32.mxu1 %vm22677_vm0, %v22678_v1 }
0x1274   :  { %21673 = vmatpush3.bf16.msra.mxu0 %v22957_v19  ;;  %21709 = vmatpush3.bf16.msra.mxu1 %v23148_v62 }
0x1275   :  { %21674 = vmatprep.subr.bf16.mxu0 %v22676_v0  ;;  %21710 = vmatprep.subr.bf16.mxu1 %v22676_v0 }
0x1277   :  { %19960 = vmatmul.mubr.f32.vlgmr.msra.gmra.mrb[20].mxu0 %v24241_v8  ;;  %20026 = vmatmul.mubr.f32.vlgmr.msra.gmra.mrb[34].mxu1 %v24241_v8 }
0x1278   :  { %21676 = vmatpush3.bf16.msra.mxu0 %v22986_v25  ;;  %21712 = vmatpush3.bf16.msra.mxu1 %v23158_v38 }
0x1279   :  { %21677 = vmatprep.subr.bf16.mxu0 %v22676_v0  ;;  %21713 = vmatprep.subr.bf16.mxu1 %v22676_v0 }
0x127a   :  { %19970 = vmatprep.mubr.msk.f32.mxu0 %vm22677_vm0, %v22678_v1  ;;  %20036 = vmatprep.mubr.msk.f32.mxu1 %vm22677_vm0, %v22678_v1 }
0x127c   :  { %21679 = vmatpush3.bf16.msra.mxu0 %v23015_v52  ;;  %21715 = vmatpush3.bf16.msra.mxu1 %v23167_v44 }
0x127d   :  { %21680 = vmatprep.subr.bf16.mxu0 %v22676_v0  ;;  %21716 = vmatprep.subr.bf16.mxu1 %v22676_v0 }
0x127f   :  { %19971 = vmatmul.mubr.f32.vlgmr.msra.gmra.mrb[20].mxu0 %v24244_v12  ;;  %20037 = vmatmul.mubr.f32.vlgmr.msra.gmra.mrb[34].mxu1 %v24244_v12 }
0x1280   :  { %21682 = vmatpush3.bf16.msra.mxu0 %v23039_v53  ;;  %21718 = vmatpush3.bf16.msra.mxu1 %v23108_v59 }
0x1281   :  { %21683 = vmatprep.subr.bf16.mxu0 %v22676_v0  ;;  %21719 = vmatprep.subr.bf16.mxu1 %v22676_v0 }
0x1282   :  { %19981 = vmatprep.mubr.msk.f32.mxu0 %vm22677_vm0, %v22678_v1  ;;  %20047 = vmatprep.mubr.msk.f32.mxu1 %vm22677_vm0, %v22678_v1 }
0x1284   :  { %21685 = vmatpush3.bf16.msra.mxu0 %v23051_v5  ;;  %21721 = vmatpush3.bf16.msra.mxu1 %v23123_v49 }
0x1285   :  { %21686 = vmatprep.subr.bf16.mxu0 %v22676_v0  ;;  %21722 = vmatprep.subr.bf16.mxu1 %v22676_v0 }
0x1287   :  { %19982 = vmatmul.mubr.f32.vlgmr.msra.gmra.mrb[20].mxu0 %v24247_v46  ;;  %20048 = vmatmul.mubr.f32.vlgmr.msra.gmra.mrb[34].mxu1 %v24247_v46 }
0x1288   :  { %21688 = vmatpush3.bf16.msra.mxu0 %v23067_v31  ;;  %21724 = vmatpush3.bf16.msra.mxu1 %v23190_v23 }
0x1289   :  { %21689 = vmatprep.subr.bf16.mxu0 %v22676_v0  ;;  %21725 = vmatprep.subr.bf16.mxu1 %v22676_v0 }
0x128a   :  { %19992 = vmatprep.mubr.msk.f32.mxu0 %vm22677_vm0, %v22678_v1  ;;  %20058 = vmatprep.mubr.msk.f32.mxu1 %vm22677_vm0, %v22678_v1 }
0x128c   :  { %21691 = vmatpush3.bf16.msra.mxu0 %v23079_v55  ;;  %21727 = vmatpush3.bf16.msra.mxu1 %v23203_v36 }
0x128d   :  { %21692 = vmatprep.subr.bf16.mxu0 %v22676_v0  ;;  %21728 = vmatprep.subr.bf16.mxu1 %v22676_v0 }
0x128f   :  { %19993 = vmatmul.mubr.f32.vlgmr.msra.gmra.mrb[20].mxu0 %v24241_v8  ;;  %20059 = vmatmul.mubr.f32.vlgmr.msra.gmra.mrb[34].mxu1 %v24241_v8 }
0x1290   :  { %21694 = vmatpush3.bf16.msra.mxu0 %v23039_v53  ;;  %21730 = vmatpush3.bf16.msra.mxu1 %v23108_v59 }
0x1291   :  { %21695 = vmatprep.subr.bf16.mxu0 %v22676_v0  ;;  %21731 = vmatprep.subr.bf16.mxu1 %v22676_v0 }
0x1292   :  { %20003 = vmatprep.mubr.msk.f32.mxu0 %vm22677_vm0, %v22678_v1  ;;  %20069 = vmatprep.mubr.msk.f32.mxu1 %vm22677_vm0, %v22678_v1 }
0x1294   :  { %21697 = vmatpush3.bf16.msra.mxu0 %v23051_v5  ;;  %21733 = vmatpush3.bf16.msra.mxu1 %v23123_v49 }
0x1295   :  { %21734 = vmatprep.subr.bf16.mxu0 %v22676_v0  ;;  %21770 = vmatprep.subr.bf16.mxu1 %v22676_v0 }
0x1297   :  { %20004 = vmatmul.mubr.f32.vlgmr.msra.gmra.mrb[20].mxu0 %v24241_v8  ;;  %20070 = vmatmul.mubr.f32.vlgmr.msra.gmra.mrb[34].mxu1 %v24241_v8 }
0x1298   :  { %21736 = vmatpush3.bf16.msra.mxu0 %v23232_v11  ;;  %21772 = vmatpush3.bf16.msra.mxu1 %v23349_v33 }
0x1299   :  { %21737 = vmatprep.subr.bf16.mxu0 %v22676_v0  ;;  %21773 = vmatprep.subr.bf16.mxu1 %v22676_v0 }
0x129a   :  { %20080 = vmatprep.mubr.msk.f32.mxu0 %vm22677_vm0, %v22678_v1  ;;  %20146 = vmatprep.mubr.msk.f32.mxu1 %vm22677_vm0, %v22678_v1 }
0x129c   :  { %21739 = vmatpush3.bf16.msra.mxu0 %v23247_v29  ;;  %21775 = vmatpush3.bf16.msra.mxu1 %v23361_v3 }
0x129d   :  { %21740 = vmatprep.subr.bf16.mxu0 %v22676_v0  ;;  %21776 = vmatprep.subr.bf16.mxu1 %v22676_v0 }
0x129f   :  { %20081 = vmatmul.mubr.f32.vlgmr.msra.gmra.mrb[22].mxu0 %v24251_v43  ;;  %20147 = vmatmul.mubr.f32.vlgmr.msra.gmra.mrb[36].mxu1 %v24251_v43 }
0x12a0   :  { %21742 = vmatpush3.bf16.msra.mxu0 %v23261_v30  ;;  %21778 = vmatpush3.bf16.msra.mxu1 %v23371_v51 }
0x12a1   :  { %21743 = vmatprep.subr.bf16.mxu0 %v22676_v0  ;;  %21779 = vmatprep.subr.bf16.mxu1 %v22676_v0 }
0x12a2   :  { %20091 = vmatprep.mubr.msk.f32.mxu0 %vm22677_vm0, %v22678_v1  ;;  %20157 = vmatprep.mubr.msk.f32.mxu1 %vm22677_vm0, %v22678_v1 }
0x12a4   :  { %21745 = vmatpush3.bf16.msra.mxu0 %v23268_v57  ;;  %21781 = vmatpush3.bf16.msra.mxu1 %v23379_v6 }
0x12a5   :  { %21746 = vmatprep.subr.bf16.mxu0 %v22676_v0  ;;  %21782 = vmatprep.subr.bf16.mxu1 %v22676_v0 }
0x12a7   :  { %20092 = vmatmul.mubr.f32.vlgmr.msra.gmra.mrb[22].mxu0 %v24241_v8  ;;  %20158 = vmatmul.mubr.f32.vlgmr.msra.gmra.mrb[36].mxu1 %v24241_v8 }
0x12a8   :  { %21748 = vmatpush3.bf16.msra.mxu0 %v23278_v17  ;;  %21784 = vmatpush3.bf16.msra.mxu1 %v23391_v56 }
0x12a9   :  { %21749 = vmatprep.subr.bf16.mxu0 %v22676_v0  ;;  %21785 = vmatprep.subr.bf16.mxu1 %v22676_v0 }
0x12aa   :  { %20102 = vmatprep.mubr.msk.f32.mxu0 %vm22677_vm0, %v22678_v1  ;;  %20168 = vmatprep.mubr.msk.f32.mxu1 %vm22677_vm0, %v22678_v1 }
0x12ac   :  { %21751 = vmatpush3.bf16.msra.mxu0 %v23288_v10  ;;  %21787 = vmatpush3.bf16.msra.mxu1 %v23398_v63 }
0x12ad   :  { %21752 = vmatprep.subr.bf16.mxu0 %v22676_v0  ;;  %21788 = vmatprep.subr.bf16.mxu1 %v22676_v0 }
0x12af   :  { %20103 = vmatmul.mubr.f32.vlgmr.msra.gmra.mrb[22].mxu0 %v24244_v12  ;;  %20169 = vmatmul.mubr.f32.vlgmr.msra.gmra.mrb[36].mxu1 %v24244_v12 }
0x12b0   :  { %21754 = vmatpush3.bf16.msra.mxu0 %v23232_v11  ;;  %21790 = vmatpush3.bf16.msra.mxu1 %v23349_v33 }
0x12b1   :  { %21755 = vmatprep.subr.bf16.mxu0 %v22676_v0  ;;  %21791 = vmatprep.subr.bf16.mxu1 %v22676_v0 }
0x12b2   :  { %20113 = vmatprep.mubr.msk.f32.mxu0 %vm22677_vm0, %v22678_v1  ;;  %20179 = vmatprep.mubr.msk.f32.mxu1 %vm22677_vm0, %v22678_v1 }
0x12b4   :  { %21757 = vmatpush3.bf16.msra.mxu0 %v23247_v29  ;;  %21793 = vmatpush3.bf16.msra.mxu1 %v23361_v3 }
0x12b5   :  { %21758 = vmatprep.subr.bf16.mxu0 %v22676_v0  ;;  %21794 = vmatprep.subr.bf16.mxu1 %v22676_v0 }
0x12b7   :  { %20114 = vmatmul.mubr.f32.vlgmr.msra.gmra.mrb[22].mxu0 %v24247_v46  ;;  %20180 = vmatmul.mubr.f32.vlgmr.msra.gmra.mrb[36].mxu1 %v24247_v46 }
0x12b8   :  { %21760 = vmatpush3.bf16.msra.mxu0 %v23313_v15  ;;  %21796 = vmatpush3.bf16.msra.mxu1 %v23411_v26 }
0x12b9   :  { %21761 = vmatprep.subr.bf16.mxu0 %v22676_v0  ;;  %21797 = vmatprep.subr.bf16.mxu1 %v22676_v0 }
0x12ba   :  { %20124 = vmatprep.mubr.msk.f32.mxu0 %vm22677_vm0, %v22678_v1  ;;  %20190 = vmatprep.mubr.msk.f32.mxu1 %vm22677_vm0, %v22678_v1 }
0x12bc   :  { %21763 = vmatpush3.bf16.msra.mxu0 %v23322_v45  ;;  %21799 = vmatpush3.bf16.msra.mxu1 %v23416_v27 }
0x12bd   :  { %21764 = vmatprep.subr.bf16.mxu0 %v22676_v0  ;;  %21800 = vmatprep.subr.bf16.mxu1 %v22676_v0 }
0x12bf   :  { %20125 = vmatmul.mubr.f32.vlgmr.msra.gmra.mrb[22].mxu0 %v24241_v8  ;;  %20191 = vmatmul.mubr.f32.vlgmr.msra.gmra.mrb[36].mxu1 %v24241_v8 }
0x12c0   :  { %21766 = vmatpush3.bf16.msra.mxu0 %v23232_v11  ;;  %21802 = vmatpush3.bf16.msra.mxu1 %v23349_v33 }
0x12c1   :  { %21767 = vmatprep.subr.bf16.mxu0 %v22676_v0  ;;  %21803 = vmatprep.subr.bf16.mxu1 %v22676_v0 }
0x12c2   :  { %20135 = vmatprep.mubr.msk.f32.mxu0 %vm22677_vm0, %v22678_v1  ;;  %20201 = vmatprep.mubr.msk.f32.mxu1 %vm22677_vm0, %v22678_v1 }
0x12c4   :  { %21769 = vmatpush3.bf16.msra.mxu0 %v23247_v29  ;;  %21805 = vmatpush3.bf16.msra.mxu1 %v23361_v3 }
0x12c5   :  { %21806 = vmatprep.subr.bf16.mxu0 %v22676_v0  ;;  %21842 = vmatprep.subr.bf16.mxu1 %v22676_v0 }
0x12c7   :  { %20136 = vmatmul.mubr.f32.vlgmr.msra.gmra.mrb[22].mxu0 %v24241_v8  ;;  %20202 = vmatmul.mubr.f32.vlgmr.msra.gmra.mrb[36].mxu1 %v24241_v8 }
0x12c8   :  { %21808 = vmatpush3.bf16.msra.mxu0 %v23039_v53  ;;  %21844 = vmatpush3.bf16.msra.mxu1 %v23108_v59 }
0x12c9   :  { %21809 = vmatprep.subr.bf16.mxu0 %v22676_v0  ;;  %21845 = vmatprep.subr.bf16.mxu1 %v22676_v0 }
0x12ca   :  { %20212 = vmatprep.mubr.msk.f32.mxu0 %vm22677_vm0, %v22678_v1  ;;  %20278 = vmatprep.mubr.msk.f32.mxu1 %vm22677_vm0, %v22678_v1 }
0x12cc   :  { %21811 = vmatpush3.bf16.msra.mxu0 %v23051_v5  ;;  %21847 = vmatpush3.bf16.msra.mxu1 %v23123_v49 }
0x12cd   :  { %21812 = vmatprep.subr.bf16.mxu0 %v22676_v0  ;;  %21848 = vmatprep.subr.bf16.mxu1 %v22676_v0 }
0x136a   :  { %v11246_v16 = vpop.f32.mrb[20].mxu0  ;;  %v11741_v41 = vpop.f32.mrb[34].mxu1 }
0x136b   :  { %v20005_v24 = vpop.f32.mrb[21].mxu0  ;;  %v20071_v21 = vpop.f32.mrb[35].mxu1  ;;  %v11746_v61 = vrot.slane %v11741_v41, 3  ;;  %v11251_v48 = vrot.slane %v11246_v16, 3  ;;  %v12747_v16 = vrot.slane %v24234_v40, 7 }
0x136d   :  { %v11253_v7 = vadd.f32 %v23441_v35, %v11251_v48 }
0x136f   :  { %v17309_v13 = vmul.f32 -1.442695, %v11253_v7 }
0x139a   :  { %v12238_v42 = vpop.f32.mrb[22].mxu0  ;;  %v12730_v14 = vpop.f32.mrb[36].mxu1 }
0x139b   :  { %v12243_v18 = vrot.slane %v12238_v42, 3  ;;  %v20137_v58 = vpop.f32.mrb[23].mxu0  ;;  %v20203_v22 = vpop.f32.mrb[37].mxu1  ;;  %v12735_v20 = vrot.slane %v12730_v14, 3 }
0x139d   :  { %12244 = vrot.lane.b32.xlu1 %v12243_v18, %s22680_s25 }
0x13a1   :  { %11747 = vrot.lane.b32.xlu1 %v11746_v61, %s22679_s0 }
0x13a5   :  { %12736 = vrot.lane.b32.xlu1 %v12735_v20, %s22681_s2 }
0x140f   :  { %v12245_v32 = vpop.permute.xlu1 %12244 }
0x1410   :  { %v12247_v39 = vadd.f32 %v23441_v35, %v12245_v32 }
0x1412   :  { %22552 = vtanh.f32 %v12247_v39 }
0x1413   :  { %22554 = vpow2.f32 %v17309_v13  ;;  %v11748_v54 = vpop.permute.xlu1 %11747 }
0x1414   :  { %v11750_v8 = vadd.f32 %v23441_v35, %v11748_v54 }
0x1416   :  { %v17310_v12 = vmul.f32 -1.442695, %v11750_v8 }
0x1417   :  { %v12737_v14 = vpop.permute.xlu1 %12736 }
0x1418   :  { %v12739_v18 = vadd.f32 %v23441_v35, %v12737_v14 }
0x141a   :  { %v17311_v58 = vmul.f32 -1.442695, %v12739_v18 }
0x141c   :  { %v22553_v28 = vpop.eup %22552 }
0x141d   :  { %12751 = vrot.lane.b32.xlu0 %v22553_v28, %s22680_s25  ;;  %v22555_v50 = vpop.eup %22554 }
0x141e   :  { %v11257_v47 = vadd.f32 1.0, %v22555_v50 }
0x1420   :  { %22556 = vrcp.f32 %v11257_v47 }
0x1421   :  { %22558 = vpow2.f32 %v17310_v12 }
0x142a   :  { %v22557_v2 = vpop.eup %22556 }
0x142b   :  { %v22559_v46 = vpop.eup %22558 }
0x142c   :  { %v11754_v60 = vadd.f32 1.0, %v22559_v46 }
0x142e   :  { %22560 = vrcp.f32 %v11754_v60 }
0x1438   :  { %v22561_v43 = vpop.eup %22560 }
0x1439   :  { %v12749_v41 = vmul.f32 %v22561_v43, %v12747_v16 }
0x148f   :  { %v12752_v34 = vpop.permute.xlu0 %12751 }
0x1490   :  { %v12754_v4 = vmul.f32 %v22557_v2, %v12752_v34 }
0x1492   :  { %12756 = vrot.lane.b32.xlu0 %v12754_v4, %s22679_s0 }
0x1504   :  { %v12757_v24 = vpop.permute.xlu0 %12756 }
0x1505   :  { %v24430_v21 = vadd.f32 %v12757_v24, %v12749_v41 }
0x1507   :  { %22562 = vtanh.f32 %v24430_v21 }
0x1508   :  { %22564 = vpow2.f32 %v17311_v58 }
0x1511   :  { %v22563_v42 = vpop.eup %22562 }
0x1512   :  { %12762 = vrot.lane.b32.xlu0 %v22563_v42, %s22680_s25  ;;  %v22565_v22 = vpop.eup %22564 }
0x1513   :  { %v12743_v61 = vadd.f32 1.0, %v22565_v22 }
0x1515   :  { %22566 = vrcp.f32 %v12743_v61 }
0x151f   :  { %v22567_v20 = vpop.eup %22566 }
0x1584   :  { %v12763_v32 = vpop.permute.xlu0 %12762 }
0x1585   :  { %v12765_v40 = vmul.f32 %v22567_v20, %v12763_v32 }
0x1587   :  { %v12767_v39 = vrot.slane %v12765_v40, 5 }
0x1589   :  { %12768 = vrot.lane.b32.xlu1 %v12767_v39, %s22679_s0 }
0x15fb   :  { %v12769_v28 = vpop.permute.xlu1 %12768 }
0x15fc   :  { %v12770_v48 = vsel %vm736_vm1, %v12769_v28, 0 }
0x15fd   :  { %v24437_v7 = vand.u32 4294901760, %v12770_v48 }
0x15ff   :  { %v24440_v13 = vsub.f32 %v12770_v48, %v24437_v7 }
0x1601   :  { %v24443_v50 = vand.u32 4294901760, %v24440_v13 }
0x1603   :  { %v12844_v47 = vsub.f32 %v24440_v13, %v24443_v50 }
0x1605   :  { %v24447_v2 = vand.u32 4294901760, %v12844_v47 }
0x1607   :  { %20213 = vmatmul.mubr.f32.vlgmr.msra.gmra.mrb[24].mxu0 %v24447_v2  ;;  %20279 = vmatmul.mubr.f32.vlgmr.msra.gmra.mrb[38].mxu1 %v24447_v2 }
0x1608   :  { %21814 = vmatpush3.bf16.msra.mxu0 %v22946_v9  ;;  %21850 = vmatpush3.bf16.msra.mxu1 %v23141_v37 }
0x1609   :  { %21815 = vmatprep.subr.bf16.mxu0 %v22676_v0  ;;  %21851 = vmatprep.subr.bf16.mxu1 %v22676_v0 }
0x160a   :  { %20223 = vmatprep.mubr.msk.f32.mxu0 %vm22677_vm0, %v22678_v1  ;;  %20289 = vmatprep.mubr.msk.f32.mxu1 %vm22677_vm0, %v22678_v1 }
0x160c   :  { %21817 = vmatpush3.bf16.msra.mxu0 %v22957_v19  ;;  %21853 = vmatpush3.bf16.msra.mxu1 %v23148_v62 }
0x160d   :  { %21818 = vmatprep.subr.bf16.mxu0 %v22676_v0  ;;  %21854 = vmatprep.subr.bf16.mxu1 %v22676_v0 }
0x160f   :  { %20224 = vmatmul.mubr.f32.vlgmr.msra.gmra.mrb[24].mxu0 %v24437_v7  ;;  %20290 = vmatmul.mubr.f32.vlgmr.msra.gmra.mrb[38].mxu1 %v24437_v7 }
0x1610   :  { %21820 = vmatpush3.bf16.msra.mxu0 %v22986_v25  ;;  %21856 = vmatpush3.bf16.msra.mxu1 %v23158_v38 }
0x1611   :  { %21821 = vmatprep.subr.bf16.mxu0 %v22676_v0  ;;  %21857 = vmatprep.subr.bf16.mxu1 %v22676_v0 }
0x1612   :  { %20234 = vmatprep.mubr.msk.f32.mxu0 %vm22677_vm0, %v22678_v1  ;;  %20300 = vmatprep.mubr.msk.f32.mxu1 %vm22677_vm0, %v22678_v1 }
0x1614   :  { %21823 = vmatpush3.bf16.msra.mxu0 %v23015_v52  ;;  %21859 = vmatpush3.bf16.msra.mxu1 %v23167_v44 }
0x1615   :  { %21824 = vmatprep.subr.bf16.mxu0 %v22676_v0  ;;  %21860 = vmatprep.subr.bf16.mxu1 %v22676_v0 }
0x1617   :  { %20235 = vmatmul.mubr.f32.vlgmr.msra.gmra.mrb[24].mxu0 %v24440_v13  ;;  %20301 = vmatmul.mubr.f32.vlgmr.msra.gmra.mrb[38].mxu1 %v24440_v13 }
0x1618   :  { %21826 = vmatpush3.bf16.msra.mxu0 %v23039_v53  ;;  %21862 = vmatpush3.bf16.msra.mxu1 %v23108_v59 }
0x1619   :  { %21827 = vmatprep.subr.bf16.mxu0 %v22676_v0  ;;  %21863 = vmatprep.subr.bf16.mxu1 %v22676_v0 }
0x161a   :  { %20245 = vmatprep.mubr.msk.f32.mxu0 %vm22677_vm0, %v22678_v1  ;;  %20311 = vmatprep.mubr.msk.f32.mxu1 %vm22677_vm0, %v22678_v1 }
0x161c   :  { %21829 = vmatpush3.bf16.msra.mxu0 %v23051_v5  ;;  %21865 = vmatpush3.bf16.msra.mxu1 %v23123_v49 }
0x161d   :  { %21830 = vmatprep.subr.bf16.mxu0 %v22676_v0  ;;  %21866 = vmatprep.subr.bf16.mxu1 %v22676_v0 }
0x161f   :  { %20246 = vmatmul.mubr.f32.vlgmr.msra.gmra.mrb[24].mxu0 %v24443_v50  ;;  %20312 = vmatmul.mubr.f32.vlgmr.msra.gmra.mrb[38].mxu1 %v24443_v50 }
0x1620   :  { %21832 = vmatpush3.bf16.msra.mxu0 %v23067_v31  ;;  %21868 = vmatpush3.bf16.msra.mxu1 %v23190_v23 }
0x1621   :  { %21833 = vmatprep.subr.bf16.mxu0 %v22676_v0  ;;  %21869 = vmatprep.subr.bf16.mxu1 %v22676_v0 }
0x1622   :  { %20256 = vmatprep.mubr.msk.f32.mxu0 %vm22677_vm0, %v22678_v1  ;;  %20322 = vmatprep.mubr.msk.f32.mxu1 %vm22677_vm0, %v22678_v1 }
0x1624   :  { %21835 = vmatpush3.bf16.msra.mxu0 %v23079_v55  ;;  %21871 = vmatpush3.bf16.msra.mxu1 %v23203_v36 }
0x1625   :  { %21836 = vmatprep.subr.bf16.mxu0 %v22676_v0  ;;  %21872 = vmatprep.subr.bf16.mxu1 %v22676_v0 }
0x1627   :  { %20257 = vmatmul.mubr.f32.vlgmr.msra.gmra.mrb[24].mxu0 %v24437_v7  ;;  %20323 = vmatmul.mubr.f32.vlgmr.msra.gmra.mrb[38].mxu1 %v24437_v7 }
0x1628   :  { %21838 = vmatpush3.bf16.msra.mxu0 %v23039_v53  ;;  %21874 = vmatpush3.bf16.msra.mxu1 %v23108_v59 }
0x1629   :  { %21839 = vmatprep.subr.bf16.mxu0 %v22676_v0  ;;  %21875 = vmatprep.subr.bf16.mxu1 %v22676_v0 }
0x162a   :  { %20267 = vmatprep.mubr.msk.f32.mxu0 %vm22677_vm0, %v22678_v1  ;;  %20333 = vmatprep.mubr.msk.f32.mxu1 %vm22677_vm0, %v22678_v1 }
0x162c   :  { %21841 = vmatpush3.bf16.msra.mxu0 %v23051_v5  ;;  %21877 = vmatpush3.bf16.msra.mxu1 %v23123_v49 }
0x162d   :  { %21878 = vmatprep.subr.bf16.mxu0 %v22676_v0  ;;  %21914 = vmatprep.subr.bf16.mxu1 %v22676_v0 }
0x162f   :  { %20268 = vmatmul.mubr.f32.vlgmr.msra.gmra.mrb[24].mxu0 %v24437_v7  ;;  %20334 = vmatmul.mubr.f32.vlgmr.msra.gmra.mrb[38].mxu1 %v24437_v7 }
0x1630   :  { %21880 = vmatpush3.bf16.msra.mxu0 %v23232_v11  ;;  %21916 = vmatpush3.bf16.msra.mxu1 %v23349_v33 }
0x1631   :  { %21881 = vmatprep.subr.bf16.mxu0 %v22676_v0  ;;  %21917 = vmatprep.subr.bf16.mxu1 %v22676_v0 }
0x1632   :  { %20344 = vmatprep.mubr.msk.f32.mxu0 %vm22677_vm0, %v22678_v1  ;;  %20410 = vmatprep.mubr.msk.f32.mxu1 %vm22677_vm0, %v22678_v1 }
0x1634   :  { %21883 = vmatpush3.bf16.msra.mxu0 %v23247_v29  ;;  %21919 = vmatpush3.bf16.msra.mxu1 %v23361_v3 }
0x1635   :  { %21884 = vmatprep.subr.bf16.mxu0 %v22676_v0  ;;  %21920 = vmatprep.subr.bf16.mxu1 %v22676_v0 }
0x1637   :  { %20345 = vmatmul.mubr.f32.vlgmr.msra.gmra.mrb[26].mxu0 %v24447_v2  ;;  %20411 = vmatmul.mubr.f32.vlgmr.msra.gmra.mrb[40].mxu1 %v24447_v2 }
0x1638   :  { %21886 = vmatpush3.bf16.msra.mxu0 %v23261_v30  ;;  %21922 = vmatpush3.bf16.msra.mxu1 %v23371_v51 }
0x1639   :  { %21887 = vmatprep.subr.bf16.mxu0 %v22676_v0  ;;  %21923 = vmatprep.subr.bf16.mxu1 %v22676_v0 }
0x163a   :  { %20355 = vmatprep.mubr.msk.f32.mxu0 %vm22677_vm0, %v22678_v1  ;;  %20421 = vmatprep.mubr.msk.f32.mxu1 %vm22677_vm0, %v22678_v1 }
0x163c   :  { %21889 = vmatpush3.bf16.msra.mxu0 %v23268_v57  ;;  %21925 = vmatpush3.bf16.msra.mxu1 %v23379_v6 }
0x163d   :  { %21890 = vmatprep.subr.bf16.mxu0 %v22676_v0  ;;  %21926 = vmatprep.subr.bf16.mxu1 %v22676_v0 }
0x163f   :  { %20356 = vmatmul.mubr.f32.vlgmr.msra.gmra.mrb[26].mxu0 %v24437_v7  ;;  %20422 = vmatmul.mubr.f32.vlgmr.msra.gmra.mrb[40].mxu1 %v24437_v7 }
0x1640   :  { %21892 = vmatpush3.bf16.msra.mxu0 %v23278_v17  ;;  %21928 = vmatpush3.bf16.msra.mxu1 %v23391_v56 }
0x1641   :  { %21893 = vmatprep.subr.bf16.mxu0 %v22676_v0  ;;  %21929 = vmatprep.subr.bf16.mxu1 %v22676_v0 }
0x1642   :  { %20366 = vmatprep.mubr.msk.f32.mxu0 %vm22677_vm0, %v22678_v1  ;;  %20432 = vmatprep.mubr.msk.f32.mxu1 %vm22677_vm0, %v22678_v1 }
0x1644   :  { %21895 = vmatpush3.bf16.msra.mxu0 %v23288_v10  ;;  %21931 = vmatpush3.bf16.msra.mxu1 %v23398_v63 }
0x1645   :  { %21896 = vmatprep.subr.bf16.mxu0 %v22676_v0  ;;  %21932 = vmatprep.subr.bf16.mxu1 %v22676_v0 }
0x1647   :  { %20367 = vmatmul.mubr.f32.vlgmr.msra.gmra.mrb[26].mxu0 %v24440_v13  ;;  %20433 = vmatmul.mubr.f32.vlgmr.msra.gmra.mrb[40].mxu1 %v24440_v13 }
0x1648   :  { %21898 = vmatpush3.bf16.msra.mxu0 %v23232_v11  ;;  %21934 = vmatpush3.bf16.msra.mxu1 %v23349_v33 }
0x1649   :  { %21899 = vmatprep.subr.bf16.mxu0 %v22676_v0  ;;  %21935 = vmatprep.subr.bf16.mxu1 %v22676_v0 }
0x164a   :  { %20377 = vmatprep.mubr.msk.f32.mxu0 %vm22677_vm0, %v22678_v1  ;;  %20443 = vmatprep.mubr.msk.f32.mxu1 %vm22677_vm0, %v22678_v1 }
0x164c   :  { %21901 = vmatpush3.bf16.msra.mxu0 %v23247_v29  ;;  %21937 = vmatpush3.bf16.msra.mxu1 %v23361_v3 }
0x164d   :  { %21902 = vmatprep.subr.bf16.mxu0 %v22676_v0  ;;  %21938 = vmatprep.subr.bf16.mxu1 %v22676_v0 }
0x164f   :  { %20378 = vmatmul.mubr.f32.vlgmr.msra.gmra.mrb[26].mxu0 %v24443_v50  ;;  %20444 = vmatmul.mubr.f32.vlgmr.msra.gmra.mrb[40].mxu1 %v24443_v50 }
0x1650   :  { %21904 = vmatpush3.bf16.msra.mxu0 %v23313_v15  ;;  %21940 = vmatpush3.bf16.msra.mxu1 %v23411_v26 }
0x1651   :  { %21905 = vmatprep.subr.bf16.mxu0 %v22676_v0  ;;  %21941 = vmatprep.subr.bf16.mxu1 %v22676_v0 }
0x1652   :  { %20388 = vmatprep.mubr.msk.f32.mxu0 %vm22677_vm0, %v22678_v1  ;;  %20454 = vmatprep.mubr.msk.f32.mxu1 %vm22677_vm0, %v22678_v1 }
0x1654   :  { %21907 = vmatpush3.bf16.msra.mxu0 %v23322_v45  ;;  %21943 = vmatpush3.bf16.msra.mxu1 %v23416_v27 }
0x1655   :  { %21908 = vmatprep.subr.bf16.mxu0 %v22676_v0  ;;  %21944 = vmatprep.subr.bf16.mxu1 %v22676_v0 }
0x1657   :  { %20389 = vmatmul.mubr.f32.vlgmr.msra.gmra.mrb[26].mxu0 %v24437_v7  ;;  %20455 = vmatmul.mubr.f32.vlgmr.msra.gmra.mrb[40].mxu1 %v24437_v7 }
0x1658   :  { %21910 = vmatpush3.bf16.msra.mxu0 %v23232_v11  ;;  %21946 = vmatpush3.bf16.msra.mxu1 %v23349_v33 }
0x1659   :  { %21911 = vmatprep.subr.bf16.mxu0 %v22676_v0  ;;  %21947 = vmatprep.subr.bf16.mxu1 %v22676_v0 }
0x165a   :  { %20399 = vmatprep.mubr.msk.f32.mxu0 %vm22677_vm0, %v22678_v1  ;;  %20465 = vmatprep.mubr.msk.f32.mxu1 %vm22677_vm0, %v22678_v1 }
0x165c   :  { %21913 = vmatpush3.bf16.msra.mxu0 %v23247_v29  ;;  %21949 = vmatpush3.bf16.msra.mxu1 %v23361_v3 }
0x165d   :  { %21950 = vmatprep.subr.bf16.mxu0 %v22676_v0  ;;  %21986 = vmatprep.subr.bf16.mxu1 %v22676_v0 }
0x165f   :  { %20400 = vmatmul.mubr.f32.vlgmr.msra.gmra.mrb[26].mxu0 %v24437_v7  ;;  %20466 = vmatmul.mubr.f32.vlgmr.msra.gmra.mrb[40].mxu1 %v24437_v7 }
0x1660   :  { %21952 = vmatpush3.bf16.msra.mxu0 %v23039_v53  ;;  %21988 = vmatpush3.bf16.msra.mxu1 %v23108_v59 }
0x1661   :  { %21953 = vmatprep.subr.bf16.mxu0 %v22676_v0  ;;  %21989 = vmatprep.subr.bf16.mxu1 %v22676_v0 }
0x1662   :  { %20476 = vmatprep.mubr.msk.f32.mxu0 %vm22677_vm0, %v22678_v1  ;;  %20542 = vmatprep.mubr.msk.f32.mxu1 %vm22677_vm0, %v22678_v1 }
0x1664   :  { %21955 = vmatpush3.bf16.msra.mxu0 %v23051_v5  ;;  %21991 = vmatpush3.bf16.msra.mxu1 %v23123_v49 }
0x1665   :  { %21956 = vmatprep.subr.bf16.mxu0 %v22676_v0  ;;  %21992 = vmatprep.subr.bf16.mxu1 %v22676_v0 }
0x1702   :  { %v13253_v34 = vpop.f32.mrb[24].mxu0  ;;  %v13748_v4 = vpop.f32.mrb[38].mxu1 }
0x1703   :  { %v20269_v54 = vpop.f32.mrb[25].mxu0  ;;  %v20335_v8 = vpop.f32.mrb[39].mxu1  ;;  %v13753_v41 = vrot.slane %v13748_v4, 2  ;;  %v13258_v58 = vrot.slane %v13253_v34, 2  ;;  %v14754_v34 = vrot.slane %v24430_v21, 7 }
0x1705   :  { %v13260_v22 = vadd.f32 %v23441_v35, %v13258_v58 }
0x1707   :  { %v17312_v61 = vmul.f32 -1.442695, %v13260_v22 }
0x1732   :  { %v14245_v12 = vpop.f32.mrb[26].mxu0  ;;  %v14737_v46 = vpop.f32.mrb[40].mxu1 }
0x1733   :  { %v14250_v60 = vrot.slane %v14245_v12, 2  ;;  %v20401_v43 = vpop.f32.mrb[27].mxu0  ;;  %v20467_v16 = vpop.f32.mrb[41].mxu1  ;;  %v14742_v24 = vrot.slane %v14737_v46, 2 }
0x1735   :  { %14251 = vrot.lane.b32.xlu0 %v14250_v60, %s22680_s25 }
0x1739   :  { %13754 = vrot.lane.b32.xlu0 %v13753_v41, %s22679_s0 }
0x173d   :  { %14743 = vrot.lane.b32.xlu0 %v14742_v24, %s22681_s2 }
0x17a7   :  { %v14252_v42 = vpop.permute.xlu0 %14251 }
0x17a8   :  { %v14254_v14 = vadd.f32 %v23441_v35, %v14252_v42 }
0x17aa   :  { %22568 = vtanh.f32 %v14254_v14 }
0x17ab   :  { %22570 = vpow2.f32 %v17312_v61  ;;  %v13755_v48 = vpop.permute.xlu0 %13754 }
0x17ac   :  { %v13757_v7 = vadd.f32 %v23441_v35, %v13755_v48 }
0x17ae   :  { %v17313_v13 = vmul.f32 -1.442695, %v13757_v7 }
0x17af   :  { %v14744_v46 = vpop.permute.xlu0 %14743 }
0x17b0   :  { %v14746_v60 = vadd.f32 %v23441_v35, %v14744_v46  ;;  %v16783_v46 = vld [vmem:[%s24872_s4 + $0x18] sm:$0xff] }
0x17b2   :  { %v17314_v43 = vmul.f32 -1.442695, %v14746_v60 }
0x17b4   :  { %v22569_v18 = vpop.eup %22568 }
0x17b5   :  { %14758 = vrot.lane.b32.xlu1 %v22569_v18, %s22680_s25  ;;  %v22571_v20 = vpop.eup %22570 }
0x17b6   :  { %v13264_v32 = vadd.f32 1.0, %v22571_v20 }
0x17b8   :  { %22572 = vrcp.f32 %v13264_v32 }
0x17b9   :  { %22574 = vpow2.f32 %v17313_v13 }
0x17c2   :  { %v22573_v40 = vpop.eup %22572 }
0x17c3   :  { %v22575_v50 = vpop.eup %22574 }
0x17c4   :  { %v13761_v47 = vadd.f32 1.0, %v22575_v50 }
0x17c6   :  { %22576 = vrcp.f32 %v13761_v47  ;;  %v16780_v47 = vld [vmem:[%s24872_s4] sm:$0xff] }
0x17d0   :  { %v22577_v2 = vpop.eup %22576 }
0x17d1   :  { %v14756_v4 = vmul.f32 %v22577_v2, %v14754_v34  ;;  %v16781_v2 = vld [vmem:[%s24872_s4 + $0x8] sm:$0xff]  ;;  %v16792_v34 = vand.u32 4294901760, %v16780_v47 }
0x1827   :  { %v14759_v39 = vpop.permute.xlu1 %14758 }
0x1828   :  { %v14761_v28 = vmul.f32 %v22573_v40, %v14759_v39 }
0x182a   :  { %14763 = vrot.lane.b32.xlu1 %v14761_v28, %s22679_s0 }
0x189c   :  { %v14764_v54 = vpop.permute.xlu1 %14763 }
0x189d   :  { %v24626_v8 = vadd.f32 %v14764_v54, %v14756_v4  ;;  %v16795_v4 = vand.u32 4294901760, %v16781_v2 }
0x189f   :  { %22578 = vtanh.f32 %v24626_v8  ;;  %v24819_v54 = vpack.c.bf16 %v16795_v4, %v16792_v34 }
0x18a0   :  { %22580 = vpow2.f32 %v17314_v43  ;;  %v16801_v43 = vand.u32 4294901760, %v16783_v46 }
0x18a9   :  { %v22579_v12 = vpop.eup %22578 }
0x18aa   :  { %14769 = vrot.lane.b32.xlu1 %v22579_v12, %s22680_s25  ;;  %v22581_v16 = vpop.eup %22580  ;;  %v16879_v12 = vsub.f32 %v16781_v2, %v16795_v4 }
0x18ab   :  { %v14750_v41 = vadd.f32 1.0, %v22581_v16 }
0x18ad   :  { %22582 = vrcp.f32 %v14750_v41  ;;  %v16880_v41 = vand.u32 4294901760, %v16879_v12 }
0x18b7   :  { %v22583_v24 = vpop.eup %22582 }
0x191c   :  { %v14770_v42 = vpop.permute.xlu1 %14769 }
0x191d   :  { %v14772_v21 = vmul.f32 %v22583_v24, %v14770_v42 }
0x191f   :  { %v14774_v14 = vrot.slane %v14772_v21, 6  ;;  %v16893_v21 = vsub.f32 %v16783_v46, %v16801_v43 }
0x1921   :  { %14775 = vrot.lane.b32.xlu0 %v14774_v14, %s22679_s0 }
0x1993   :  { %v14776_v18 = vpop.permute.xlu0 %14775 }
0x1994   :  { %v14777_v58 = vsel %vm736_vm1, %v14776_v18, 0  ;;  %v16881_v18 = vsub.f32 %v16879_v12, %v16880_v41 }
0x1995   :  { %v24633_v22 = vand.u32 4294901760, %v14777_v58 }
0x1997   :  { %v24636_v61 = vsub.f32 %v14777_v58, %v24633_v22 }
0x1999   :  { %v24639_v20 = vand.u32 4294901760, %v24636_v61 }
0x199b   :  { %v14851_v32 = vsub.f32 %v24636_v61, %v24639_v20 }
0x199d   :  { %v24643_v40 = vand.u32 4294901760, %v14851_v32  ;;  %v16894_v32 = vand.u32 4294901760, %v16893_v21 }
0x199f   :  { %20477 = vmatmul.mubr.f32.vlgmr.msra.gmra.mrb[28].mxu0 %v24643_v40  ;;  %20543 = vmatmul.mubr.f32.vlgmr.msra.gmra.mrb[42].mxu1 %v24643_v40 }
0x19a0   :  { %21958 = vmatpush3.bf16.msra.mxu0 %v22946_v9  ;;  %21994 = vmatpush3.bf16.msra.mxu1 %v23141_v37 }
0x19a1   :  { %21959 = vmatprep.subr.bf16.mxu0 %v22676_v0  ;;  %21995 = vmatprep.subr.bf16.mxu1 %v22676_v0 }
0x19a2   :  { %20487 = vmatprep.mubr.msk.f32.mxu0 %vm22677_vm0, %v22678_v1  ;;  %20553 = vmatprep.mubr.msk.f32.mxu1 %vm22677_vm0, %v22678_v1 }
0x19a4   :  { %21961 = vmatpush3.bf16.msra.mxu0 %v22957_v19  ;;  %21997 = vmatpush3.bf16.msra.mxu1 %v23148_v62 }
0x19a5   :  { %21962 = vmatprep.subr.bf16.mxu0 %v22676_v0  ;;  %21998 = vmatprep.subr.bf16.mxu1 %v22676_v0 }
0x19a7   :  { %20488 = vmatmul.mubr.f32.vlgmr.msra.gmra.mrb[28].mxu0 %v24633_v22  ;;  %20554 = vmatmul.mubr.f32.vlgmr.msra.gmra.mrb[42].mxu1 %v24633_v22 }
0x19a8   :  { %21964 = vmatpush3.bf16.msra.mxu0 %v22986_v25  ;;  %22000 = vmatpush3.bf16.msra.mxu1 %v23158_v38 }
0x19a9   :  { %21965 = vmatprep.subr.bf16.mxu0 %v22676_v0  ;;  %22001 = vmatprep.subr.bf16.mxu1 %v22676_v0 }
0x19aa   :  { %20498 = vmatprep.mubr.msk.f32.mxu0 %vm22677_vm0, %v22678_v1  ;;  %20564 = vmatprep.mubr.msk.f32.mxu1 %vm22677_vm0, %v22678_v1 }
0x19ac   :  { %21967 = vmatpush3.bf16.msra.mxu0 %v23015_v52  ;;  %22003 = vmatpush3.bf16.msra.mxu1 %v23167_v44 }
0x19ad   :  { %21968 = vmatprep.subr.bf16.mxu0 %v22676_v0  ;;  %22004 = vmatprep.subr.bf16.mxu1 %v22676_v0 }
0x19af   :  { %20499 = vmatmul.mubr.f32.vlgmr.msra.gmra.mrb[28].mxu0 %v24636_v61  ;;  %20565 = vmatmul.mubr.f32.vlgmr.msra.gmra.mrb[42].mxu1 %v24636_v61 }
0x19b0   :  { %21970 = vmatpush3.bf16.msra.mxu0 %v23039_v53  ;;  %22006 = vmatpush3.bf16.msra.mxu1 %v23108_v59 }
0x19b1   :  { %21971 = vmatprep.subr.bf16.mxu0 %v22676_v0  ;;  %22007 = vmatprep.subr.bf16.mxu1 %v22676_v0 }
0x19b2   :  { %20509 = vmatprep.mubr.msk.f32.mxu0 %vm22677_vm0, %v22678_v1  ;;  %20575 = vmatprep.mubr.msk.f32.mxu1 %vm22677_vm0, %v22678_v1 }
0x19b4   :  { %21973 = vmatpush3.bf16.msra.mxu0 %v23051_v5  ;;  %22009 = vmatpush3.bf16.msra.mxu1 %v23123_v49 }
0x19b5   :  { %21974 = vmatprep.subr.bf16.mxu0 %v22676_v0  ;;  %22010 = vmatprep.subr.bf16.mxu1 %v22676_v0 }
0x19b7   :  { %20510 = vmatmul.mubr.f32.vlgmr.msra.gmra.mrb[28].mxu0 %v24639_v20  ;;  %20576 = vmatmul.mubr.f32.vlgmr.msra.gmra.mrb[42].mxu1 %v24639_v20 }
0x19b8   :  { %21976 = vmatpush3.bf16.msra.mxu0 %v23067_v31  ;;  %22012 = vmatpush3.bf16.msra.mxu1 %v23190_v23 }
0x19b9   :  { %21977 = vmatprep.subr.bf16.mxu0 %v22676_v0  ;;  %22013 = vmatprep.subr.bf16.mxu1 %v22676_v0 }
0x19ba   :  { %20520 = vmatprep.mubr.msk.f32.mxu0 %vm22677_vm0, %v22678_v1  ;;  %20586 = vmatprep.mubr.msk.f32.mxu1 %vm22677_vm0, %v22678_v1 }
0x19bc   :  { %21979 = vmatpush3.bf16.msra.mxu0 %v23079_v55  ;;  %22015 = vmatpush3.bf16.msra.mxu1 %v23203_v36 }
0x19bd   :  { %21980 = vmatprep.subr.bf16.mxu0 %v22676_v0  ;;  %22016 = vmatprep.subr.bf16.mxu1 %v22676_v0 }
0x19bf   :  { %20521 = vmatmul.mubr.f32.vlgmr.msra.gmra.mrb[28].mxu0 %v24633_v22  ;;  %20587 = vmatmul.mubr.f32.vlgmr.msra.gmra.mrb[42].mxu1 %v24633_v22 }
0x19c0   :  { %21982 = vmatpush3.bf16.msra.mxu0 %v23039_v53  ;;  %22018 = vmatpush3.bf16.msra.mxu1 %v23108_v59 }
0x19c1   :  { %21983 = vmatprep.subr.bf16.mxu0 %v22676_v0  ;;  %22019 = vmatprep.subr.bf16.mxu1 %v22676_v0 }
0x19c2   :  { %20531 = vmatprep.mubr.msk.f32.mxu0 %vm22677_vm0, %v22678_v1  ;;  %20597 = vmatprep.mubr.msk.f32.mxu1 %vm22677_vm0, %v22678_v1 }
0x19c4   :  { %21985 = vmatpush3.bf16.msra.mxu0 %v23051_v5  ;;  %22021 = vmatpush3.bf16.msra.mxu1 %v23123_v49 }
0x19c5   :  { %22022 = vmatprep.subr.bf16.mxu0 %v22676_v0  ;;  %22058 = vmatprep.subr.bf16.mxu1 %v22676_v0 }
0x19c7   :  { %20532 = vmatmul.mubr.f32.vlgmr.msra.gmra.mrb[28].mxu0 %v24633_v22  ;;  %20598 = vmatmul.mubr.f32.vlgmr.msra.gmra.mrb[42].mxu1 %v24633_v22 }
0x19c8   :  { %22024 = vmatpush3.bf16.msra.mxu0 %v23232_v11  ;;  %22060 = vmatpush3.bf16.msra.mxu1 %v23349_v33 }
0x19c9   :  { %22025 = vmatprep.subr.bf16.mxu0 %v22676_v0  ;;  %22061 = vmatprep.subr.bf16.mxu1 %v22676_v0 }
0x19ca   :  { %20608 = vmatprep.mubr.msk.f32.mxu0 %vm22677_vm0, %v22678_v1  ;;  %20674 = vmatprep.mubr.msk.f32.mxu1 %vm22677_vm0, %v22678_v1 }
0x19cc   :  { %22027 = vmatpush3.bf16.msra.mxu0 %v23247_v29  ;;  %22063 = vmatpush3.bf16.msra.mxu1 %v23361_v3 }
0x19cd   :  { %22028 = vmatprep.subr.bf16.mxu0 %v22676_v0  ;;  %22064 = vmatprep.subr.bf16.mxu1 %v22676_v0 }
0x19cf   :  { %20609 = vmatmul.mubr.f32.vlgmr.msra.gmra.mrb[30].mxu0 %v24643_v40  ;;  %20675 = vmatmul.mubr.f32.vlgmr.msra.gmra.mrb[44].mxu1 %v24643_v40 }
0x19d0   :  { %22030 = vmatpush3.bf16.msra.mxu0 %v23261_v30  ;;  %22066 = vmatpush3.bf16.msra.mxu1 %v23371_v51 }
0x19d1   :  { %22031 = vmatprep.subr.bf16.mxu0 %v22676_v0  ;;  %22067 = vmatprep.subr.bf16.mxu1 %v22676_v0 }
0x19d2   :  { %20619 = vmatprep.mubr.msk.f32.mxu0 %vm22677_vm0, %v22678_v1  ;;  %20685 = vmatprep.mubr.msk.f32.mxu1 %vm22677_vm0, %v22678_v1 }
0x19d4   :  { %22033 = vmatpush3.bf16.msra.mxu0 %v23268_v57  ;;  %22069 = vmatpush3.bf16.msra.mxu1 %v23379_v6 }
0x19d5   :  { %22034 = vmatprep.subr.bf16.mxu0 %v22676_v0  ;;  %22070 = vmatprep.subr.bf16.mxu1 %v22676_v0 }
0x19d7   :  { %20620 = vmatmul.mubr.f32.vlgmr.msra.gmra.mrb[30].mxu0 %v24633_v22  ;;  %20686 = vmatmul.mubr.f32.vlgmr.msra.gmra.mrb[44].mxu1 %v24633_v22 }
0x19d8   :  { %22036 = vmatpush3.bf16.msra.mxu0 %v23278_v17  ;;  %22072 = vmatpush3.bf16.msra.mxu1 %v23391_v56  ;;  %v16761_v56 = vrot.slane %v24626_v8, 7  ;;  %v16872_v8 = vsub.f32 %v16780_v47, %v16792_v34 }
0x19d9   :  { %22037 = vmatprep.subr.bf16.mxu0 %v22676_v0  ;;  %22073 = vmatprep.subr.bf16.mxu1 %v22676_v0 }
0x19da   :  { %20630 = vmatprep.mubr.msk.f32.mxu0 %vm22677_vm0, %v22678_v1  ;;  %20696 = vmatprep.mubr.msk.f32.mxu1 %vm22677_vm0, %v22678_v1  ;;  %v16873_v16 = vand.u32 4294901760, %v16872_v8 }
0x19dc   :  { %22039 = vmatpush3.bf16.msra.mxu0 %v23288_v10  ;;  %22075 = vmatpush3.bf16.msra.mxu1 %v23398_v63  ;;  %v16874_v14 = vsub.f32 %v16872_v8, %v16873_v16 }
0x19dd   :  { %22040 = vmatprep.subr.bf16.mxu0 %v22676_v0  ;;  %22076 = vmatprep.subr.bf16.mxu1 %v22676_v0 }
0x19df   :  { %20631 = vmatmul.mubr.f32.vlgmr.msra.gmra.mrb[30].mxu0 %v24636_v61  ;;  %20697 = vmatmul.mubr.f32.vlgmr.msra.gmra.mrb[44].mxu1 %v24636_v61  ;;  %v16875_v61 = vand.u32 4294901760, %v16874_v14 }
0x19e0   :  { %22042 = vmatpush3.bf16.msra.mxu0 %v23232_v11  ;;  %22078 = vmatpush3.bf16.msra.mxu1 %v23349_v33 }
0x19e1   :  { %22043 = vmatprep.subr.bf16.mxu0 %v22676_v0  ;;  %22079 = vmatprep.subr.bf16.mxu1 %v22676_v0 }
0x19e2   :  { %20641 = vmatprep.mubr.msk.f32.mxu0 %vm22677_vm0, %v22678_v1  ;;  %20707 = vmatprep.mubr.msk.f32.mxu1 %vm22677_vm0, %v22678_v1 }
0x19e4   :  { %22045 = vmatpush3.bf16.msra.mxu0 %v23247_v29  ;;  %22081 = vmatpush3.bf16.msra.mxu1 %v23361_v3 }
0x19e5   :  { %22046 = vmatprep.subr.bf16.mxu0 %v22676_v0  ;;  %22082 = vmatprep.subr.bf16.mxu1 %v22676_v0 }
0x19e7   :  { %20642 = vmatmul.mubr.f32.vlgmr.msra.gmra.mrb[30].mxu0 %v24639_v20  ;;  %20708 = vmatmul.mubr.f32.vlgmr.msra.gmra.mrb[44].mxu1 %v24639_v20 }
0x19e8   :  { %22048 = vmatpush3.bf16.msra.mxu0 %v23313_v15  ;;  %22084 = vmatpush3.bf16.msra.mxu1 %v23411_v26 }
0x19e9   :  { %22049 = vmatprep.subr.bf16.mxu0 %v22676_v0  ;;  %22085 = vmatprep.subr.bf16.mxu1 %v22676_v0 }
0x19ea   :  { %20652 = vmatprep.mubr.msk.f32.mxu0 %vm22677_vm0, %v22678_v1  ;;  %20718 = vmatprep.mubr.msk.f32.mxu1 %vm22677_vm0, %v22678_v1 }
0x19ec   :  { %22051 = vmatpush3.bf16.msra.mxu0 %v23322_v45  ;;  %22087 = vmatpush3.bf16.msra.mxu1 %v23416_v27 }
0x19ed   :  { %22052 = vmatprep.subr.bf16.mxu0 %v22676_v0  ;;  %22088 = vmatprep.subr.bf16.mxu1 %v22676_v0 }
0x19ef   :  { %20653 = vmatmul.mubr.f32.vlgmr.msra.gmra.mrb[30].mxu0 %v24633_v22  ;;  %20719 = vmatmul.mubr.f32.vlgmr.msra.gmra.mrb[44].mxu1 %v24633_v22 }
0x19f0   :  { %22054 = vmatpush3.bf16.msra.mxu0 %v23232_v11  ;;  %22090 = vmatpush3.bf16.msra.mxu1 %v23349_v33 }
0x19f1   :  { %22055 = vmatprep.subr.bf16.mxu0 %v22676_v0  ;;  %22091 = vmatprep.subr.bf16.mxu1 %v22676_v0 }
0x19f2   :  { %20663 = vmatprep.mubr.msk.f32.mxu0 %vm22677_vm0, %v22678_v1  ;;  %20729 = vmatprep.mubr.msk.f32.mxu1 %vm22677_vm0, %v22678_v1 }
0x19f4   :  { %22057 = vmatpush3.bf16.msra.mxu0 %v23247_v29  ;;  %22093 = vmatpush3.bf16.msra.mxu1 %v23361_v3 }
0x19f5   :  { %22094 = vmatprep.subr.bf16.mxu0 %v22676_v0 }
0x19f7   :  { %20664 = vmatmul.mubr.f32.vlgmr.msra.gmra.mrb[30].mxu0 %v24633_v22  ;;  %20730 = vmatmul.mubr.f32.vlgmr.msra.gmra.mrb[44].mxu1 %v24633_v22 }
0x19f8   :  { %20740 = vmatprep.mubr.msk.f32.mxu0 %vm22677_vm0, %v22678_v1  ;;  %22096 = vmatpush3.bf16.msra.mxu0 %v24819_v54 }
0x19f9   :  { %22097 = vmatprep.subr.bf16.mxu0 %v22676_v0 }
0x1a9a   :  { %v15260_v9 = vpop.f32.mrb[28].mxu0  ;;  %v15755_v19 = vpop.f32.mrb[42].mxu1 }
0x1a9b   :  { %v20533_v25 = vpop.f32.mrb[29].mxu0  ;;  %v20599_v52 = vpop.f32.mrb[43].mxu1  ;;  %v15760_v49 = vrot.slane %v15755_v19, 1  ;;  %v15265_v23 = vrot.slane %v15260_v9, 1  ;;  %v16882_v9 = vand.u32 4294901760, %v16881_v18 }
0x1a9c   :  { %v16895_v25 = vsub.f32 %v16893_v21, %v16894_v32 }
0x1a9d   :  { %v15267_v36 = vadd.f32 %v23441_v35, %v15265_v23 }
0x1a9f   :  { %v17315_v11 = vmul.f32 -1.442695, %v15267_v36 }
0x1aca   :  { %v16252_v53 = vpop.f32.mrb[30].mxu0  ;;  %v16744_v5 = vpop.f32.mrb[44].mxu1 }
0x1acb   :  { %v16257_v31 = vrot.slane %v16252_v53, 1  ;;  %v20665_v55 = vpop.f32.mrb[31].mxu0  ;;  %v20731_v59 = vpop.f32.mrb[45].mxu1  ;;  %v16749_v37 = vrot.slane %v16744_v5, 1  ;;  %v22101_v53 = vpack.c.bf16 %v16882_v9, %v16875_v61 }
0x1acc   :  { %v22107_v59 = vpack.c.bf16 %v16879_v12, %v16872_v8 }
0x1acd   :  { %16258 = vrot.lane.b32.xlu1 %v16257_v31, %s22680_s25  ;;  %v16896_v31 = vand.u32 4294901760, %v16895_v25 }
0x1ad1   :  { %15761 = vrot.lane.b32.xlu1 %v15760_v49, %s22679_s0 }
0x1ad5   :  { %16750 = vrot.lane.b32.xlu1 %v16749_v37, %s22681_s2  ;;  %v22119_v37 = vpack.c.bf16 %v16880_v41, %v16873_v16 }
0x1b3f   :  { %v16259_v62 = vpop.permute.xlu1 %16258 }
0x1b40   :  { %v16261_v38 = vadd.f32 %v23441_v35, %v16259_v62 }
0x1b42   :  { %22584 = vtanh.f32 %v16261_v38 }
0x1b43   :  { %22586 = vpow2.f32 %v17315_v11  ;;  %v15762_v15 = vpop.permute.xlu1 %15761 }
0x1b44   :  { %v15764_v45 = vadd.f32 %v23441_v35, %v15762_v15 }
0x1b46   :  { %v17316_v33 = vmul.f32 -1.442695, %v15764_v45 }
0x1b47   :  { %v16751_v28 = vpop.permute.xlu1 %16750 }
0x1b48   :  { %v16753_v48 = vadd.f32 %v23441_v35, %v16751_v28  ;;  %v16782_v35 = vld [vmem:[%s24872_s4 + $0x10] sm:$0xff] }
0x1b49   :  { %v16798_v60 = vand.u32 4294901760, %v16782_v35 }
0x1b4a   :  { %v17317_v7 = vmul.f32 -1.442695, %v16753_v48 }
0x1b4b   :  { %v22098_v24 = vpack.c.bf16 %v16801_v43, %v16798_v60  ;;  %v16886_v42 = vsub.f32 %v16782_v35, %v16798_v60 }
0x1b4c   :  { %v22585_v44 = vpop.eup %22584 }
0x1b4d   :  { %16765 = vrot.lane.b32.xlu0 %v22585_v44, %s22680_s25  ;;  %v22587_v29 = vpop.eup %22586  ;;  %22099 = vmatpush3.bf16.msra.mxu0 %v22098_v24  ;;  %v16887_v20 = vand.u32 4294901760, %v16886_v42  ;;  %v22110_v49 = vpack.c.bf16 %v16893_v21, %v16886_v42 }
0x1b4e   :  { %v15271_v30 = vadd.f32 1.0, %v22587_v29  ;;  %22100 = vmatprep.subr.bf16.mxu0 %v22676_v0 }
0x1b4f   :  { %v16888_v19 = vsub.f32 %v16886_v42, %v16887_v20  ;;  %v22122_v62 = vpack.c.bf16 %v16894_v32, %v16887_v20 }
0x1b50   :  { %22588 = vrcp.f32 %v15271_v30 }
0x1b51   :  { %22590 = vpow2.f32 %v17316_v33  ;;  %v16889_v5 = vand.u32 4294901760, %v16888_v19 }
0x1b53   :  { %v22104_v55 = vpack.c.bf16 %v16896_v31, %v16889_v5 }
0x1b5a   :  { %v22589_v57 = vpop.eup %22588 }
0x1b5b   :  { %v22591_v3 = vpop.eup %22590 }
0x1b5c   :  { %v15768_v51 = vadd.f32 1.0, %v22591_v3 }
0x1b5e   :  { %22592 = vrcp.f32 %v15768_v51 }
0x1b68   :  { %v22593_v6 = vpop.eup %22592 }
0x1b69   :  { %v16763_v63 = vmul.f32 %v22593_v6, %v16761_v56 }
0x1bbf   :  { %v16766_v17 = vpop.permute.xlu0 %16765 }
0x1bc0   :  { %v16768_v10 = vmul.f32 %v22589_v57, %v16766_v17  ;;  %v16784_v57 = vld [vmem:[%s24873_s5] sm:$0x1] }
0x1bc2   :  { %16770 = vrot.lane.b32.xlu0 %v16768_v10, %s22679_s0 }
0x1c34   :  { %v16771_v26 = vpop.permute.xlu0 %16770 }
0x1c35   :  { %v16773_v27 = vadd.f32 %v16771_v26, %v16763_v63 }
0x1c37   :  { %22594 = vtanh.f32 %v16773_v27 }
0x1c38   :  { %22596 = vpow2.f32 %v17317_v7 }
0x1c41   :  { %v22595_v39 = vpop.eup %22594 }
0x1c42   :  { %16776 = vrot.lane.b32.xlu0 %v22595_v39, %s22680_s25  ;;  %v22597_v13 = vpop.eup %22596 }
0x1c43   :  { %v16757_v50 = vadd.f32 1.0, %v22597_v13 }
0x1c45   :  { %22598 = vrcp.f32 %v16757_v50 }
0x1c4f   :  { %v22599_v58 = vpop.eup %22598 }
0x1cb4   :  { %v16777_v22 = vpop.permute.xlu0 %16776 }
0x1cb5   :  { %v16779_v40 = vmul.f32 %v22599_v58, %v16777_v22 }
0x1cb7   :  { %v16786_v52 = vrot.slane %v16779_v40, 7 }
0x1cb9   :  { %16787 = vrot.lane.b32.xlu1 %v16786_v52, %s22679_s0 }
0x1d2b   :  { %v16788_v38 = vpop.permute.xlu1 %16787 }
0x1d2c   :  { %v16789_v44 = vsel %vm736_vm1, %v16788_v38, 0 }
0x1d2d   :  { %v16860_v23 = vand.u32 4294901760, %v16789_v44 }
0x1d2f   :  { %v16861_v36 = vsub.f32 %v16789_v44, %v16860_v23 }
0x1d31   :  { %v16862_v11 = vand.u32 4294901760, %v16861_v36 }
0x1d33   :  { %v16863_v29 = vsub.f32 %v16861_v36, %v16862_v11 }
0x1d35   :  { %v16864_v30 = vand.u32 4294901760, %v16863_v29 }
0x1d37   :  { %20741 = vmatmul.mubr.f32.vlgmr.msra.gmra.mrb[32].mxu0 %v16864_v30 }
0x1d38   :  { %22102 = vmatpush3.bf16.msra.mxu0 %v22101_v53  ;;  %20751 = vmatprep.mubr.msk.f32.mxu0 %vm22677_vm0, %v22678_v1 }
0x1d39   :  { %22103 = vmatprep.subr.bf16.mxu0 %v22676_v0 }
0x1d3c   :  { %22105 = vmatpush3.bf16.msra.mxu0 %v22104_v55 }
0x1d3d   :  { %22106 = vmatprep.subr.bf16.mxu0 %v22676_v0 }
0x1d3f   :  { %20752 = vmatmul.mubr.f32.vlgmr.msra.gmra.mrb[32].mxu0 %v16860_v23 }
0x1d40   :  { %22108 = vmatpush3.bf16.msra.mxu0 %v22107_v59  ;;  %20762 = vmatprep.mubr.msk.f32.mxu0 %vm22677_vm0, %v22678_v1 }
0x1d41   :  { %22109 = vmatprep.subr.bf16.mxu0 %v22676_v0 }
0x1d44   :  { %22111 = vmatpush3.bf16.msra.mxu0 %v22110_v49 }
0x1d45   :  { %22112 = vmatprep.subr.bf16.mxu0 %v22676_v0 }
0x1d47   :  { %20763 = vmatmul.mubr.f32.vlgmr.msra.gmra.mrb[32].mxu0 %v16861_v36 }
0x1d48   :  { %22114 = vmatpush3.bf16.msra.mxu0 %v24819_v54  ;;  %20773 = vmatprep.mubr.msk.f32.mxu0 %vm22677_vm0, %v22678_v1 }
0x1d49   :  { %22115 = vmatprep.subr.bf16.mxu0 %v22676_v0 }
0x1d4c   :  { %22117 = vmatpush3.bf16.msra.mxu0 %v22098_v24 }
0x1d4d   :  { %22118 = vmatprep.subr.bf16.mxu0 %v22676_v0 }
0x1d4f   :  { %20774 = vmatmul.mubr.f32.vlgmr.msra.gmra.mrb[32].mxu0 %v16862_v11 }
0x1d50   :  { %22120 = vmatpush3.bf16.msra.mxu0 %v22119_v37  ;;  %20784 = vmatprep.mubr.msk.f32.mxu0 %vm22677_vm0, %v22678_v1 }
0x1d51   :  { %22121 = vmatprep.subr.bf16.mxu0 %v22676_v0 }
0x1d54   :  { %22123 = vmatpush3.bf16.msra.mxu0 %v22122_v62 }
0x1d55   :  { %22124 = vmatprep.subr.bf16.mxu0 %v22676_v0 }
0x1d57   :  { %20785 = vmatmul.mubr.f32.vlgmr.msra.gmra.mrb[32].mxu0 %v16860_v23 }
0x1d58   :  { %22126 = vmatpush3.bf16.msra.mxu0 %v24819_v54  ;;  %20795 = vmatprep.mubr.msk.f32.mxu0 %vm22677_vm0, %v22678_v1 }
0x1d59   :  { %22127 = vmatprep.subr.bf16.mxu0 %v22676_v0 }
0x1d5c   :  { %22129 = vmatpush3.bf16.msra.mxu0 %v22098_v24 }
0x1d5f   :  { %20796 = vmatmul.mubr.f32.vlgmr.msra.gmra.mrb[32].mxu0 %v16860_v23 }
0x1e32   :  { %v17272_v17 = vpop.f32.mrb[32].mxu0 }
0x1e33   :  { %v22132_v10 = vadd.f32 %v17272_v17, %v16784_v57  ;;  %v20797_v15 = vpop.f32.mrb[33].mxu0 }
0x1e35   :  { %17276 = vst [vmem:[#allocation7] sm:$0x1] %v22132_v10 }
0x1e36   :  { %22655 = shalt.err (!%p22652_p6)
}
0x1e37   :  { %s22656_s17 = scalar_lea.hbm %s24874_s6, 16 }
0x1e38   :  { %p22657_p7 = scmp.ne.s32.totalorder %s24874_s6, %s22656_s17  ;;  %p22660_p8 = scmp.lt.u32.totalorder %s22656_s17, %s24874_s6 }
0x1e3a   :  { %p22662_p9 = pnand %p22660_p8, %p22657_p7 }
0x1e3c   :  { %22665 = shalt.err (!%p22662_p9)
}
0x1e3d   :  { %17286 = dma.vmem_to_hbm [thread:$0]  %s17284_s12, 16, %s24874_s6, [#allocation4]  }
0x1e3e   :  { %22670 = dma.done.wait [#allocation4], 16  }
0x1e3f   :  { %22671 = vsyncadd [#allocation4], 4294967280 }
0x1e40   :  { %17290 = vsyncpa [#allocation3], 1 }
0x1e41   :  { %17291 = vsyncpa [#allocation6], 1 }
0x1e42   :  { %17292 = vsyncpa [#allocation4], 1 }

</bundles_post_ra>
